<compile_context>
chip_gen: v5e
topology: v5e:2x2
jax: 0.10.0
libtpu: 0.0.40
codegen_flags: <defaults>
</compile_context>

<pallas_src>
import jax
import jax.numpy as jnp
from jax.experimental import pallas as pl
from jax.experimental.pallas import tpu as pltpu

_EPS = 1e-5
_VMEM = pl.BlockSpec(memory_space=pltpu.MemorySpace.VMEM)


# ----------------------------------------------------------------------------
# Elementwise helpers (pure jnp; usable both inside the kernel and in the ref)
# ----------------------------------------------------------------------------
def _softplus(y):
    return jnp.maximum(y, 0.0) + jnp.log1p(jnp.exp(-jnp.abs(y)))


def _sigmoid(y):
    return 1.0 / (1.0 + jnp.exp(-y))


def _lin_sp_bn(x, w, bss):
    """softplus(x @ w + bias) * scale + shift, with bss rows = (bias, scale, shift)."""
    y = jnp.dot(x, w, preferred_element_type=jnp.float32) + bss[0:1]
    return _softplus(y) * bss[1:2] + bss[2:3]


def _lstm_stack(xs, wih, whh, b, hidden):
    """One LSTM layer over a list of T (B, I) inputs.

    The input projection is hoisted out of the recurrence (one (T*B, I) x
    (I, 4H) matmul) and the 4 gate matmuls are fused into a single (H, 4H)
    dot per step (gate order i, f, g, o as in PyTorch)."""
    T = len(xs)
    B = xs[0].shape[0]
    xp = jnp.dot(jnp.concatenate(xs, axis=0), wih,
                 preferred_element_type=jnp.float32) + b          # (T*B, 4H)
    h = jnp.zeros((B, hidden), jnp.float32)
    c = jnp.zeros((B, hidden), jnp.float32)
    outs = []
    for t in range(T):                                            # fully unrolled
        g = xp[t * B:(t + 1) * B, :] + jnp.dot(
            h, whh, preferred_element_type=jnp.float32)
        i = _sigmoid(g[:, 0:hidden])
        f = _sigmoid(g[:, hidden:2 * hidden])
        gg = jnp.tanh(g[:, 2 * hidden:3 * hidden])
        o = _sigmoid(g[:, 3 * hidden:4 * hidden])
        c = f * c + i * gg
        h = o * jnp.tanh(c)
        outs.append(h)
    return outs


# ----------------------------------------------------------------------------
# Full forward math, parameterised by a `load(slab, name)` accessor so the
# same code drives both the Pallas kernel (ref-backed) and a pure-jnp reference.
# ----------------------------------------------------------------------------
def _ae_math(load, ts, tcol, cfg):
    hd, ni, L = cfg["hidden_dim"], cfg["n_inputs"], cfg["length"]

    # --- encoder LSTM (2 layers), module-level Tanh fused into the flatten ---
    xs = [ts[:, t, :] for t in range(L)]
    xs = _lstm_stack(xs, load("enc_lstm", "wih1"), load("enc_lstm", "whh1"),
                     load("enc_lstm", "b1"), hd)
    xs = _lstm_stack(xs, load("enc_lstm", "wih2"), load("enc_lstm", "whh2"),
                     load("enc_lstm", "b2"), hd)
    xf = jnp.concatenate([jnp.tanh(h) for h in xs], axis=1)        # (B, L*hd)

    # --- first_layer + Softplus + (Dropout=id) + BN1d(hd) ---
    ehd = _lin_sp_bn(xf, load("first", "w"), load("first", "bss"))  # (B, hd)

    # --- first monotonic layer (first_layer=True: exp only on time weight) ---
    bss0 = load("head", "m0_bss")
    y0 = (jnp.dot(ehd, load("head", "m0_w"), preferred_element_type=jnp.float32)
          + tcol * load("head", "m0_wt_exp") + bss0[0:1])
    h = _softplus(y0) * bss0[1:2] + bss0[2:3]                       # SP + PBN(32)

    # --- encoder tail: Mono(32,16)+SP+PBN16, Mono(16,nf) ---
    h = _lin_sp_bn(h, load("head", "m1_wexp"), load("head", "m1_bss"))
    encoded = (jnp.dot(h, load("head", "m2_wexp"),
                       preferred_element_type=jnp.float32) + load("head", "m2_b"))

    # --- monotonic decoder: Mono+SP+PBN16, Mono+SP+PBN32, Mono+SP+BN(hd+1) ---
    h = _lin_sp_bn(encoded, load("head", "d0_wexp"), load("head", "d0_bss"))
    h = _lin_sp_bn(h, load("head", "d1_wexp"), load("head", "d1_bss"))
    full = _lin_sp_bn(h, load("head", "d2_wexp"), load("head", "d2_bss"))  # (B, hd+1)
    decoded = full[:, 0:hd]
    rec_time = full[:, hd:hd + 1]

    # --- last_layer + Tanh (Dropout=id) ---
    y = jnp.tanh(jnp.dot(decoded, load("last", "w"),
                         preferred_element_type=jnp.float32) + load("last", "b"))

    # --- decoder LSTM (2 layers), reshape(B, L*hd) -> per-t lane slices ---
    xs = [y[:, t * hd:(t + 1) * hd] for t in range(L)]
    xs = _lstm_stack(xs, load("dec_lstm", "wih1"), load("dec_lstm", "whh1"),
                     load("dec_lstm", "b1"), ni)
    xs = _lstm_stack(xs, load("dec_lstm", "wih2"), load("dec_lstm", "whh2"),
                     load("dec_lstm", "b2"), ni)
    return xs, rec_time, encoded, ehd, decoded


# ----------------------------------------------------------------------------
# The single fused Pallas kernel
# ----------------------------------------------------------------------------
def _make_ae_kernel(cfg, layout):
    L = cfg["length"]

    def kernel(ts_ref, t_ref, elstm_ref, dlstm_ref, first_ref, last_ref, head_ref,
               xout_ref, rt_ref, enc_out_ref, ehd_out_ref, dec_out_ref):
        refs = {"enc_lstm": elstm_ref, "dec_lstm": dlstm_ref, "first": first_ref,
                "last": last_ref, "head": head_ref}

        def load(slab, name):
            off, r, c = layout[slab][name]          # static offsets (8-row aligned)
            return refs[slab][off:off + r, 0:c]

        xs, rec_time, encoded, ehd, decoded = _ae_math(
            load, ts_ref[...], t_ref[...], cfg)

        ehd_out_ref[...] = ehd
        enc_out_ref[...] = encoded
        dec_out_ref[...] = decoded
        rt_ref[...] = rec_time
        for t in range(L):                           # static per-timestep stores
            xout_ref[:, t, :] = xs[t]

    return kernel


def forward(params, layout, cfg, time_series, time, demo=None):
    # TODO(synk): demo concat (use_demo=True), training-mode BN, Dropout sampling
    # are not implemented — eval-mode, demo=None semantics only.
    assert demo is None
    B, L, ni = time_series.shape
    hd, nf = cfg["hidden_dim"], cfg["n_features"]

    out_shape = (
        jax.ShapeDtypeStruct((B, L, ni), jnp.float32),   # x (decoder LSTM output)
        jax.ShapeDtypeStruct((B, 1), jnp.float32),       # reconstructed_time
        jax.ShapeDtypeStruct((B, nf), jnp.float32),      # encoded
        jax.ShapeDtypeStruct((B, hd), jnp.float32),      # encoded_hidden_dim
        jax.ShapeDtypeStruct((B, hd), jnp.float32),      # decoded
    )
    x_out, rec_time, encoded, ehd, decoded = pl.pallas_call(
        _make_ae_kernel(cfg, layout),
        out_shape=out_shape,
        in_specs=[_VMEM] * 7,
        out_specs=tuple([_VMEM] * 5),
    )(time_series.astype(jnp.float32),
      time.reshape(B, 1).astype(jnp.float32),
      params["enc_lstm"], params["dec_lstm"],
      params["first"], params["last"], params["head"])
    return x_out, rec_time.reshape(-1), encoded, ehd, decoded


# ----------------------------------------------------------------------------
# Pure-jnp reference (same math, no Pallas) for a numerical sanity check
# ----------------------------------------------------------------------------
def _ref_forward(params, layout, cfg, time_series, time):
    B = time_series.shape[0]

    def load(slab, name):
        off, r, c = layout[slab][name]
        return params[slab][off:off + r, 0:c]

    xs, rec_time, encoded, ehd, decoded = _ae_math(
        load, time_series.astype(jnp.float32),
        time.reshape(B, 1).astype(jnp.float32), cfg)
    return (jnp.stack(xs, axis=1), rec_time.reshape(-1), encoded, ehd, decoded)


# ----------------------------------------------------------------------------
# Parameter packing: everything pre-folded (exp(W), BN scale/shift) and packed
# into a few VMEM slabs with static, 8-row-aligned piece offsets.
# ----------------------------------------------------------------------------
def _round_up(n, m):
    return ((n + m - 1) // m) * m


class _Packer:
    def __init__(self, width):
        self.width = width
        self.pieces = []
        self.layout = {}
        self.rows = 0

    def add(self, name, arr):
        arr = jnp.asarray(arr, jnp.float32)
        r, c = arr.shape
        assert c <= self.width
        self.layout[name] = (self.rows, r, c)
        pr = _round_up(r, 8)
        self.pieces.append(jnp.zeros((pr, self.width), jnp.float32).at[:r, :c].set(arr))
        self.rows += pr

    def finish(self):
        return jnp.concatenate(self.pieces, axis=0), self.layout


def _linear_params(key, fan_in, fan_out):
    k1, k2 = jax.random.split(key)
    lim = 1.0 / (fan_in ** 0.5)
    w = jax.random.uniform(k1, (fan_in, fan_out), jnp.float32, -lim, lim)   # W^T
    b = jax.random.uniform(k2, (fan_out,), jnp.float32, -lim, lim)
    return w, b


def _xavier_T(key, fan_in, fan_out):
    lim = (6.0 / (fan_in + fan_out)) ** 0.5
    return jax.random.uniform(key, (fan_in, fan_out), jnp.float32, -lim, lim)


def _lstm_params(key, input_size, hidden):
    """Fused gate weights (PyTorch layout transposed): wih (I,4H), whh (H,4H), b=(1,4H)."""
    k1, k2, k3, k4 = jax.random.split(key, 4)
    lim = 1.0 / (hidden ** 0.5)
    wih = jax.random.uniform(k1, (input_size, 4 * hidden), jnp.float32, -lim, lim)
    whh = jax.random.uniform(k2, (hidden, 4 * hidden), jnp.float32, -lim, lim)
    b = (jax.random.uniform(k3, (1, 4 * hidden), jnp.float32, -lim, lim)
         + jax.random.uniform(k4, (1, 4 * hidden), jnp.float32, -lim, lim))
    return wih, whh, b


def _bn_fold(num, positive=False):
    # eval-mode BN with default init: gamma=1, beta=0, running_mean=0, running_var=1
    gamma = jnp.ones((num,), jnp.float32)
    beta = jnp.zeros((num,), jnp.float32)
    mean = jnp.zeros((num,), jnp.float32)
    var = jnp.ones((num,), jnp.float32)
    g = jnp.exp(gamma) if positive else gamma      # PositiveBatchNorm uses exp(weight)
    scale = g / jnp.sqrt(var + _EPS)
    shift = beta - mean * scale
    return scale, shift


def _bss(bias, scale, shift):
    return jnp.stack([jnp.asarray(bias, jnp.float32), scale, shift], axis=0)   # (3, N)


def init_params(key, cfg):
    hd, ni = cfg["hidden_dim"], cfg["n_inputs"]
    L, nf = cfg["length"], cfg["n_features"]
    ks = iter(jax.random.split(key, 12))
    params, layout = {}, {}

    # --- encoder LSTM slab (2 layers, hidden=hd) ---
    pk = _Packer(4 * hd)
    wih, whh, b = _lstm_params(next(ks), ni, hd)
    pk.add("wih1", wih); pk.add("whh1", whh); pk.add("b1", b)
    wih, whh, b = _lstm_params(next(ks), hd, hd)
    pk.add("wih2", wih); pk.add("whh2", whh); pk.add("b2", b)
    params["enc_lstm"], layout["enc_lstm"] = pk.finish()

    # --- decoder LSTM slab (2 layers, hidden=ni) ---
    pk = _Packer(4 * ni)
    wih, whh, b = _lstm_params(next(ks), hd, ni)
    pk.add("wih1", wih); pk.add("whh1", whh); pk.add("b1", b)
    wih, whh, b = _lstm_params(next(ks), ni, ni)
    pk.add("wih2", wih); pk.add("whh2", whh); pk.add("b2", b)
    params["dec_lstm"], layout["dec_lstm"] = pk.finish()

    # --- first_layer + BN1d(hd) ---
    pk = _Packer(hd)
    w, bias = _linear_params(next(ks), hd * L, hd)
    pk.add("w", w)
    pk.add("bss", _bss(bias, *_bn_fold(hd)))
    params["first"], layout["first"] = pk.finish()

    # --- last_layer (hd -> hd*L) ---
    pk = _Packer(hd * L)
    w, bias = _linear_params(next(ks), hd, hd * L)
    pk.add("w", w)
    pk.add("b", bias.reshape(1, -1))
    params["last"], layout["last"] = pk.finish()

    # --- monotonic encoder/decoder head slab (exp(W) precomputed) ---
    pk = _Packer(max(128, hd + 1))
    w0 = _xavier_T(next(ks), hd + 1, 32)                     # first monotonic layer
    pk.add("m0_w", w0[:hd])                                  # raw weight (no exp)
    pk.add("m0_wt_exp", jnp.exp(w0[hd:]))                    # exp on time column only
    pk.add("m0_bss", _bss(jnp.zeros((32,)), *_bn_fold(32, positive=True)))
    pk.add("m1_wexp", jnp.exp(_xavier_T(next(ks), 32, 16)))
    pk.add("m1_bss", _bss(jnp.zeros((16,)), *_bn_fold(16, positive=True)))
    pk.add("m2_wexp", jnp.exp(_xavier_T(next(ks), 16, nf)))
    pk.add("m2_b", jnp.zeros((1, nf)))
    pk.add("d0_wexp", jnp.exp(_xavier_T(next(ks), nf, 16)))
    pk.add("d0_bss", _bss(jnp.zeros((16,)), *_bn_fold(16, positive=True)))
    pk.add("d1_wexp", jnp.exp(_xavier_T(next(ks), 16, 32)))
    pk.add("d1_bss", _bss(jnp.zeros((32,)), *_bn_fold(32, positive=True)))
    pk.add("d2_wexp", jnp.exp(_xavier_T(next(ks), 32, hd + 1)))
    pk.add("d2_bss", _bss(jnp.zeros((hd + 1,)), *_bn_fold(hd + 1, positive=False)))
    params["head"], layout["head"] = pk.finish()

    return params, layout


# ----------------------------------------------------------------------------
# Main
# ----------------------------------------------------------------------------
if __name__ == "__main__":
    B = 2
    cfg = dict(n_inputs=4, length=8, n_features=3, hidden_dim=32)

    key = jax.random.PRNGKey(0)
    kp, k1, k2 = jax.random.split(key, 3)
    params, layout = init_params(kp, cfg)

    ts = jax.random.normal(k1, (B, cfg["length"], cfg["n_inputs"]), jnp.float32)
    time = jax.random.uniform(k2, (B,), jnp.float32)

    fwd = jax.jit(lambda p_, ts_, t_: forward(p_, layout, cfg, ts_, t_, None))
    out = jax.block_until_ready(fwd(params, ts, time))
    x_out, rec_time, encoded, ehd, decoded = out

    assert x_out.shape == (B, cfg["length"], cfg["n_inputs"])
    assert rec_time.shape == (B,)
    assert encoded.shape == (B, cfg["n_features"])
    assert ehd.shape == (B, cfg["hidden_dim"])
    assert decoded.shape == (B, cfg["hidden_dim"])
    assert all(bool(jnp.all(jnp.isfinite(o))) for o in out)

    # Numerical sanity check against a pure-jnp reference of the same math.
    ref_out = jax.block_until_ready(_ref_forward(params, layout, cfg, ts, time))
    for got, ref in zip(out, ref_out):
        assert bool(jnp.allclose(got, ref, atol=1e-3, rtol=1e-3)), (
            f"mismatch vs reference: max|diff|={float(jnp.max(jnp.abs(got - ref)))}")

    print("KERNEL_OK")
</pallas_src>

<mosaic_0001>
module attributes {stable_mosaic.version = 11 : i64} {
  func.func @kernel(%arg0: memref<2x8x4xf32, #tpu.memory_space<vmem>>, %arg1: memref<2x1xf32, #tpu.memory_space<vmem>>, %arg2: memref<120x128xf32, #tpu.memory_space<vmem>>, %arg3: memref<72x16xf32, #tpu.memory_space<vmem>>, %arg4: memref<264x32xf32, #tpu.memory_space<vmem>>, %arg5: memref<40x256xf32, #tpu.memory_space<vmem>>, %arg6: memref<192x128xf32, #tpu.memory_space<vmem>>, %arg7: memref<2x8x4xf32, #tpu.memory_space<vmem>>, %arg8: memref<2x1xf32, #tpu.memory_space<vmem>>, %arg9: memref<2x3xf32, #tpu.memory_space<vmem>>, %arg10: memref<2x32xf32, #tpu.memory_space<vmem>>, %arg11: memref<2x32xf32, #tpu.memory_space<vmem>>) attributes {dimension_semantics = [], scalar_prefetch = 0 : i64, scratch_operands = 0 : i64, tpu.core_type = #tpu.core_type<tc>} {
    %c0 = arith.constant 0 : index
    %c0_0 = arith.constant 0 : index
    %c0_1 = arith.constant 0 : index
    %0 = vector.load %arg0[%c0, %c0_0, %c0_1] : memref<2x8x4xf32, #tpu.memory_space<vmem>>, vector<2x8x4xf32>
    %c0_2 = arith.constant 0 : index
    %c0_3 = arith.constant 0 : index
    %1 = vector.load %arg1[%c0_2, %c0_3] : memref<2x1xf32, #tpu.memory_space<vmem>>, vector<2x1xf32>
    %2 = vector.extract_strided_slice %0 {offsets = [0, 0, 0], sizes = [2, 1, 4], strides = [1, 1, 1]} : vector<2x8x4xf32> to vector<2x1x4xf32>
    %3 = vector.shape_cast %2 : vector<2x1x4xf32> to vector<2x4xf32>
    %4 = vector.extract_strided_slice %0 {offsets = [0, 1, 0], sizes = [2, 1, 4], strides = [1, 1, 1]} : vector<2x8x4xf32> to vector<2x1x4xf32>
    %5 = vector.shape_cast %4 : vector<2x1x4xf32> to vector<2x4xf32>
    %6 = vector.extract_strided_slice %0 {offsets = [0, 2, 0], sizes = [2, 1, 4], strides = [1, 1, 1]} : vector<2x8x4xf32> to vector<2x1x4xf32>
    %7 = vector.shape_cast %6 : vector<2x1x4xf32> to vector<2x4xf32>
    %8 = vector.extract_strided_slice %0 {offsets = [0, 3, 0], sizes = [2, 1, 4], strides = [1, 1, 1]} : vector<2x8x4xf32> to vector<2x1x4xf32>
    %9 = vector.shape_cast %8 : vector<2x1x4xf32> to vector<2x4xf32>
    %10 = vector.extract_strided_slice %0 {offsets = [0, 4, 0], sizes = [2, 1, 4], strides = [1, 1, 1]} : vector<2x8x4xf32> to vector<2x1x4xf32>
    %11 = vector.shape_cast %10 : vector<2x1x4xf32> to vector<2x4xf32>
    %12 = vector.extract_strided_slice %0 {offsets = [0, 5, 0], sizes = [2, 1, 4], strides = [1, 1, 1]} : vector<2x8x4xf32> to vector<2x1x4xf32>
    %13 = vector.shape_cast %12 : vector<2x1x4xf32> to vector<2x4xf32>
    %14 = vector.extract_strided_slice %0 {offsets = [0, 6, 0], sizes = [2, 1, 4], strides = [1, 1, 1]} : vector<2x8x4xf32> to vector<2x1x4xf32>
    %15 = vector.shape_cast %14 : vector<2x1x4xf32> to vector<2x4xf32>
    %16 = vector.extract_strided_slice %0 {offsets = [0, 7, 0], sizes = [2, 1, 4], strides = [1, 1, 1]} : vector<2x8x4xf32> to vector<2x1x4xf32>
    %17 = vector.shape_cast %16 : vector<2x1x4xf32> to vector<2x4xf32>
    %c0_4 = arith.constant 0 : index
    %c0_5 = arith.constant 0 : index
    %18 = vector.load %arg2[%c0_4, %c0_5] : memref<120x128xf32, #tpu.memory_space<vmem>>, vector<4x128xf32>
    %c8 = arith.constant 8 : index
    %c0_6 = arith.constant 0 : index
    %19 = vector.load %arg2[%c8, %c0_6] : memref<120x128xf32, #tpu.memory_space<vmem>>, vector<32x128xf32>
    %c40 = arith.constant 40 : index
    %c0_7 = arith.constant 0 : index
    %20 = vector.load %arg2[%c40, %c0_7] : memref<120x128xf32, #tpu.memory_space<vmem>>, vector<1x128xf32>
    %21 = tpu.concatenate %3, %5, %7, %9, %11, %13, %15, %17 in 0 : vector<2x4xf32>, vector<2x4xf32>, vector<2x4xf32>, vector<2x4xf32>, vector<2x4xf32>, vector<2x4xf32>, vector<2x4xf32>, vector<2x4xf32> -> vector<16x4xf32>
    %cst = arith.constant dense<0.000000e+00> : vector<16x128xf32>
    %22 = tpu.matmul %21, %18, %cst {dimension_numbers = #tpu.dot_dimension_numbers<[1], [0], [0], [1], [0, 0, 1, 1], [], []>} : vector<16x4xf32>, vector<4x128xf32>, vector<16x128xf32> -> vector<16x128xf32>
    %23 = vector.broadcast %20 : vector<1x128xf32> to vector<16x128xf32>
    %24 = arith.addf %22, %23 : vector<16x128xf32>
    %cst_8 = arith.constant 0.000000e+00 : f32
    %25 = vector.broadcast %cst_8 : f32 to vector<2x32xf32>
    %cst_9 = arith.constant 0.000000e+00 : f32
    %26 = vector.broadcast %cst_9 : f32 to vector<2x32xf32>
    %27 = vector.extract_strided_slice %24 {offsets = [0, 0], sizes = [2, 128], strides = [1, 1]} : vector<16x128xf32> to vector<2x128xf32>
    %cst_10 = arith.constant dense<0.000000e+00> : vector<2x128xf32>
    %28 = tpu.matmul %25, %19, %cst_10 {dimension_numbers = #tpu.dot_dimension_numbers<[1], [0], [0], [1], [0, 0, 1, 1], [], []>} : vector<2x32xf32>, vector<32x128xf32>, vector<2x128xf32> -> vector<2x128xf32>
    %29 = arith.addf %27, %28 : vector<2x128xf32>
    %30 = vector.extract_strided_slice %29 {offsets = [0, 0], sizes = [2, 32], strides = [1, 1]} : vector<2x128xf32> to vector<2x32xf32>
    %cst_11 = arith.constant 0.000000e+00 : f32
    %31 = vector.broadcast %cst_11 : f32 to vector<2x32xf32>
    %32 = arith.subf %31, %30 : vector<2x32xf32>
    %33 = math.exp %32 : vector<2x32xf32>
    %cst_12 = arith.constant 1.000000e+00 : f32
    %34 = vector.broadcast %cst_12 : f32 to vector<2x32xf32>
    %35 = arith.addf %34, %33 : vector<2x32xf32>
    %cst_13 = arith.constant 1.000000e+00 : f32
    %36 = vector.broadcast %cst_13 : f32 to vector<2x32xf32>
    %37 = arith.divf %36, %35 : vector<2x32xf32>
    %38 = vector.extract_strided_slice %29 {offsets = [0, 32], sizes = [2, 32], strides = [1, 1]} : vector<2x128xf32> to vector<2x32xf32>
    %cst_14 = arith.constant 0.000000e+00 : f32
    %39 = vector.broadcast %cst_14 : f32 to vector<2x32xf32>
    %40 = arith.subf %39, %38 : vector<2x32xf32>
    %41 = math.exp %40 : vector<2x32xf32>
    %cst_15 = arith.constant 1.000000e+00 : f32
    %42 = vector.broadcast %cst_15 : f32 to vector<2x32xf32>
    %43 = arith.addf %42, %41 : vector<2x32xf32>
    %cst_16 = arith.constant 1.000000e+00 : f32
    %44 = vector.broadcast %cst_16 : f32 to vector<2x32xf32>
    %45 = arith.divf %44, %43 : vector<2x32xf32>
    %46 = vector.extract_strided_slice %29 {offsets = [0, 64], sizes = [2, 32], strides = [1, 1]} : vector<2x128xf32> to vector<2x32xf32>
    %47 = math.tanh %46 : vector<2x32xf32>
    %48 = vector.extract_strided_slice %29 {offsets = [0, 96], sizes = [2, 32], strides = [1, 1]} : vector<2x128xf32> to vector<2x32xf32>
    %cst_17 = arith.constant 0.000000e+00 : f32
    %49 = vector.broadcast %cst_17 : f32 to vector<2x32xf32>
    %50 = arith.subf %49, %48 : vector<2x32xf32>
    %51 = math.exp %50 : vector<2x32xf32>
    %cst_18 = arith.constant 1.000000e+00 : f32
    %52 = vector.broadcast %cst_18 : f32 to vector<2x32xf32>
    %53 = arith.addf %52, %51 : vector<2x32xf32>
    %cst_19 = arith.constant 1.000000e+00 : f32
    %54 = vector.broadcast %cst_19 : f32 to vector<2x32xf32>
    %55 = arith.divf %54, %53 : vector<2x32xf32>
    %56 = arith.mulf %45, %26 : vector<2x32xf32>
    %57 = arith.mulf %37, %47 : vector<2x32xf32>
    %58 = arith.addf %56, %57 : vector<2x32xf32>
    %59 = math.tanh %58 : vector<2x32xf32>
    %60 = arith.mulf %55, %59 : vector<2x32xf32>
    %61 = vector.extract_strided_slice %24 {offsets = [2, 0], sizes = [2, 128], strides = [1, 1]} : vector<16x128xf32> to vector<2x128xf32>
    %cst_20 = arith.constant dense<0.000000e+00> : vector<2x128xf32>
    %62 = tpu.matmul %60, %19, %cst_20 {dimension_numbers = #tpu.dot_dimension_numbers<[1], [0], [0], [1], [0, 0, 1, 1], [], []>} : vector<2x32xf32>, vector<32x128xf32>, vector<2x128xf32> -> vector<2x128xf32>
    %63 = arith.addf %61, %62 : vector<2x128xf32>
    %64 = vector.extract_strided_slice %63 {offsets = [0, 0], sizes = [2, 32], strides = [1, 1]} : vector<2x128xf32> to vector<2x32xf32>
    %cst_21 = arith.constant 0.000000e+00 : f32
    %65 = vector.broadcast %cst_21 : f32 to vector<2x32xf32>
    %66 = arith.subf %65, %64 : vector<2x32xf32>
    %67 = math.exp %66 : vector<2x32xf32>
    %cst_22 = arith.constant 1.000000e+00 : f32
    %68 = vector.broadcast %cst_22 : f32 to vector<2x32xf32>
    %69 = arith.addf %68, %67 : vector<2x32xf32>
    %cst_23 = arith.constant 1.000000e+00 : f32
    %70 = vector.broadcast %cst_23 : f32 to vector<2x32xf32>
    %71 = arith.divf %70, %69 : vector<2x32xf32>
    %72 = vector.extract_strided_slice %63 {offsets = [0, 32], sizes = [2, 32], strides = [1, 1]} : vector<2x128xf32> to vector<2x32xf32>
    %cst_24 = arith.constant 0.000000e+00 : f32
    %73 = vector.broadcast %cst_24 : f32 to vector<2x32xf32>
    %74 = arith.subf %73, %72 : vector<2x32xf32>
    %75 = math.exp %74 : vector<2x32xf32>
    %cst_25 = arith.constant 1.000000e+00 : f32
    %76 = vector.broadcast %cst_25 : f32 to vector<2x32xf32>
    %77 = arith.addf %76, %75 : vector<2x32xf32>
    %cst_26 = arith.constant 1.000000e+00 : f32
    %78 = vector.broadcast %cst_26 : f32 to vector<2x32xf32>
    %79 = arith.divf %78, %77 : vector<2x32xf32>
    %80 = vector.extract_strided_slice %63 {offsets = [0, 64], sizes = [2, 32], strides = [1, 1]} : vector<2x128xf32> to vector<2x32xf32>
    %81 = math.tanh %80 : vector<2x32xf32>
    %82 = vector.extract_strided_slice %63 {offsets = [0, 96], sizes = [2, 32], strides = [1, 1]} : vector<2x128xf32> to vector<2x32xf32>
    %cst_27 = arith.constant 0.000000e+00 : f32
    %83 = vector.broadcast %cst_27 : f32 to vector<2x32xf32>
    %84 = arith.subf %83, %82 : vector<2x32xf32>
    %85 = math.exp %84 : vector<2x32xf32>
    %cst_28 = arith.constant 1.000000e+00 : f32
    %86 = vector.broadcast %cst_28 : f32 to vector<2x32xf32>
    %87 = arith.addf %86, %85 : vector<2x32xf32>
    %cst_29 = arith.constant 1.000000e+00 : f32
    %88 = vector.broadcast %cst_29 : f32 to vector<2x32xf32>
    %89 = arith.divf %88, %87 : vector<2x32xf32>
    %90 = arith.mulf %79, %58 : vector<2x32xf32>
    %91 = arith.mulf %71, %81 : vector<2x32xf32>
    %92 = arith.addf %90, %91 : vector<2x32xf32>
    %93 = math.tanh %92 : vector<2x32xf32>
    %94 = arith.mulf %89, %93 : vector<2x32xf32>
    %95 = vector.extract_strided_slice %24 {offsets = [4, 0], sizes = [2, 128], strides = [1, 1]} : vector<16x128xf32> to vector<2x128xf32>
    %cst_30 = arith.constant dense<0.000000e+00> : vector<2x128xf32>
    %96 = tpu.matmul %94, %19, %cst_30 {dimension_numbers = #tpu.dot_dimension_numbers<[1], [0], [0], [1], [0, 0, 1, 1], [], []>} : vector<2x32xf32>, vector<32x128xf32>, vector<2x128xf32> -> vector<2x128xf32>
    %97 = arith.addf %95, %96 : vector<2x128xf32>
    %98 = vector.extract_strided_slice %97 {offsets = [0, 0], sizes = [2, 32], strides = [1, 1]} : vector<2x128xf32> to vector<2x32xf32>
    %cst_31 = arith.constant 0.000000e+00 : f32
    %99 = vector.broadcast %cst_31 : f32 to vector<2x32xf32>
    %100 = arith.subf %99, %98 : vector<2x32xf32>
    %101 = math.exp %100 : vector<2x32xf32>
    %cst_32 = arith.constant 1.000000e+00 : f32
    %102 = vector.broadcast %cst_32 : f32 to vector<2x32xf32>
    %103 = arith.addf %102, %101 : vector<2x32xf32>
    %cst_33 = arith.constant 1.000000e+00 : f32
    %104 = vector.broadcast %cst_33 : f32 to vector<2x32xf32>
    %105 = arith.divf %104, %103 : vector<2x32xf32>
    %106 = vector.extract_strided_slice %97 {offsets = [0, 32], sizes = [2, 32], strides = [1, 1]} : vector<2x128xf32> to vector<2x32xf32>
    %cst_34 = arith.constant 0.000000e+00 : f32
    %107 = vector.broadcast %cst_34 : f32 to vector<2x32xf32>
    %108 = arith.subf %107, %106 : vector<2x32xf32>
    %109 = math.exp %108 : vector<2x32xf32>
    %cst_35 = arith.constant 1.000000e+00 : f32
    %110 = vector.broadcast %cst_35 : f32 to vector<2x32xf32>
    %111 = arith.addf %110, %109 : vector<2x32xf32>
    %cst_36 = arith.constant 1.000000e+00 : f32
    %112 = vector.broadcast %cst_36 : f32 to vector<2x32xf32>
    %113 = arith.divf %112, %111 : vector<2x32xf32>
    %114 = vector.extract_strided_slice %97 {offsets = [0, 64], sizes = [2, 32], strides = [1, 1]} : vector<2x128xf32> to vector<2x32xf32>
    %115 = math.tanh %114 : vector<2x32xf32>
    %116 = vector.extract_strided_slice %97 {offsets = [0, 96], sizes = [2, 32], strides = [1, 1]} : vector<2x128xf32> to vector<2x32xf32>
    %cst_37 = arith.constant 0.000000e+00 : f32
    %117 = vector.broadcast %cst_37 : f32 to vector<2x32xf32>
    %118 = arith.subf %117, %116 : vector<2x32xf32>
    %119 = math.exp %118 : vector<2x32xf32>
    %cst_38 = arith.constant 1.000000e+00 : f32
    %120 = vector.broadcast %cst_38 : f32 to vector<2x32xf32>
    %121 = arith.addf %120, %119 : vector<2x32xf32>
    %cst_39 = arith.constant 1.000000e+00 : f32
    %122 = vector.broadcast %cst_39 : f32 to vector<2x32xf32>
    %123 = arith.divf %122, %121 : vector<2x32xf32>
    %124 = arith.mulf %113, %92 : vector<2x32xf32>
    %125 = arith.mulf %105, %115 : vector<2x32xf32>
    %126 = arith.addf %124, %125 : vector<2x32xf32>
    %127 = math.tanh %126 : vector<2x32xf32>
    %128 = arith.mulf %123, %127 : vector<2x32xf32>
    %129 = vector.extract_strided_slice %24 {offsets = [6, 0], sizes = [2, 128], strides = [1, 1]} : vector<16x128xf32> to vector<2x128xf32>
    %cst_40 = arith.constant dense<0.000000e+00> : vector<2x128xf32>
    %130 = tpu.matmul %128, %19, %cst_40 {dimension_numbers = #tpu.dot_dimension_numbers<[1], [0], [0], [1], [0, 0, 1, 1], [], []>} : vector<2x32xf32>, vector<32x128xf32>, vector<2x128xf32> -> vector<2x128xf32>
    %131 = arith.addf %129, %130 : vector<2x128xf32>
    %132 = vector.extract_strided_slice %131 {offsets = [0, 0], sizes = [2, 32], strides = [1, 1]} : vector<2x128xf32> to vector<2x32xf32>
    %cst_41 = arith.constant 0.000000e+00 : f32
    %133 = vector.broadcast %cst_41 : f32 to vector<2x32xf32>
    %134 = arith.subf %133, %132 : vector<2x32xf32>
    %135 = math.exp %134 : vector<2x32xf32>
    %cst_42 = arith.constant 1.000000e+00 : f32
    %136 = vector.broadcast %cst_42 : f32 to vector<2x32xf32>
    %137 = arith.addf %136, %135 : vector<2x32xf32>
    %cst_43 = arith.constant 1.000000e+00 : f32
    %138 = vector.broadcast %cst_43 : f32 to vector<2x32xf32>
    %139 = arith.divf %138, %137 : vector<2x32xf32>
    %140 = vector.extract_strided_slice %131 {offsets = [0, 32], sizes = [2, 32], strides = [1, 1]} : vector<2x128xf32> to vector<2x32xf32>
    %cst_44 = arith.constant 0.000000e+00 : f32
    %141 = vector.broadcast %cst_44 : f32 to vector<2x32xf32>
    %142 = arith.subf %141, %140 : vector<2x32xf32>
    %143 = math.exp %142 : vector<2x32xf32>
    %cst_45 = arith.constant 1.000000e+00 : f32
    %144 = vector.broadcast %cst_45 : f32 to vector<2x32xf32>
    %145 = arith.addf %144, %143 : vector<2x32xf32>
    %cst_46 = arith.constant 1.000000e+00 : f32
    %146 = vector.broadcast %cst_46 : f32 to vector<2x32xf32>
    %147 = arith.divf %146, %145 : vector<2x32xf32>
    %148 = vector.extract_strided_slice %131 {offsets = [0, 64], sizes = [2, 32], strides = [1, 1]} : vector<2x128xf32> to vector<2x32xf32>
    %149 = math.tanh %148 : vector<2x32xf32>
    %150 = vector.extract_strided_slice %131 {offsets = [0, 96], sizes = [2, 32], strides = [1, 1]} : vector<2x128xf32> to vector<2x32xf32>
    %cst_47 = arith.constant 0.000000e+00 : f32
    %151 = vector.broadcast %cst_47 : f32 to vector<2x32xf32>
    %152 = arith.subf %151, %150 : vector<2x32xf32>
    %153 = math.exp %152 : vector<2x32xf32>
    %cst_48 = arith.constant 1.000000e+00 : f32
    %154 = vector.broadcast %cst_48 : f32 to vector<2x32xf32>
    %155 = arith.addf %154, %153 : vector<2x32xf32>
    %cst_49 = arith.constant 1.000000e+00 : f32
    %156 = vector.broadcast %cst_49 : f32 to vector<2x32xf32>
    %157 = arith.divf %156, %155 : vector<2x32xf32>
    %158 = arith.mulf %147, %126 : vector<2x32xf32>
    %159 = arith.mulf %139, %149 : vector<2x32xf32>
    %160 = arith.addf %158, %159 : vector<2x32xf32>
    %161 = math.tanh %160 : vector<2x32xf32>
    %162 = arith.mulf %157, %161 : vector<2x32xf32>
    %163 = vector.extract_strided_slice %24 {offsets = [8, 0], sizes = [2, 128], strides = [1, 1]} : vector<16x128xf32> to vector<2x128xf32>
    %cst_50 = arith.constant dense<0.000000e+00> : vector<2x128xf32>
    %164 = tpu.matmul %162, %19, %cst_50 {dimension_numbers = #tpu.dot_dimension_numbers<[1], [0], [0], [1], [0, 0, 1, 1], [], []>} : vector<2x32xf32>, vector<32x128xf32>, vector<2x128xf32> -> vector<2x128xf32>
    %165 = arith.addf %163, %164 : vector<2x128xf32>
    %166 = vector.extract_strided_slice %165 {offsets = [0, 0], sizes = [2, 32], strides = [1, 1]} : vector<2x128xf32> to vector<2x32xf32>
    %cst_51 = arith.constant 0.000000e+00 : f32
    %167 = vector.broadcast %cst_51 : f32 to vector<2x32xf32>
    %168 = arith.subf %167, %166 : vector<2x32xf32>
    %169 = math.exp %168 : vector<2x32xf32>
    %cst_52 = arith.constant 1.000000e+00 : f32
    %170 = vector.broadcast %cst_52 : f32 to vector<2x32xf32>
    %171 = arith.addf %170, %169 : vector<2x32xf32>
    %cst_53 = arith.constant 1.000000e+00 : f32
    %172 = vector.broadcast %cst_53 : f32 to vector<2x32xf32>
    %173 = arith.divf %172, %171 : vector<2x32xf32>
    %174 = vector.extract_strided_slice %165 {offsets = [0, 32], sizes = [2, 32], strides = [1, 1]} : vector<2x128xf32> to vector<2x32xf32>
    %cst_54 = arith.constant 0.000000e+00 : f32
    %175 = vector.broadcast %cst_54 : f32 to vector<2x32xf32>
    %176 = arith.subf %175, %174 : vector<2x32xf32>
    %177 = math.exp %176 : vector<2x32xf32>
    %cst_55 = arith.constant 1.000000e+00 : f32
    %178 = vector.broadcast %cst_55 : f32 to vector<2x32xf32>
    %179 = arith.addf %178, %177 : vector<2x32xf32>
    %cst_56 = arith.constant 1.000000e+00 : f32
    %180 = vector.broadcast %cst_56 : f32 to vector<2x32xf32>
    %181 = arith.divf %180, %179 : vector<2x32xf32>
    %182 = vector.extract_strided_slice %165 {offsets = [0, 64], sizes = [2, 32], strides = [1, 1]} : vector<2x128xf32> to vector<2x32xf32>
    %183 = math.tanh %182 : vector<2x32xf32>
    %184 = vector.extract_strided_slice %165 {offsets = [0, 96], sizes = [2, 32], strides = [1, 1]} : vector<2x128xf32> to vector<2x32xf32>
    %cst_57 = arith.constant 0.000000e+00 : f32
    %185 = vector.broadcast %cst_57 : f32 to vector<2x32xf32>
    %186 = arith.subf %185, %184 : vector<2x32xf32>
    %187 = math.exp %186 : vector<2x32xf32>
    %cst_58 = arith.constant 1.000000e+00 : f32
    %188 = vector.broadcast %cst_58 : f32 to vector<2x32xf32>
    %189 = arith.addf %188, %187 : vector<2x32xf32>
    %cst_59 = arith.constant 1.000000e+00 : f32
    %190 = vector.broadcast %cst_59 : f32 to vector<2x32xf32>
    %191 = arith.divf %190, %189 : vector<2x32xf32>
    %192 = arith.mulf %181, %160 : vector<2x32xf32>
    %193 = arith.mulf %173, %183 : vector<2x32xf32>
    %194 = arith.addf %192, %193 : vector<2x32xf32>
    %195 = math.tanh %194 : vector<2x32xf32>
    %196 = arith.mulf %191, %195 : vector<2x32xf32>
    %197 = vector.extract_strided_slice %24 {offsets = [10, 0], sizes = [2, 128], strides = [1, 1]} : vector<16x128xf32> to vector<2x128xf32>
    %cst_60 = arith.constant dense<0.000000e+00> : vector<2x128xf32>
    %198 = tpu.matmul %196, %19, %cst_60 {dimension_numbers = #tpu.dot_dimension_numbers<[1], [0], [0], [1], [0, 0, 1, 1], [], []>} : vector<2x32xf32>, vector<32x128xf32>, vector<2x128xf32> -> vector<2x128xf32>
    %199 = arith.addf %197, %198 : vector<2x128xf32>
    %200 = vector.extract_strided_slice %199 {offsets = [0, 0], sizes = [2, 32], strides = [1, 1]} : vector<2x128xf32> to vector<2x32xf32>
    %cst_61 = arith.constant 0.000000e+00 : f32
    %201 = vector.broadcast %cst_61 : f32 to vector<2x32xf32>
    %202 = arith.subf %201, %200 : vector<2x32xf32>
    %203 = math.exp %202 : vector<2x32xf32>
    %cst_62 = arith.constant 1.000000e+00 : f32
    %204 = vector.broadcast %cst_62 : f32 to vector<2x32xf32>
    %205 = arith.addf %204, %203 : vector<2x32xf32>
    %cst_63 = arith.constant 1.000000e+00 : f32
    %206 = vector.broadcast %cst_63 : f32 to vector<2x32xf32>
    %207 = arith.divf %206, %205 : vector<2x32xf32>
    %208 = vector.extract_strided_slice %199 {offsets = [0, 32], sizes = [2, 32], strides = [1, 1]} : vector<2x128xf32> to vector<2x32xf32>
    %cst_64 = arith.constant 0.000000e+00 : f32
    %209 = vector.broadcast %cst_64 : f32 to vector<2x32xf32>
    %210 = arith.subf %209, %208 : vector<2x32xf32>
    %211 = math.exp %210 : vector<2x32xf32>
    %cst_65 = arith.constant 1.000000e+00 : f32
    %212 = vector.broadcast %cst_65 : f32 to vector<2x32xf32>
    %213 = arith.addf %212, %211 : vector<2x32xf32>
    %cst_66 = arith.constant 1.000000e+00 : f32
    %214 = vector.broadcast %cst_66 : f32 to vector<2x32xf32>
    %215 = arith.divf %214, %213 : vector<2x32xf32>
    %216 = vector.extract_strided_slice %199 {offsets = [0, 64], sizes = [2, 32], strides = [1, 1]} : vector<2x128xf32> to vector<2x32xf32>
    %217 = math.tanh %216 : vector<2x32xf32>
    %218 = vector.extract_strided_slice %199 {offsets = [0, 96], sizes = [2, 32], strides = [1, 1]} : vector<2x128xf32> to vector<2x32xf32>
    %cst_67 = arith.constant 0.000000e+00 : f32
    %219 = vector.broadcast %cst_67 : f32 to vector<2x32xf32>
    %220 = arith.subf %219, %218 : vector<2x32xf32>
    %221 = math.exp %220 : vector<2x32xf32>
    %cst_68 = arith.constant 1.000000e+00 : f32
    %222 = vector.broadcast %cst_68 : f32 to vector<2x32xf32>
    %223 = arith.addf %222, %221 : vector<2x32xf32>
    %cst_69 = arith.constant 1.000000e+00 : f32
    %224 = vector.broadcast %cst_69 : f32 to vector<2x32xf32>
    %225 = arith.divf %224, %223 : vector<2x32xf32>
    %226 = arith.mulf %215, %194 : vector<2x32xf32>
    %227 = arith.mulf %207, %217 : vector<2x32xf32>
    %228 = arith.addf %226, %227 : vector<2x32xf32>
    %229 = math.tanh %228 : vector<2x32xf32>
    %230 = arith.mulf %225, %229 : vector<2x32xf32>
    %231 = vector.extract_strided_slice %24 {offsets = [12, 0], sizes = [2, 128], strides = [1, 1]} : vector<16x128xf32> to vector<2x128xf32>
    %cst_70 = arith.constant dense<0.000000e+00> : vector<2x128xf32>
    %232 = tpu.matmul %230, %19, %cst_70 {dimension_numbers = #tpu.dot_dimension_numbers<[1], [0], [0], [1], [0, 0, 1, 1], [], []>} : vector<2x32xf32>, vector<32x128xf32>, vector<2x128xf32> -> vector<2x128xf32>
    %233 = arith.addf %231, %232 : vector<2x128xf32>
    %234 = vector.extract_strided_slice %233 {offsets = [0, 0], sizes = [2, 32], strides = [1, 1]} : vector<2x128xf32> to vector<2x32xf32>
    %cst_71 = arith.constant 0.000000e+00 : f32
    %235 = vector.broadcast %cst_71 : f32 to vector<2x32xf32>
    %236 = arith.subf %235, %234 : vector<2x32xf32>
    %237 = math.exp %236 : vector<2x32xf32>
    %cst_72 = arith.constant 1.000000e+00 : f32
    %238 = vector.broadcast %cst_72 : f32 to vector<2x32xf32>
    %239 = arith.addf %238, %237 : vector<2x32xf32>
    %cst_73 = arith.constant 1.000000e+00 : f32
    %240 = vector.broadcast %cst_73 : f32 to vector<2x32xf32>
    %241 = arith.divf %240, %239 : vector<2x32xf32>
    %242 = vector.extract_strided_slice %233 {offsets = [0, 32], sizes = [2, 32], strides = [1, 1]} : vector<2x128xf32> to vector<2x32xf32>
    %cst_74 = arith.constant 0.000000e+00 : f32
    %243 = vector.broadcast %cst_74 : f32 to vector<2x32xf32>
    %244 = arith.subf %243, %242 : vector<2x32xf32>
    %245 = math.exp %244 : vector<2x32xf32>
    %cst_75 = arith.constant 1.000000e+00 : f32
    %246 = vector.broadcast %cst_75 : f32 to vector<2x32xf32>
    %247 = arith.addf %246, %245 : vector<2x32xf32>
    %cst_76 = arith.constant 1.000000e+00 : f32
    %248 = vector.broadcast %cst_76 : f32 to vector<2x32xf32>
    %249 = arith.divf %248, %247 : vector<2x32xf32>
    %250 = vector.extract_strided_slice %233 {offsets = [0, 64], sizes = [2, 32], strides = [1, 1]} : vector<2x128xf32> to vector<2x32xf32>
    %251 = math.tanh %250 : vector<2x32xf32>
    %252 = vector.extract_strided_slice %233 {offsets = [0, 96], sizes = [2, 32], strides = [1, 1]} : vector<2x128xf32> to vector<2x32xf32>
    %cst_77 = arith.constant 0.000000e+00 : f32
    %253 = vector.broadcast %cst_77 : f32 to vector<2x32xf32>
    %254 = arith.subf %253, %252 : vector<2x32xf32>
    %255 = math.exp %254 : vector<2x32xf32>
    %cst_78 = arith.constant 1.000000e+00 : f32
    %256 = vector.broadcast %cst_78 : f32 to vector<2x32xf32>
    %257 = arith.addf %256, %255 : vector<2x32xf32>
    %cst_79 = arith.constant 1.000000e+00 : f32
    %258 = vector.broadcast %cst_79 : f32 to vector<2x32xf32>
    %259 = arith.divf %258, %257 : vector<2x32xf32>
    %260 = arith.mulf %249, %228 : vector<2x32xf32>
    %261 = arith.mulf %241, %251 : vector<2x32xf32>
    %262 = arith.addf %260, %261 : vector<2x32xf32>
    %263 = math.tanh %262 : vector<2x32xf32>
    %264 = arith.mulf %259, %263 : vector<2x32xf32>
    %265 = vector.extract_strided_slice %24 {offsets = [14, 0], sizes = [2, 128], strides = [1, 1]} : vector<16x128xf32> to vector<2x128xf32>
    %cst_80 = arith.constant dense<0.000000e+00> : vector<2x128xf32>
    %266 = tpu.matmul %264, %19, %cst_80 {dimension_numbers = #tpu.dot_dimension_numbers<[1], [0], [0], [1], [0, 0, 1, 1], [], []>} : vector<2x32xf32>, vector<32x128xf32>, vector<2x128xf32> -> vector<2x128xf32>
    %267 = arith.addf %265, %266 : vector<2x128xf32>
    %268 = vector.extract_strided_slice %267 {offsets = [0, 0], sizes = [2, 32], strides = [1, 1]} : vector<2x128xf32> to vector<2x32xf32>
    %cst_81 = arith.constant 0.000000e+00 : f32
    %269 = vector.broadcast %cst_81 : f32 to vector<2x32xf32>
    %270 = arith.subf %269, %268 : vector<2x32xf32>
    %271 = math.exp %270 : vector<2x32xf32>
    %cst_82 = arith.constant 1.000000e+00 : f32
    %272 = vector.broadcast %cst_82 : f32 to vector<2x32xf32>
    %273 = arith.addf %272, %271 : vector<2x32xf32>
    %cst_83 = arith.constant 1.000000e+00 : f32
    %274 = vector.broadcast %cst_83 : f32 to vector<2x32xf32>
    %275 = arith.divf %274, %273 : vector<2x32xf32>
    %276 = vector.extract_strided_slice %267 {offsets = [0, 32], sizes = [2, 32], strides = [1, 1]} : vector<2x128xf32> to vector<2x32xf32>
    %cst_84 = arith.constant 0.000000e+00 : f32
    %277 = vector.broadcast %cst_84 : f32 to vector<2x32xf32>
    %278 = arith.subf %277, %276 : vector<2x32xf32>
    %279 = math.exp %278 : vector<2x32xf32>
    %cst_85 = arith.constant 1.000000e+00 : f32
    %280 = vector.broadcast %cst_85 : f32 to vector<2x32xf32>
    %281 = arith.addf %280, %279 : vector<2x32xf32>
    %cst_86 = arith.constant 1.000000e+00 : f32
    %282 = vector.broadcast %cst_86 : f32 to vector<2x32xf32>
    %283 = arith.divf %282, %281 : vector<2x32xf32>
    %284 = vector.extract_strided_slice %267 {offsets = [0, 64], sizes = [2, 32], strides = [1, 1]} : vector<2x128xf32> to vector<2x32xf32>
    %285 = math.tanh %284 : vector<2x32xf32>
    %286 = vector.extract_strided_slice %267 {offsets = [0, 96], sizes = [2, 32], strides = [1, 1]} : vector<2x128xf32> to vector<2x32xf32>
    %cst_87 = arith.constant 0.000000e+00 : f32
    %287 = vector.broadcast %cst_87 : f32 to vector<2x32xf32>
    %288 = arith.subf %287, %286 : vector<2x32xf32>
    %289 = math.exp %288 : vector<2x32xf32>
    %cst_88 = arith.constant 1.000000e+00 : f32
    %290 = vector.broadcast %cst_88 : f32 to vector<2x32xf32>
    %291 = arith.addf %290, %289 : vector<2x32xf32>
    %cst_89 = arith.constant 1.000000e+00 : f32
    %292 = vector.broadcast %cst_89 : f32 to vector<2x32xf32>
    %293 = arith.divf %292, %291 : vector<2x32xf32>
    %294 = arith.mulf %283, %262 : vector<2x32xf32>
    %295 = arith.mulf %275, %285 : vector<2x32xf32>
    %296 = arith.addf %294, %295 : vector<2x32xf32>
    %297 = math.tanh %296 : vector<2x32xf32>
    %298 = arith.mulf %293, %297 : vector<2x32xf32>
    %c48 = arith.constant 48 : index
    %c0_90 = arith.constant 0 : index
    %299 = vector.load %arg2[%c48, %c0_90] : memref<120x128xf32, #tpu.memory_space<vmem>>, vector<32x128xf32>
    %c80 = arith.constant 80 : index
    %c0_91 = arith.constant 0 : index
    %300 = vector.load %arg2[%c80, %c0_91] : memref<120x128xf32, #tpu.memory_space<vmem>>, vector<32x128xf32>
    %c112 = arith.constant 112 : index
    %c0_92 = arith.constant 0 : index
    %301 = vector.load %arg2[%c112, %c0_92] : memref<120x128xf32, #tpu.memory_space<vmem>>, vector<1x128xf32>
    %302 = tpu.concatenate %60, %94, %128, %162, %196, %230, %264, %298 in 0 : vector<2x32xf32>, vector<2x32xf32>, vector<2x32xf32>, vector<2x32xf32>, vector<2x32xf32>, vector<2x32xf32>, vector<2x32xf32>, vector<2x32xf32> -> vector<16x32xf32>
    %cst_93 = arith.constant dense<0.000000e+00> : vector<16x128xf32>
    %303 = tpu.matmul %302, %299, %cst_93 {dimension_numbers = #tpu.dot_dimension_numbers<[1], [0], [0], [1], [0, 0, 1, 1], [], []>} : vector<16x32xf32>, vector<32x128xf32>, vector<16x128xf32> -> vector<16x128xf32>
    %304 = vector.broadcast %301 : vector<1x128xf32> to vector<16x128xf32>
    %305 = arith.addf %303, %304 : vector<16x128xf32>
    %cst_94 = arith.constant 0.000000e+00 : f32
    %306 = vector.broadcast %cst_94 : f32 to vector<2x32xf32>
    %cst_95 = arith.constant 0.000000e+00 : f32
    %307 = vector.broadcast %cst_95 : f32 to vector<2x32xf32>
    %308 = vector.extract_strided_slice %305 {offsets = [0, 0], sizes = [2, 128], strides = [1, 1]} : vector<16x128xf32> to vector<2x128xf32>
    %cst_96 = arith.constant dense<0.000000e+00> : vector<2x128xf32>
    %309 = tpu.matmul %306, %300, %cst_96 {dimension_numbers = #tpu.dot_dimension_numbers<[1], [0], [0], [1], [0, 0, 1, 1], [], []>} : vector<2x32xf32>, vector<32x128xf32>, vector<2x128xf32> -> vector<2x128xf32>
    %310 = arith.addf %308, %309 : vector<2x128xf32>
    %311 = vector.extract_strided_slice %310 {offsets = [0, 0], sizes = [2, 32], strides = [1, 1]} : vector<2x128xf32> to vector<2x32xf32>
    %cst_97 = arith.constant 0.000000e+00 : f32
    %312 = vector.broadcast %cst_97 : f32 to vector<2x32xf32>
    %313 = arith.subf %312, %311 : vector<2x32xf32>
    %314 = math.exp %313 : vector<2x32xf32>
    %cst_98 = arith.constant 1.000000e+00 : f32
    %315 = vector.broadcast %cst_98 : f32 to vector<2x32xf32>
    %316 = arith.addf %315, %314 : vector<2x32xf32>
    %cst_99 = arith.constant 1.000000e+00 : f32
    %317 = vector.broadcast %cst_99 : f32 to vector<2x32xf32>
    %318 = arith.divf %317, %316 : vector<2x32xf32>
    %319 = vector.extract_strided_slice %310 {offsets = [0, 32], sizes = [2, 32], strides = [1, 1]} : vector<2x128xf32> to vector<2x32xf32>
    %cst_100 = arith.constant 0.000000e+00 : f32
    %320 = vector.broadcast %cst_100 : f32 to vector<2x32xf32>
    %321 = arith.subf %320, %319 : vector<2x32xf32>
    %322 = math.exp %321 : vector<2x32xf32>
    %cst_101 = arith.constant 1.000000e+00 : f32
    %323 = vector.broadcast %cst_101 : f32 to vector<2x32xf32>
    %324 = arith.addf %323, %322 : vector<2x32xf32>
    %cst_102 = arith.constant 1.000000e+00 : f32
    %325 = vector.broadcast %cst_102 : f32 to vector<2x32xf32>
    %326 = arith.divf %325, %324 : vector<2x32xf32>
    %327 = vector.extract_strided_slice %310 {offsets = [0, 64], sizes = [2, 32], strides = [1, 1]} : vector<2x128xf32> to vector<2x32xf32>
    %328 = math.tanh %327 : vector<2x32xf32>
    %329 = vector.extract_strided_slice %310 {offsets = [0, 96], sizes = [2, 32], strides = [1, 1]} : vector<2x128xf32> to vector<2x32xf32>
    %cst_103 = arith.constant 0.000000e+00 : f32
    %330 = vector.broadcast %cst_103 : f32 to vector<2x32xf32>
    %331 = arith.subf %330, %329 : vector<2x32xf32>
    %332 = math.exp %331 : vector<2x32xf32>
    %cst_104 = arith.constant 1.000000e+00 : f32
    %333 = vector.broadcast %cst_104 : f32 to vector<2x32xf32>
    %334 = arith.addf %333, %332 : vector<2x32xf32>
    %cst_105 = arith.constant 1.000000e+00 : f32
    %335 = vector.broadcast %cst_105 : f32 to vector<2x32xf32>
    %336 = arith.divf %335, %334 : vector<2x32xf32>
    %337 = arith.mulf %326, %307 : vector<2x32xf32>
    %338 = arith.mulf %318, %328 : vector<2x32xf32>
    %339 = arith.addf %337, %338 : vector<2x32xf32>
    %340 = math.tanh %339 : vector<2x32xf32>
    %341 = arith.mulf %336, %340 : vector<2x32xf32>
    %342 = vector.extract_strided_slice %305 {offsets = [2, 0], sizes = [2, 128], strides = [1, 1]} : vector<16x128xf32> to vector<2x128xf32>
    %cst_106 = arith.constant dense<0.000000e+00> : vector<2x128xf32>
    %343 = tpu.matmul %341, %300, %cst_106 {dimension_numbers = #tpu.dot_dimension_numbers<[1], [0], [0], [1], [0, 0, 1, 1], [], []>} : vector<2x32xf32>, vector<32x128xf32>, vector<2x128xf32> -> vector<2x128xf32>
    %344 = arith.addf %342, %343 : vector<2x128xf32>
    %345 = vector.extract_strided_slice %344 {offsets = [0, 0], sizes = [2, 32], strides = [1, 1]} : vector<2x128xf32> to vector<2x32xf32>
    %cst_107 = arith.constant 0.000000e+00 : f32
    %346 = vector.broadcast %cst_107 : f32 to vector<2x32xf32>
    %347 = arith.subf %346, %345 : vector<2x32xf32>
    %348 = math.exp %347 : vector<2x32xf32>
    %cst_108 = arith.constant 1.000000e+00 : f32
    %349 = vector.broadcast %cst_108 : f32 to vector<2x32xf32>
    %350 = arith.addf %349, %348 : vector<2x32xf32>
    %cst_109 = arith.constant 1.000000e+00 : f32
    %351 = vector.broadcast %cst_109 : f32 to vector<2x32xf32>
    %352 = arith.divf %351, %350 : vector<2x32xf32>
    %353 = vector.extract_strided_slice %344 {offsets = [0, 32], sizes = [2, 32], strides = [1, 1]} : vector<2x128xf32> to vector<2x32xf32>
    %cst_110 = arith.constant 0.000000e+00 : f32
    %354 = vector.broadcast %cst_110 : f32 to vector<2x32xf32>
    %355 = arith.subf %354, %353 : vector<2x32xf32>
    %356 = math.exp %355 : vector<2x32xf32>
    %cst_111 = arith.constant 1.000000e+00 : f32
    %357 = vector.broadcast %cst_111 : f32 to vector<2x32xf32>
    %358 = arith.addf %357, %356 : vector<2x32xf32>
    %cst_112 = arith.constant 1.000000e+00 : f32
    %359 = vector.broadcast %cst_112 : f32 to vector<2x32xf32>
    %360 = arith.divf %359, %358 : vector<2x32xf32>
    %361 = vector.extract_strided_slice %344 {offsets = [0, 64], sizes = [2, 32], strides = [1, 1]} : vector<2x128xf32> to vector<2x32xf32>
    %362 = math.tanh %361 : vector<2x32xf32>
    %363 = vector.extract_strided_slice %344 {offsets = [0, 96], sizes = [2, 32], strides = [1, 1]} : vector<2x128xf32> to vector<2x32xf32>
    %cst_113 = arith.constant 0.000000e+00 : f32
    %364 = vector.broadcast %cst_113 : f32 to vector<2x32xf32>
    %365 = arith.subf %364, %363 : vector<2x32xf32>
    %366 = math.exp %365 : vector<2x32xf32>
    %cst_114 = arith.constant 1.000000e+00 : f32
    %367 = vector.broadcast %cst_114 : f32 to vector<2x32xf32>
    %368 = arith.addf %367, %366 : vector<2x32xf32>
    %cst_115 = arith.constant 1.000000e+00 : f32
    %369 = vector.broadcast %cst_115 : f32 to vector<2x32xf32>
    %370 = arith.divf %369, %368 : vector<2x32xf32>
    %371 = arith.mulf %360, %339 : vector<2x32xf32>
    %372 = arith.mulf %352, %362 : vector<2x32xf32>
    %373 = arith.addf %371, %372 : vector<2x32xf32>
    %374 = math.tanh %373 : vector<2x32xf32>
    %375 = arith.mulf %370, %374 : vector<2x32xf32>
    %376 = vector.extract_strided_slice %305 {offsets = [4, 0], sizes = [2, 128], strides = [1, 1]} : vector<16x128xf32> to vector<2x128xf32>
    %cst_116 = arith.constant dense<0.000000e+00> : vector<2x128xf32>
    %377 = tpu.matmul %375, %300, %cst_116 {dimension_numbers = #tpu.dot_dimension_numbers<[1], [0], [0], [1], [0, 0, 1, 1], [], []>} : vector<2x32xf32>, vector<32x128xf32>, vector<2x128xf32> -> vector<2x128xf32>
    %378 = arith.addf %376, %377 : vector<2x128xf32>
    %379 = vector.extract_strided_slice %378 {offsets = [0, 0], sizes = [2, 32], strides = [1, 1]} : vector<2x128xf32> to vector<2x32xf32>
    %cst_117 = arith.constant 0.000000e+00 : f32
    %380 = vector.broadcast %cst_117 : f32 to vector<2x32xf32>
    %381 = arith.subf %380, %379 : vector<2x32xf32>
    %382 = math.exp %381 : vector<2x32xf32>
    %cst_118 = arith.constant 1.000000e+00 : f32
    %383 = vector.broadcast %cst_118 : f32 to vector<2x32xf32>
    %384 = arith.addf %383, %382 : vector<2x32xf32>
    %cst_119 = arith.constant 1.000000e+00 : f32
    %385 = vector.broadcast %cst_119 : f32 to vector<2x32xf32>
    %386 = arith.divf %385, %384 : vector<2x32xf32>
    %387 = vector.extract_strided_slice %378 {offsets = [0, 32], sizes = [2, 32], strides = [1, 1]} : vector<2x128xf32> to vector<2x32xf32>
    %cst_120 = arith.constant 0.000000e+00 : f32
    %388 = vector.broadcast %cst_120 : f32 to vector<2x32xf32>
    %389 = arith.subf %388, %387 : vector<2x32xf32>
    %390 = math.exp %389 : vector<2x32xf32>
    %cst_121 = arith.constant 1.000000e+00 : f32
    %391 = vector.broadcast %cst_121 : f32 to vector<2x32xf32>
    %392 = arith.addf %391, %390 : vector<2x32xf32>
    %cst_122 = arith.constant 1.000000e+00 : f32
    %393 = vector.broadcast %cst_122 : f32 to vector<2x32xf32>
    %394 = arith.divf %393, %392 : vector<2x32xf32>
    %395 = vector.extract_strided_slice %378 {offsets = [0, 64], sizes = [2, 32], strides = [1, 1]} : vector<2x128xf32> to vector<2x32xf32>
    %396 = math.tanh %395 : vector<2x32xf32>
    %397 = vector.extract_strided_slice %378 {offsets = [0, 96], sizes = [2, 32], strides = [1, 1]} : vector<2x128xf32> to vector<2x32xf32>
    %cst_123 = arith.constant 0.000000e+00 : f32
    %398 = vector.broadcast %cst_123 : f32 to vector<2x32xf32>
    %399 = arith.subf %398, %397 : vector<2x32xf32>
    %400 = math.exp %399 : vector<2x32xf32>
    %cst_124 = arith.constant 1.000000e+00 : f32
    %401 = vector.broadcast %cst_124 : f32 to vector<2x32xf32>
    %402 = arith.addf %401, %400 : vector<2x32xf32>
    %cst_125 = arith.constant 1.000000e+00 : f32
    %403 = vector.broadcast %cst_125 : f32 to vector<2x32xf32>
    %404 = arith.divf %403, %402 : vector<2x32xf32>
    %405 = arith.mulf %394, %373 : vector<2x32xf32>
    %406 = arith.mulf %386, %396 : vector<2x32xf32>
    %407 = arith.addf %405, %406 : vector<2x32xf32>
    %408 = math.tanh %407 : vector<2x32xf32>
    %409 = arith.mulf %404, %408 : vector<2x32xf32>
    %410 = vector.extract_strided_slice %305 {offsets = [6, 0], sizes = [2, 128], strides = [1, 1]} : vector<16x128xf32> to vector<2x128xf32>
    %cst_126 = arith.constant dense<0.000000e+00> : vector<2x128xf32>
    %411 = tpu.matmul %409, %300, %cst_126 {dimension_numbers = #tpu.dot_dimension_numbers<[1], [0], [0], [1], [0, 0, 1, 1], [], []>} : vector<2x32xf32>, vector<32x128xf32>, vector<2x128xf32> -> vector<2x128xf32>
    %412 = arith.addf %410, %411 : vector<2x128xf32>
    %413 = vector.extract_strided_slice %412 {offsets = [0, 0], sizes = [2, 32], strides = [1, 1]} : vector<2x128xf32> to vector<2x32xf32>
    %cst_127 = arith.constant 0.000000e+00 : f32
    %414 = vector.broadcast %cst_127 : f32 to vector<2x32xf32>
    %415 = arith.subf %414, %413 : vector<2x32xf32>
    %416 = math.exp %415 : vector<2x32xf32>
    %cst_128 = arith.constant 1.000000e+00 : f32
    %417 = vector.broadcast %cst_128 : f32 to vector<2x32xf32>
    %418 = arith.addf %417, %416 : vector<2x32xf32>
    %cst_129 = arith.constant 1.000000e+00 : f32
    %419 = vector.broadcast %cst_129 : f32 to vector<2x32xf32>
    %420 = arith.divf %419, %418 : vector<2x32xf32>
    %421 = vector.extract_strided_slice %412 {offsets = [0, 32], sizes = [2, 32], strides = [1, 1]} : vector<2x128xf32> to vector<2x32xf32>
    %cst_130 = arith.constant 0.000000e+00 : f32
    %422 = vector.broadcast %cst_130 : f32 to vector<2x32xf32>
    %423 = arith.subf %422, %421 : vector<2x32xf32>
    %424 = math.exp %423 : vector<2x32xf32>
    %cst_131 = arith.constant 1.000000e+00 : f32
    %425 = vector.broadcast %cst_131 : f32 to vector<2x32xf32>
    %426 = arith.addf %425, %424 : vector<2x32xf32>
    %cst_132 = arith.constant 1.000000e+00 : f32
    %427 = vector.broadcast %cst_132 : f32 to vector<2x32xf32>
    %428 = arith.divf %427, %426 : vector<2x32xf32>
    %429 = vector.extract_strided_slice %412 {offsets = [0, 64], sizes = [2, 32], strides = [1, 1]} : vector<2x128xf32> to vector<2x32xf32>
    %430 = math.tanh %429 : vector<2x32xf32>
    %431 = vector.extract_strided_slice %412 {offsets = [0, 96], sizes = [2, 32], strides = [1, 1]} : vector<2x128xf32> to vector<2x32xf32>
    %cst_133 = arith.constant 0.000000e+00 : f32
    %432 = vector.broadcast %cst_133 : f32 to vector<2x32xf32>
    %433 = arith.subf %432, %431 : vector<2x32xf32>
    %434 = math.exp %433 : vector<2x32xf32>
    %cst_134 = arith.constant 1.000000e+00 : f32
    %435 = vector.broadcast %cst_134 : f32 to vector<2x32xf32>
    %436 = arith.addf %435, %434 : vector<2x32xf32>
    %cst_135 = arith.constant 1.000000e+00 : f32
    %437 = vector.broadcast %cst_135 : f32 to vector<2x32xf32>
    %438 = arith.divf %437, %436 : vector<2x32xf32>
    %439 = arith.mulf %428, %407 : vector<2x32xf32>
    %440 = arith.mulf %420, %430 : vector<2x32xf32>
    %441 = arith.addf %439, %440 : vector<2x32xf32>
    %442 = math.tanh %441 : vector<2x32xf32>
    %443 = arith.mulf %438, %442 : vector<2x32xf32>
    %444 = vector.extract_strided_slice %305 {offsets = [8, 0], sizes = [2, 128], strides = [1, 1]} : vector<16x128xf32> to vector<2x128xf32>
    %cst_136 = arith.constant dense<0.000000e+00> : vector<2x128xf32>
    %445 = tpu.matmul %443, %300, %cst_136 {dimension_numbers = #tpu.dot_dimension_numbers<[1], [0], [0], [1], [0, 0, 1, 1], [], []>} : vector<2x32xf32>, vector<32x128xf32>, vector<2x128xf32> -> vector<2x128xf32>
    %446 = arith.addf %444, %445 : vector<2x128xf32>
    %447 = vector.extract_strided_slice %446 {offsets = [0, 0], sizes = [2, 32], strides = [1, 1]} : vector<2x128xf32> to vector<2x32xf32>
    %cst_137 = arith.constant 0.000000e+00 : f32
    %448 = vector.broadcast %cst_137 : f32 to vector<2x32xf32>
    %449 = arith.subf %448, %447 : vector<2x32xf32>
    %450 = math.exp %449 : vector<2x32xf32>
    %cst_138 = arith.constant 1.000000e+00 : f32
    %451 = vector.broadcast %cst_138 : f32 to vector<2x32xf32>
    %452 = arith.addf %451, %450 : vector<2x32xf32>
    %cst_139 = arith.constant 1.000000e+00 : f32
    %453 = vector.broadcast %cst_139 : f32 to vector<2x32xf32>
    %454 = arith.divf %453, %452 : vector<2x32xf32>
    %455 = vector.extract_strided_slice %446 {offsets = [0, 32], sizes = [2, 32], strides = [1, 1]} : vector<2x128xf32> to vector<2x32xf32>
    %cst_140 = arith.constant 0.000000e+00 : f32
    %456 = vector.broadcast %cst_140 : f32 to vector<2x32xf32>
    %457 = arith.subf %456, %455 : vector<2x32xf32>
    %458 = math.exp %457 : vector<2x32xf32>
    %cst_141 = arith.constant 1.000000e+00 : f32
    %459 = vector.broadcast %cst_141 : f32 to vector<2x32xf32>
    %460 = arith.addf %459, %458 : vector<2x32xf32>
    %cst_142 = arith.constant 1.000000e+00 : f32
    %461 = vector.broadcast %cst_142 : f32 to vector<2x32xf32>
    %462 = arith.divf %461, %460 : vector<2x32xf32>
    %463 = vector.extract_strided_slice %446 {offsets = [0, 64], sizes = [2, 32], strides = [1, 1]} : vector<2x128xf32> to vector<2x32xf32>
    %464 = math.tanh %463 : vector<2x32xf32>
    %465 = vector.extract_strided_slice %446 {offsets = [0, 96], sizes = [2, 32], strides = [1, 1]} : vector<2x128xf32> to vector<2x32xf32>
    %cst_143 = arith.constant 0.000000e+00 : f32
    %466 = vector.broadcast %cst_143 : f32 to vector<2x32xf32>
    %467 = arith.subf %466, %465 : vector<2x32xf32>
    %468 = math.exp %467 : vector<2x32xf32>
    %cst_144 = arith.constant 1.000000e+00 : f32
    %469 = vector.broadcast %cst_144 : f32 to vector<2x32xf32>
    %470 = arith.addf %469, %468 : vector<2x32xf32>
    %cst_145 = arith.constant 1.000000e+00 : f32
    %471 = vector.broadcast %cst_145 : f32 to vector<2x32xf32>
    %472 = arith.divf %471, %470 : vector<2x32xf32>
    %473 = arith.mulf %462, %441 : vector<2x32xf32>
    %474 = arith.mulf %454, %464 : vector<2x32xf32>
    %475 = arith.addf %473, %474 : vector<2x32xf32>
    %476 = math.tanh %475 : vector<2x32xf32>
    %477 = arith.mulf %472, %476 : vector<2x32xf32>
    %478 = vector.extract_strided_slice %305 {offsets = [10, 0], sizes = [2, 128], strides = [1, 1]} : vector<16x128xf32> to vector<2x128xf32>
    %cst_146 = arith.constant dense<0.000000e+00> : vector<2x128xf32>
    %479 = tpu.matmul %477, %300, %cst_146 {dimension_numbers = #tpu.dot_dimension_numbers<[1], [0], [0], [1], [0, 0, 1, 1], [], []>} : vector<2x32xf32>, vector<32x128xf32>, vector<2x128xf32> -> vector<2x128xf32>
    %480 = arith.addf %478, %479 : vector<2x128xf32>
    %481 = vector.extract_strided_slice %480 {offsets = [0, 0], sizes = [2, 32], strides = [1, 1]} : vector<2x128xf32> to vector<2x32xf32>
    %cst_147 = arith.constant 0.000000e+00 : f32
    %482 = vector.broadcast %cst_147 : f32 to vector<2x32xf32>
    %483 = arith.subf %482, %481 : vector<2x32xf32>
    %484 = math.exp %483 : vector<2x32xf32>
    %cst_148 = arith.constant 1.000000e+00 : f32
    %485 = vector.broadcast %cst_148 : f32 to vector<2x32xf32>
    %486 = arith.addf %485, %484 : vector<2x32xf32>
    %cst_149 = arith.constant 1.000000e+00 : f32
    %487 = vector.broadcast %cst_149 : f32 to vector<2x32xf32>
    %488 = arith.divf %487, %486 : vector<2x32xf32>
    %489 = vector.extract_strided_slice %480 {offsets = [0, 32], sizes = [2, 32], strides = [1, 1]} : vector<2x128xf32> to vector<2x32xf32>
    %cst_150 = arith.constant 0.000000e+00 : f32
    %490 = vector.broadcast %cst_150 : f32 to vector<2x32xf32>
    %491 = arith.subf %490, %489 : vector<2x32xf32>
    %492 = math.exp %491 : vector<2x32xf32>
    %cst_151 = arith.constant 1.000000e+00 : f32
    %493 = vector.broadcast %cst_151 : f32 to vector<2x32xf32>
    %494 = arith.addf %493, %492 : vector<2x32xf32>
    %cst_152 = arith.constant 1.000000e+00 : f32
    %495 = vector.broadcast %cst_152 : f32 to vector<2x32xf32>
    %496 = arith.divf %495, %494 : vector<2x32xf32>
    %497 = vector.extract_strided_slice %480 {offsets = [0, 64], sizes = [2, 32], strides = [1, 1]} : vector<2x128xf32> to vector<2x32xf32>
    %498 = math.tanh %497 : vector<2x32xf32>
    %499 = vector.extract_strided_slice %480 {offsets = [0, 96], sizes = [2, 32], strides = [1, 1]} : vector<2x128xf32> to vector<2x32xf32>
    %cst_153 = arith.constant 0.000000e+00 : f32
    %500 = vector.broadcast %cst_153 : f32 to vector<2x32xf32>
    %501 = arith.subf %500, %499 : vector<2x32xf32>
    %502 = math.exp %501 : vector<2x32xf32>
    %cst_154 = arith.constant 1.000000e+00 : f32
    %503 = vector.broadcast %cst_154 : f32 to vector<2x32xf32>
    %504 = arith.addf %503, %502 : vector<2x32xf32>
    %cst_155 = arith.constant 1.000000e+00 : f32
    %505 = vector.broadcast %cst_155 : f32 to vector<2x32xf32>
    %506 = arith.divf %505, %504 : vector<2x32xf32>
    %507 = arith.mulf %496, %475 : vector<2x32xf32>
    %508 = arith.mulf %488, %498 : vector<2x32xf32>
    %509 = arith.addf %507, %508 : vector<2x32xf32>
    %510 = math.tanh %509 : vector<2x32xf32>
    %511 = arith.mulf %506, %510 : vector<2x32xf32>
    %512 = vector.extract_strided_slice %305 {offsets = [12, 0], sizes = [2, 128], strides = [1, 1]} : vector<16x128xf32> to vector<2x128xf32>
    %cst_156 = arith.constant dense<0.000000e+00> : vector<2x128xf32>
    %513 = tpu.matmul %511, %300, %cst_156 {dimension_numbers = #tpu.dot_dimension_numbers<[1], [0], [0], [1], [0, 0, 1, 1], [], []>} : vector<2x32xf32>, vector<32x128xf32>, vector<2x128xf32> -> vector<2x128xf32>
    %514 = arith.addf %512, %513 : vector<2x128xf32>
    %515 = vector.extract_strided_slice %514 {offsets = [0, 0], sizes = [2, 32], strides = [1, 1]} : vector<2x128xf32> to vector<2x32xf32>
    %cst_157 = arith.constant 0.000000e+00 : f32
    %516 = vector.broadcast %cst_157 : f32 to vector<2x32xf32>
    %517 = arith.subf %516, %515 : vector<2x32xf32>
    %518 = math.exp %517 : vector<2x32xf32>
    %cst_158 = arith.constant 1.000000e+00 : f32
    %519 = vector.broadcast %cst_158 : f32 to vector<2x32xf32>
    %520 = arith.addf %519, %518 : vector<2x32xf32>
    %cst_159 = arith.constant 1.000000e+00 : f32
    %521 = vector.broadcast %cst_159 : f32 to vector<2x32xf32>
    %522 = arith.divf %521, %520 : vector<2x32xf32>
    %523 = vector.extract_strided_slice %514 {offsets = [0, 32], sizes = [2, 32], strides = [1, 1]} : vector<2x128xf32> to vector<2x32xf32>
    %cst_160 = arith.constant 0.000000e+00 : f32
    %524 = vector.broadcast %cst_160 : f32 to vector<2x32xf32>
    %525 = arith.subf %524, %523 : vector<2x32xf32>
    %526 = math.exp %525 : vector<2x32xf32>
    %cst_161 = arith.constant 1.000000e+00 : f32
    %527 = vector.broadcast %cst_161 : f32 to vector<2x32xf32>
    %528 = arith.addf %527, %526 : vector<2x32xf32>
    %cst_162 = arith.constant 1.000000e+00 : f32
    %529 = vector.broadcast %cst_162 : f32 to vector<2x32xf32>
    %530 = arith.divf %529, %528 : vector<2x32xf32>
    %531 = vector.extract_strided_slice %514 {offsets = [0, 64], sizes = [2, 32], strides = [1, 1]} : vector<2x128xf32> to vector<2x32xf32>
    %532 = math.tanh %531 : vector<2x32xf32>
    %533 = vector.extract_strided_slice %514 {offsets = [0, 96], sizes = [2, 32], strides = [1, 1]} : vector<2x128xf32> to vector<2x32xf32>
    %cst_163 = arith.constant 0.000000e+00 : f32
    %534 = vector.broadcast %cst_163 : f32 to vector<2x32xf32>
    %535 = arith.subf %534, %533 : vector<2x32xf32>
    %536 = math.exp %535 : vector<2x32xf32>
    %cst_164 = arith.constant 1.000000e+00 : f32
    %537 = vector.broadcast %cst_164 : f32 to vector<2x32xf32>
    %538 = arith.addf %537, %536 : vector<2x32xf32>
    %cst_165 = arith.constant 1.000000e+00 : f32
    %539 = vector.broadcast %cst_165 : f32 to vector<2x32xf32>
    %540 = arith.divf %539, %538 : vector<2x32xf32>
    %541 = arith.mulf %530, %509 : vector<2x32xf32>
    %542 = arith.mulf %522, %532 : vector<2x32xf32>
    %543 = arith.addf %541, %542 : vector<2x32xf32>
    %544 = math.tanh %543 : vector<2x32xf32>
    %545 = arith.mulf %540, %544 : vector<2x32xf32>
    %546 = vector.extract_strided_slice %305 {offsets = [14, 0], sizes = [2, 128], strides = [1, 1]} : vector<16x128xf32> to vector<2x128xf32>
    %cst_166 = arith.constant dense<0.000000e+00> : vector<2x128xf32>
    %547 = tpu.matmul %545, %300, %cst_166 {dimension_numbers = #tpu.dot_dimension_numbers<[1], [0], [0], [1], [0, 0, 1, 1], [], []>} : vector<2x32xf32>, vector<32x128xf32>, vector<2x128xf32> -> vector<2x128xf32>
    %548 = arith.addf %546, %547 : vector<2x128xf32>
    %549 = vector.extract_strided_slice %548 {offsets = [0, 0], sizes = [2, 32], strides = [1, 1]} : vector<2x128xf32> to vector<2x32xf32>
    %cst_167 = arith.constant 0.000000e+00 : f32
    %550 = vector.broadcast %cst_167 : f32 to vector<2x32xf32>
    %551 = arith.subf %550, %549 : vector<2x32xf32>
    %552 = math.exp %551 : vector<2x32xf32>
    %cst_168 = arith.constant 1.000000e+00 : f32
    %553 = vector.broadcast %cst_168 : f32 to vector<2x32xf32>
    %554 = arith.addf %553, %552 : vector<2x32xf32>
    %cst_169 = arith.constant 1.000000e+00 : f32
    %555 = vector.broadcast %cst_169 : f32 to vector<2x32xf32>
    %556 = arith.divf %555, %554 : vector<2x32xf32>
    %557 = vector.extract_strided_slice %548 {offsets = [0, 32], sizes = [2, 32], strides = [1, 1]} : vector<2x128xf32> to vector<2x32xf32>
    %cst_170 = arith.constant 0.000000e+00 : f32
    %558 = vector.broadcast %cst_170 : f32 to vector<2x32xf32>
    %559 = arith.subf %558, %557 : vector<2x32xf32>
    %560 = math.exp %559 : vector<2x32xf32>
    %cst_171 = arith.constant 1.000000e+00 : f32
    %561 = vector.broadcast %cst_171 : f32 to vector<2x32xf32>
    %562 = arith.addf %561, %560 : vector<2x32xf32>
    %cst_172 = arith.constant 1.000000e+00 : f32
    %563 = vector.broadcast %cst_172 : f32 to vector<2x32xf32>
    %564 = arith.divf %563, %562 : vector<2x32xf32>
    %565 = vector.extract_strided_slice %548 {offsets = [0, 64], sizes = [2, 32], strides = [1, 1]} : vector<2x128xf32> to vector<2x32xf32>
    %566 = math.tanh %565 : vector<2x32xf32>
    %567 = vector.extract_strided_slice %548 {offsets = [0, 96], sizes = [2, 32], strides = [1, 1]} : vector<2x128xf32> to vector<2x32xf32>
    %cst_173 = arith.constant 0.000000e+00 : f32
    %568 = vector.broadcast %cst_173 : f32 to vector<2x32xf32>
    %569 = arith.subf %568, %567 : vector<2x32xf32>
    %570 = math.exp %569 : vector<2x32xf32>
    %cst_174 = arith.constant 1.000000e+00 : f32
    %571 = vector.broadcast %cst_174 : f32 to vector<2x32xf32>
    %572 = arith.addf %571, %570 : vector<2x32xf32>
    %cst_175 = arith.constant 1.000000e+00 : f32
    %573 = vector.broadcast %cst_175 : f32 to vector<2x32xf32>
    %574 = arith.divf %573, %572 : vector<2x32xf32>
    %575 = arith.mulf %564, %543 : vector<2x32xf32>
    %576 = arith.mulf %556, %566 : vector<2x32xf32>
    %577 = arith.addf %575, %576 : vector<2x32xf32>
    %578 = math.tanh %577 : vector<2x32xf32>
    %579 = arith.mulf %574, %578 : vector<2x32xf32>
    %580 = math.tanh %341 : vector<2x32xf32>
    %581 = math.tanh %375 : vector<2x32xf32>
    %582 = math.tanh %409 : vector<2x32xf32>
    %583 = math.tanh %443 : vector<2x32xf32>
    %584 = math.tanh %477 : vector<2x32xf32>
    %585 = math.tanh %511 : vector<2x32xf32>
    %586 = math.tanh %545 : vector<2x32xf32>
    %587 = math.tanh %579 : vector<2x32xf32>
    %588 = tpu.concatenate %580, %581, %582, %583, %584, %585, %586, %587 in 1 : vector<2x32xf32>, vector<2x32xf32>, vector<2x32xf32>, vector<2x32xf32>, vector<2x32xf32>, vector<2x32xf32>, vector<2x32xf32>, vector<2x32xf32> -> vector<2x256xf32>
    %c0_176 = arith.constant 0 : index
    %c0_177 = arith.constant 0 : index
    %589 = vector.load %arg4[%c0_176, %c0_177] : memref<264x32xf32, #tpu.memory_space<vmem>>, vector<256x32xf32>
    %c256 = arith.constant 256 : index
    %c0_178 = arith.constant 0 : index
    %590 = vector.load %arg4[%c256, %c0_178] : memref<264x32xf32, #tpu.memory_space<vmem>>, vector<3x32xf32>
    %cst_179 = arith.constant dense<0.000000e+00> : vector<2x32xf32>
    %591 = tpu.matmul %588, %589, %cst_179 {dimension_numbers = #tpu.dot_dimension_numbers<[1], [0], [0], [1], [0, 0, 1, 1], [], []>} : vector<2x256xf32>, vector<256x32xf32>, vector<2x32xf32> -> vector<2x32xf32>
    %592 = vector.extract_strided_slice %590 {offsets = [0, 0], sizes = [1, 32], strides = [1, 1]} : vector<3x32xf32> to vector<1x32xf32>
    %593 = vector.broadcast %592 : vector<1x32xf32> to vector<2x32xf32>
    %594 = arith.addf %591, %593 : vector<2x32xf32>
    %cst_180 = arith.constant 0.000000e+00 : f32
    %595 = vector.broadcast %cst_180 : f32 to vector<2x32xf32>
    %596 = arith.maximumf %594, %595 : vector<2x32xf32>
    %597 = math.absf %594 : vector<2x32xf32>
    %cst_181 = arith.constant 0.000000e+00 : f32
    %598 = vector.broadcast %cst_181 : f32 to vector<2x32xf32>
    %599 = arith.subf %598, %597 : vector<2x32xf32>
    %600 = math.exp %599 : vector<2x32xf32>
    %601 = math.log1p %600 : vector<2x32xf32>
    %602 = arith.addf %596, %601 : vector<2x32xf32>
    %603 = vector.extract_strided_slice %590 {offsets = [1, 0], sizes = [1, 32], strides = [1, 1]} : vector<3x32xf32> to vector<1x32xf32>
    %604 = vector.broadcast %603 : vector<1x32xf32> to vector<2x32xf32>
    %605 = arith.mulf %602, %604 : vector<2x32xf32>
    %606 = vector.extract_strided_slice %590 {offsets = [2, 0], sizes = [1, 32], strides = [1, 1]} : vector<3x32xf32> to vector<1x32xf32>
    %607 = vector.broadcast %606 : vector<1x32xf32> to vector<2x32xf32>
    %608 = arith.addf %605, %607 : vector<2x32xf32>
    %c40_182 = arith.constant 40 : index
    %c0_183 = arith.constant 0 : index
    %609 = vector.load %arg6[%c40_182, %c0_183] : memref<192x128xf32, #tpu.memory_space<vmem>>, vector<3x32xf32>
    %c0_184 = arith.constant 0 : index
    %c0_185 = arith.constant 0 : index
    %610 = vector.load %arg6[%c0_184, %c0_185] : memref<192x128xf32, #tpu.memory_space<vmem>>, vector<32x32xf32>
    %cst_186 = arith.constant dense<0.000000e+00> : vector<2x32xf32>
    %611 = tpu.matmul %608, %610, %cst_186 {dimension_numbers = #tpu.dot_dimension_numbers<[1], [0], [0], [1], [0, 0, 1, 1], [], []>} : vector<2x32xf32>, vector<32x32xf32>, vector<2x32xf32> -> vector<2x32xf32>
    %c32 = arith.constant 32 : index
    %c0_187 = arith.constant 0 : index
    %612 = vector.load %arg6[%c32, %c0_187] : memref<192x128xf32, #tpu.memory_space<vmem>>, vector<1x32xf32>
    %613 = vector.broadcast %1 : vector<2x1xf32> to vector<2x32xf32>
    %614 = vector.broadcast %612 : vector<1x32xf32> to vector<2x32xf32>
    %615 = arith.mulf %613, %614 : vector<2x32xf32>
    %616 = arith.addf %611, %615 : vector<2x32xf32>
    %617 = vector.extract_strided_slice %609 {offsets = [0, 0], sizes = [1, 32], strides = [1, 1]} : vector<3x32xf32> to vector<1x32xf32>
    %618 = vector.broadcast %617 : vector<1x32xf32> to vector<2x32xf32>
    %619 = arith.addf %616, %618 : vector<2x32xf32>
    %cst_188 = arith.constant 0.000000e+00 : f32
    %620 = vector.broadcast %cst_188 : f32 to vector<2x32xf32>
    %621 = arith.maximumf %619, %620 : vector<2x32xf32>
    %622 = math.absf %619 : vector<2x32xf32>
    %cst_189 = arith.constant 0.000000e+00 : f32
    %623 = vector.broadcast %cst_189 : f32 to vector<2x32xf32>
    %624 = arith.subf %623, %622 : vector<2x32xf32>
    %625 = math.exp %624 : vector<2x32xf32>
    %626 = math.log1p %625 : vector<2x32xf32>
    %627 = arith.addf %621, %626 : vector<2x32xf32>
    %628 = vector.extract_strided_slice %609 {offsets = [1, 0], sizes = [1, 32], strides = [1, 1]} : vector<3x32xf32> to vector<1x32xf32>
    %629 = vector.broadcast %628 : vector<1x32xf32> to vector<2x32xf32>
    %630 = arith.mulf %627, %629 : vector<2x32xf32>
    %631 = vector.extract_strided_slice %609 {offsets = [2, 0], sizes = [1, 32], strides = [1, 1]} : vector<3x32xf32> to vector<1x32xf32>
    %632 = vector.broadcast %631 : vector<1x32xf32> to vector<2x32xf32>
    %633 = arith.addf %630, %632 : vector<2x32xf32>
    %c48_190 = arith.constant 48 : index
    %c0_191 = arith.constant 0 : index
    %634 = vector.load %arg6[%c48_190, %c0_191] : memref<192x128xf32, #tpu.memory_space<vmem>>, vector<32x16xf32>
    %c80_192 = arith.constant 80 : index
    %c0_193 = arith.constant 0 : index
    %635 = vector.load %arg6[%c80_192, %c0_193] : memref<192x128xf32, #tpu.memory_space<vmem>>, vector<3x16xf32>
    %cst_194 = arith.constant dense<0.000000e+00> : vector<2x16xf32>
    %636 = tpu.matmul %633, %634, %cst_194 {dimension_numbers = #tpu.dot_dimension_numbers<[1], [0], [0], [1], [0, 0, 1, 1], [], []>} : vector<2x32xf32>, vector<32x16xf32>, vector<2x16xf32> -> vector<2x16xf32>
    %637 = vector.extract_strided_slice %635 {offsets = [0, 0], sizes = [1, 16], strides = [1, 1]} : vector<3x16xf32> to vector<1x16xf32>
    %638 = vector.broadcast %637 : vector<1x16xf32> to vector<2x16xf32>
    %639 = arith.addf %636, %638 : vector<2x16xf32>
    %cst_195 = arith.constant 0.000000e+00 : f32
    %640 = vector.broadcast %cst_195 : f32 to vector<2x16xf32>
    %641 = arith.maximumf %639, %640 : vector<2x16xf32>
    %642 = math.absf %639 : vector<2x16xf32>
    %cst_196 = arith.constant 0.000000e+00 : f32
    %643 = vector.broadcast %cst_196 : f32 to vector<2x16xf32>
    %644 = arith.subf %643, %642 : vector<2x16xf32>
    %645 = math.exp %644 : vector<2x16xf32>
    %646 = math.log1p %645 : vector<2x16xf32>
    %647 = arith.addf %641, %646 : vector<2x16xf32>
    %648 = vector.extract_strided_slice %635 {offsets = [1, 0], sizes = [1, 16], strides = [1, 1]} : vector<3x16xf32> to vector<1x16xf32>
    %649 = vector.broadcast %648 : vector<1x16xf32> to vector<2x16xf32>
    %650 = arith.mulf %647, %649 : vector<2x16xf32>
    %651 = vector.extract_strided_slice %635 {offsets = [2, 0], sizes = [1, 16], strides = [1, 1]} : vector<3x16xf32> to vector<1x16xf32>
    %652 = vector.broadcast %651 : vector<1x16xf32> to vector<2x16xf32>
    %653 = arith.addf %650, %652 : vector<2x16xf32>
    %c88 = arith.constant 88 : index
    %c0_197 = arith.constant 0 : index
    %654 = vector.load %arg6[%c88, %c0_197] : memref<192x128xf32, #tpu.memory_space<vmem>>, vector<16x3xf32>
    %cst_198 = arith.constant dense<0.000000e+00> : vector<2x3xf32>
    %655 = tpu.matmul %653, %654, %cst_198 {dimension_numbers = #tpu.dot_dimension_numbers<[1], [0], [0], [1], [0, 0, 1, 1], [], []>} : vector<2x16xf32>, vector<16x3xf32>, vector<2x3xf32> -> vector<2x3xf32>
    %c104 = arith.constant 104 : index
    %c0_199 = arith.constant 0 : index
    %656 = vector.load %arg6[%c104, %c0_199] : memref<192x128xf32, #tpu.memory_space<vmem>>, vector<1x3xf32>
    %657 = vector.broadcast %656 : vector<1x3xf32> to vector<2x3xf32>
    %658 = arith.addf %655, %657 : vector<2x3xf32>
    %c112_200 = arith.constant 112 : index
    %c0_201 = arith.constant 0 : index
    %659 = vector.load %arg6[%c112_200, %c0_201] : memref<192x128xf32, #tpu.memory_space<vmem>>, vector<3x16xf32>
    %c120 = arith.constant 120 : index
    %c0_202 = arith.constant 0 : index
    %660 = vector.load %arg6[%c120, %c0_202] : memref<192x128xf32, #tpu.memory_space<vmem>>, vector<3x16xf32>
    %cst_203 = arith.constant dense<0.000000e+00> : vector<2x16xf32>
    %661 = tpu.matmul %658, %659, %cst_203 {dimension_numbers = #tpu.dot_dimension_numbers<[1], [0], [0], [1], [0, 0, 1, 1], [], []>} : vector<2x3xf32>, vector<3x16xf32>, vector<2x16xf32> -> vector<2x16xf32>
    %662 = vector.extract_strided_slice %660 {offsets = [0, 0], sizes = [1, 16], strides = [1, 1]} : vector<3x16xf32> to vector<1x16xf32>
    %663 = vector.broadcast %662 : vector<1x16xf32> to vector<2x16xf32>
    %664 = arith.addf %661, %663 : vector<2x16xf32>
    %cst_204 = arith.constant 0.000000e+00 : f32
    %665 = vector.broadcast %cst_204 : f32 to vector<2x16xf32>
    %666 = arith.maximumf %664, %665 : vector<2x16xf32>
    %667 = math.absf %664 : vector<2x16xf32>
    %cst_205 = arith.constant 0.000000e+00 : f32
    %668 = vector.broadcast %cst_205 : f32 to vector<2x16xf32>
    %669 = arith.subf %668, %667 : vector<2x16xf32>
    %670 = math.exp %669 : vector<2x16xf32>
    %671 = math.log1p %670 : vector<2x16xf32>
    %672 = arith.addf %666, %671 : vector<2x16xf32>
    %673 = vector.extract_strided_slice %660 {offsets = [1, 0], sizes = [1, 16], strides = [1, 1]} : vector<3x16xf32> to vector<1x16xf32>
    %674 = vector.broadcast %673 : vector<1x16xf32> to vector<2x16xf32>
    %675 = arith.mulf %672, %674 : vector<2x16xf32>
    %676 = vector.extract_strided_slice %660 {offsets = [2, 0], sizes = [1, 16], strides = [1, 1]} : vector<3x16xf32> to vector<1x16xf32>
    %677 = vector.broadcast %676 : vector<1x16xf32> to vector<2x16xf32>
    %678 = arith.addf %675, %677 : vector<2x16xf32>
    %c128 = arith.constant 128 : index
    %c0_206 = arith.constant 0 : index
    %679 = vector.load %arg6[%c128, %c0_206] : memref<192x128xf32, #tpu.memory_space<vmem>>, vector<16x32xf32>
    %c144 = arith.constant 144 : index
    %c0_207 = arith.constant 0 : index
    %680 = vector.load %arg6[%c144, %c0_207] : memref<192x128xf32, #tpu.memory_space<vmem>>, vector<3x32xf32>
    %cst_208 = arith.constant dense<0.000000e+00> : vector<2x32xf32>
    %681 = tpu.matmul %678, %679, %cst_208 {dimension_numbers = #tpu.dot_dimension_numbers<[1], [0], [0], [1], [0, 0, 1, 1], [], []>} : vector<2x16xf32>, vector<16x32xf32>, vector<2x32xf32> -> vector<2x32xf32>
    %682 = vector.extract_strided_slice %680 {offsets = [0, 0], sizes = [1, 32], strides = [1, 1]} : vector<3x32xf32> to vector<1x32xf32>
    %683 = vector.broadcast %682 : vector<1x32xf32> to vector<2x32xf32>
    %684 = arith.addf %681, %683 : vector<2x32xf32>
    %cst_209 = arith.constant 0.000000e+00 : f32
    %685 = vector.broadcast %cst_209 : f32 to vector<2x32xf32>
    %686 = arith.maximumf %684, %685 : vector<2x32xf32>
    %687 = math.absf %684 : vector<2x32xf32>
    %cst_210 = arith.constant 0.000000e+00 : f32
    %688 = vector.broadcast %cst_210 : f32 to vector<2x32xf32>
    %689 = arith.subf %688, %687 : vector<2x32xf32>
    %690 = math.exp %689 : vector<2x32xf32>
    %691 = math.log1p %690 : vector<2x32xf32>
    %692 = arith.addf %686, %691 : vector<2x32xf32>
    %693 = vector.extract_strided_slice %680 {offsets = [1, 0], sizes = [1, 32], strides = [1, 1]} : vector<3x32xf32> to vector<1x32xf32>
    %694 = vector.broadcast %693 : vector<1x32xf32> to vector<2x32xf32>
    %695 = arith.mulf %692, %694 : vector<2x32xf32>
    %696 = vector.extract_strided_slice %680 {offsets = [2, 0], sizes = [1, 32], strides = [1, 1]} : vector<3x32xf32> to vector<1x32xf32>
    %697 = vector.broadcast %696 : vector<1x32xf32> to vector<2x32xf32>
    %698 = arith.addf %695, %697 : vector<2x32xf32>
    %c152 = arith.constant 152 : index
    %c0_211 = arith.constant 0 : index
    %699 = vector.load %arg6[%c152, %c0_211] : memref<192x128xf32, #tpu.memory_space<vmem>>, vector<32x33xf32>
    %c184 = arith.constant 184 : index
    %c0_212 = arith.constant 0 : index
    %700 = vector.load %arg6[%c184, %c0_212] : memref<192x128xf32, #tpu.memory_space<vmem>>, vector<3x33xf32>
    %cst_213 = arith.constant dense<0.000000e+00> : vector<2x33xf32>
    %701 = tpu.matmul %698, %699, %cst_213 {dimension_numbers = #tpu.dot_dimension_numbers<[1], [0], [0], [1], [0, 0, 1, 1], [], []>} : vector<2x32xf32>, vector<32x33xf32>, vector<2x33xf32> -> vector<2x33xf32>
    %702 = vector.extract_strided_slice %700 {offsets = [0, 0], sizes = [1, 33], strides = [1, 1]} : vector<3x33xf32> to vector<1x33xf32>
    %703 = vector.broadcast %702 : vector<1x33xf32> to vector<2x33xf32>
    %704 = arith.addf %701, %703 : vector<2x33xf32>
    %cst_214 = arith.constant 0.000000e+00 : f32
    %705 = vector.broadcast %cst_214 : f32 to vector<2x33xf32>
    %706 = arith.maximumf %704, %705 : vector<2x33xf32>
    %707 = math.absf %704 : vector<2x33xf32>
    %cst_215 = arith.constant 0.000000e+00 : f32
    %708 = vector.broadcast %cst_215 : f32 to vector<2x33xf32>
    %709 = arith.subf %708, %707 : vector<2x33xf32>
    %710 = math.exp %709 : vector<2x33xf32>
    %711 = math.log1p %710 : vector<2x33xf32>
    %712 = arith.addf %706, %711 : vector<2x33xf32>
    %713 = vector.extract_strided_slice %700 {offsets = [1, 0], sizes = [1, 33], strides = [1, 1]} : vector<3x33xf32> to vector<1x33xf32>
    %714 = vector.broadcast %713 : vector<1x33xf32> to vector<2x33xf32>
    %715 = arith.mulf %712, %714 : vector<2x33xf32>
    %716 = vector.extract_strided_slice %700 {offsets = [2, 0], sizes = [1, 33], strides = [1, 1]} : vector<3x33xf32> to vector<1x33xf32>
    %717 = vector.broadcast %716 : vector<1x33xf32> to vector<2x33xf32>
    %718 = arith.addf %715, %717 : vector<2x33xf32>
    %719 = vector.extract_strided_slice %718 {offsets = [0, 0], sizes = [2, 32], strides = [1, 1]} : vector<2x33xf32> to vector<2x32xf32>
    %720 = vector.extract_strided_slice %718 {offsets = [0, 32], sizes = [2, 1], strides = [1, 1]} : vector<2x33xf32> to vector<2x1xf32>
    %c0_216 = arith.constant 0 : index
    %c0_217 = arith.constant 0 : index
    %721 = vector.load %arg5[%c0_216, %c0_217] : memref<40x256xf32, #tpu.memory_space<vmem>>, vector<32x256xf32>
    %cst_218 = arith.constant dense<0.000000e+00> : vector<2x256xf32>
    %722 = tpu.matmul %719, %721, %cst_218 {dimension_numbers = #tpu.dot_dimension_numbers<[1], [0], [0], [1], [0, 0, 1, 1], [], []>} : vector<2x32xf32>, vector<32x256xf32>, vector<2x256xf32> -> vector<2x256xf32>
    %c32_219 = arith.constant 32 : index
    %c0_220 = arith.constant 0 : index
    %723 = vector.load %arg5[%c32_219, %c0_220] : memref<40x256xf32, #tpu.memory_space<vmem>>, vector<1x256xf32>
    %724 = vector.broadcast %723 : vector<1x256xf32> to vector<2x256xf32>
    %725 = arith.addf %722, %724 : vector<2x256xf32>
    %726 = math.tanh %725 : vector<2x256xf32>
    %727 = vector.extract_strided_slice %726 {offsets = [0, 0], sizes = [2, 32], strides = [1, 1]} : vector<2x256xf32> to vector<2x32xf32>
    %728 = vector.extract_strided_slice %726 {offsets = [0, 32], sizes = [2, 32], strides = [1, 1]} : vector<2x256xf32> to vector<2x32xf32>
    %729 = vector.extract_strided_slice %726 {offsets = [0, 64], sizes = [2, 32], strides = [1, 1]} : vector<2x256xf32> to vector<2x32xf32>
    %730 = vector.extract_strided_slice %726 {offsets = [0, 96], sizes = [2, 32], strides = [1, 1]} : vector<2x256xf32> to vector<2x32xf32>
    %731 = vector.extract_strided_slice %726 {offsets = [0, 128], sizes = [2, 32], strides = [1, 1]} : vector<2x256xf32> to vector<2x32xf32>
    %732 = vector.extract_strided_slice %726 {offsets = [0, 160], sizes = [2, 32], strides = [1, 1]} : vector<2x256xf32> to vector<2x32xf32>
    %733 = vector.extract_strided_slice %726 {offsets = [0, 192], sizes = [2, 32], strides = [1, 1]} : vector<2x256xf32> to vector<2x32xf32>
    %734 = vector.extract_strided_slice %726 {offsets = [0, 224], sizes = [2, 32], strides = [1, 1]} : vector<2x256xf32> to vector<2x32xf32>
    %c0_221 = arith.constant 0 : index
    %c0_222 = arith.constant 0 : index
    %735 = vector.load %arg3[%c0_221, %c0_222] : memref<72x16xf32, #tpu.memory_space<vmem>>, vector<32x16xf32>
    %c32_223 = arith.constant 32 : index
    %c0_224 = arith.constant 0 : index
    %736 = vector.load %arg3[%c32_223, %c0_224] : memref<72x16xf32, #tpu.memory_space<vmem>>, vector<4x16xf32>
    %c40_225 = arith.constant 40 : index
    %c0_226 = arith.constant 0 : index
    %737 = vector.load %arg3[%c40_225, %c0_226] : memref<72x16xf32, #tpu.memory_space<vmem>>, vector<1x16xf32>
    %738 = tpu.concatenate %727, %728, %729, %730, %731, %732, %733, %734 in 0 : vector<2x32xf32>, vector<2x32xf32>, vector<2x32xf32>, vector<2x32xf32>, vector<2x32xf32>, vector<2x32xf32>, vector<2x32xf32>, vector<2x32xf32> -> vector<16x32xf32>
    %cst_227 = arith.constant dense<0.000000e+00> : vector<16x16xf32>
    %739 = tpu.matmul %738, %735, %cst_227 {dimension_numbers = #tpu.dot_dimension_numbers<[1], [0], [0], [1], [0, 0, 1, 1], [], []>} : vector<16x32xf32>, vector<32x16xf32>, vector<16x16xf32> -> vector<16x16xf32>
    %740 = vector.broadcast %737 : vector<1x16xf32> to vector<16x16xf32>
    %741 = arith.addf %739, %740 : vector<16x16xf32>
    %cst_228 = arith.constant 0.000000e+00 : f32
    %742 = vector.broadcast %cst_228 : f32 to vector<2x4xf32>
    %cst_229 = arith.constant 0.000000e+00 : f32
    %743 = vector.broadcast %cst_229 : f32 to vector<2x4xf32>
    %744 = vector.extract_strided_slice %741 {offsets = [0, 0], sizes = [2, 16], strides = [1, 1]} : vector<16x16xf32> to vector<2x16xf32>
    %cst_230 = arith.constant dense<0.000000e+00> : vector<2x16xf32>
    %745 = tpu.matmul %742, %736, %cst_230 {dimension_numbers = #tpu.dot_dimension_numbers<[1], [0], [0], [1], [0, 0, 1, 1], [], []>} : vector<2x4xf32>, vector<4x16xf32>, vector<2x16xf32> -> vector<2x16xf32>
    %746 = arith.addf %744, %745 : vector<2x16xf32>
    %747 = vector.extract_strided_slice %746 {offsets = [0, 0], sizes = [2, 4], strides = [1, 1]} : vector<2x16xf32> to vector<2x4xf32>
    %cst_231 = arith.constant 0.000000e+00 : f32
    %748 = vector.broadcast %cst_231 : f32 to vector<2x4xf32>
    %749 = arith.subf %748, %747 : vector<2x4xf32>
    %750 = math.exp %749 : vector<2x4xf32>
    %cst_232 = arith.constant 1.000000e+00 : f32
    %751 = vector.broadcast %cst_232 : f32 to vector<2x4xf32>
    %752 = arith.addf %751, %750 : vector<2x4xf32>
    %cst_233 = arith.constant 1.000000e+00 : f32
    %753 = vector.broadcast %cst_233 : f32 to vector<2x4xf32>
    %754 = arith.divf %753, %752 : vector<2x4xf32>
    %755 = vector.extract_strided_slice %746 {offsets = [0, 4], sizes = [2, 4], strides = [1, 1]} : vector<2x16xf32> to vector<2x4xf32>
    %cst_234 = arith.constant 0.000000e+00 : f32
    %756 = vector.broadcast %cst_234 : f32 to vector<2x4xf32>
    %757 = arith.subf %756, %755 : vector<2x4xf32>
    %758 = math.exp %757 : vector<2x4xf32>
    %cst_235 = arith.constant 1.000000e+00 : f32
    %759 = vector.broadcast %cst_235 : f32 to vector<2x4xf32>
    %760 = arith.addf %759, %758 : vector<2x4xf32>
    %cst_236 = arith.constant 1.000000e+00 : f32
    %761 = vector.broadcast %cst_236 : f32 to vector<2x4xf32>
    %762 = arith.divf %761, %760 : vector<2x4xf32>
    %763 = vector.extract_strided_slice %746 {offsets = [0, 8], sizes = [2, 4], strides = [1, 1]} : vector<2x16xf32> to vector<2x4xf32>
    %764 = math.tanh %763 : vector<2x4xf32>
    %765 = vector.extract_strided_slice %746 {offsets = [0, 12], sizes = [2, 4], strides = [1, 1]} : vector<2x16xf32> to vector<2x4xf32>
    %cst_237 = arith.constant 0.000000e+00 : f32
    %766 = vector.broadcast %cst_237 : f32 to vector<2x4xf32>
    %767 = arith.subf %766, %765 : vector<2x4xf32>
    %768 = math.exp %767 : vector<2x4xf32>
    %cst_238 = arith.constant 1.000000e+00 : f32
    %769 = vector.broadcast %cst_238 : f32 to vector<2x4xf32>
    %770 = arith.addf %769, %768 : vector<2x4xf32>
    %cst_239 = arith.constant 1.000000e+00 : f32
    %771 = vector.broadcast %cst_239 : f32 to vector<2x4xf32>
    %772 = arith.divf %771, %770 : vector<2x4xf32>
    %773 = arith.mulf %762, %743 : vector<2x4xf32>
    %774 = arith.mulf %754, %764 : vector<2x4xf32>
    %775 = arith.addf %773, %774 : vector<2x4xf32>
    %776 = math.tanh %775 : vector<2x4xf32>
    %777 = arith.mulf %772, %776 : vector<2x4xf32>
    %778 = vector.extract_strided_slice %741 {offsets = [2, 0], sizes = [2, 16], strides = [1, 1]} : vector<16x16xf32> to vector<2x16xf32>
    %cst_240 = arith.constant dense<0.000000e+00> : vector<2x16xf32>
    %779 = tpu.matmul %777, %736, %cst_240 {dimension_numbers = #tpu.dot_dimension_numbers<[1], [0], [0], [1], [0, 0, 1, 1], [], []>} : vector<2x4xf32>, vector<4x16xf32>, vector<2x16xf32> -> vector<2x16xf32>
    %780 = arith.addf %778, %779 : vector<2x16xf32>
    %781 = vector.extract_strided_slice %780 {offsets = [0, 0], sizes = [2, 4], strides = [1, 1]} : vector<2x16xf32> to vector<2x4xf32>
    %cst_241 = arith.constant 0.000000e+00 : f32
    %782 = vector.broadcast %cst_241 : f32 to vector<2x4xf32>
    %783 = arith.subf %782, %781 : vector<2x4xf32>
    %784 = math.exp %783 : vector<2x4xf32>
    %cst_242 = arith.constant 1.000000e+00 : f32
    %785 = vector.broadcast %cst_242 : f32 to vector<2x4xf32>
    %786 = arith.addf %785, %784 : vector<2x4xf32>
    %cst_243 = arith.constant 1.000000e+00 : f32
    %787 = vector.broadcast %cst_243 : f32 to vector<2x4xf32>
    %788 = arith.divf %787, %786 : vector<2x4xf32>
    %789 = vector.extract_strided_slice %780 {offsets = [0, 4], sizes = [2, 4], strides = [1, 1]} : vector<2x16xf32> to vector<2x4xf32>
    %cst_244 = arith.constant 0.000000e+00 : f32
    %790 = vector.broadcast %cst_244 : f32 to vector<2x4xf32>
    %791 = arith.subf %790, %789 : vector<2x4xf32>
    %792 = math.exp %791 : vector<2x4xf32>
    %cst_245 = arith.constant 1.000000e+00 : f32
    %793 = vector.broadcast %cst_245 : f32 to vector<2x4xf32>
    %794 = arith.addf %793, %792 : vector<2x4xf32>
    %cst_246 = arith.constant 1.000000e+00 : f32
    %795 = vector.broadcast %cst_246 : f32 to vector<2x4xf32>
    %796 = arith.divf %795, %794 : vector<2x4xf32>
    %797 = vector.extract_strided_slice %780 {offsets = [0, 8], sizes = [2, 4], strides = [1, 1]} : vector<2x16xf32> to vector<2x4xf32>
    %798 = math.tanh %797 : vector<2x4xf32>
    %799 = vector.extract_strided_slice %780 {offsets = [0, 12], sizes = [2, 4], strides = [1, 1]} : vector<2x16xf32> to vector<2x4xf32>
    %cst_247 = arith.constant 0.000000e+00 : f32
    %800 = vector.broadcast %cst_247 : f32 to vector<2x4xf32>
    %801 = arith.subf %800, %799 : vector<2x4xf32>
    %802 = math.exp %801 : vector<2x4xf32>
    %cst_248 = arith.constant 1.000000e+00 : f32
    %803 = vector.broadcast %cst_248 : f32 to vector<2x4xf32>
    %804 = arith.addf %803, %802 : vector<2x4xf32>
    %cst_249 = arith.constant 1.000000e+00 : f32
    %805 = vector.broadcast %cst_249 : f32 to vector<2x4xf32>
    %806 = arith.divf %805, %804 : vector<2x4xf32>
    %807 = arith.mulf %796, %775 : vector<2x4xf32>
    %808 = arith.mulf %788, %798 : vector<2x4xf32>
    %809 = arith.addf %807, %808 : vector<2x4xf32>
    %810 = math.tanh %809 : vector<2x4xf32>
    %811 = arith.mulf %806, %810 : vector<2x4xf32>
    %812 = vector.extract_strided_slice %741 {offsets = [4, 0], sizes = [2, 16], strides = [1, 1]} : vector<16x16xf32> to vector<2x16xf32>
    %cst_250 = arith.constant dense<0.000000e+00> : vector<2x16xf32>
    %813 = tpu.matmul %811, %736, %cst_250 {dimension_numbers = #tpu.dot_dimension_numbers<[1], [0], [0], [1], [0, 0, 1, 1], [], []>} : vector<2x4xf32>, vector<4x16xf32>, vector<2x16xf32> -> vector<2x16xf32>
    %814 = arith.addf %812, %813 : vector<2x16xf32>
    %815 = vector.extract_strided_slice %814 {offsets = [0, 0], sizes = [2, 4], strides = [1, 1]} : vector<2x16xf32> to vector<2x4xf32>
    %cst_251 = arith.constant 0.000000e+00 : f32
    %816 = vector.broadcast %cst_251 : f32 to vector<2x4xf32>
    %817 = arith.subf %816, %815 : vector<2x4xf32>
    %818 = math.exp %817 : vector<2x4xf32>
    %cst_252 = arith.constant 1.000000e+00 : f32
    %819 = vector.broadcast %cst_252 : f32 to vector<2x4xf32>
    %820 = arith.addf %819, %818 : vector<2x4xf32>
    %cst_253 = arith.constant 1.000000e+00 : f32
    %821 = vector.broadcast %cst_253 : f32 to vector<2x4xf32>
    %822 = arith.divf %821, %820 : vector<2x4xf32>
    %823 = vector.extract_strided_slice %814 {offsets = [0, 4], sizes = [2, 4], strides = [1, 1]} : vector<2x16xf32> to vector<2x4xf32>
    %cst_254 = arith.constant 0.000000e+00 : f32
    %824 = vector.broadcast %cst_254 : f32 to vector<2x4xf32>
    %825 = arith.subf %824, %823 : vector<2x4xf32>
    %826 = math.exp %825 : vector<2x4xf32>
    %cst_255 = arith.constant 1.000000e+00 : f32
    %827 = vector.broadcast %cst_255 : f32 to vector<2x4xf32>
    %828 = arith.addf %827, %826 : vector<2x4xf32>
    %cst_256 = arith.constant 1.000000e+00 : f32
    %829 = vector.broadcast %cst_256 : f32 to vector<2x4xf32>
    %830 = arith.divf %829, %828 : vector<2x4xf32>
    %831 = vector.extract_strided_slice %814 {offsets = [0, 8], sizes = [2, 4], strides = [1, 1]} : vector<2x16xf32> to vector<2x4xf32>
    %832 = math.tanh %831 : vector<2x4xf32>
    %833 = vector.extract_strided_slice %814 {offsets = [0, 12], sizes = [2, 4], strides = [1, 1]} : vector<2x16xf32> to vector<2x4xf32>
    %cst_257 = arith.constant 0.000000e+00 : f32
    %834 = vector.broadcast %cst_257 : f32 to vector<2x4xf32>
    %835 = arith.subf %834, %833 : vector<2x4xf32>
    %836 = math.exp %835 : vector<2x4xf32>
    %cst_258 = arith.constant 1.000000e+00 : f32
    %837 = vector.broadcast %cst_258 : f32 to vector<2x4xf32>
    %838 = arith.addf %837, %836 : vector<2x4xf32>
    %cst_259 = arith.constant 1.000000e+00 : f32
    %839 = vector.broadcast %cst_259 : f32 to vector<2x4xf32>
    %840 = arith.divf %839, %838 : vector<2x4xf32>
    %841 = arith.mulf %830, %809 : vector<2x4xf32>
    %842 = arith.mulf %822, %832 : vector<2x4xf32>
    %843 = arith.addf %841, %842 : vector<2x4xf32>
    %844 = math.tanh %843 : vector<2x4xf32>
    %845 = arith.mulf %840, %844 : vector<2x4xf32>
    %846 = vector.extract_strided_slice %741 {offsets = [6, 0], sizes = [2, 16], strides = [1, 1]} : vector<16x16xf32> to vector<2x16xf32>
    %cst_260 = arith.constant dense<0.000000e+00> : vector<2x16xf32>
    %847 = tpu.matmul %845, %736, %cst_260 {dimension_numbers = #tpu.dot_dimension_numbers<[1], [0], [0], [1], [0, 0, 1, 1], [], []>} : vector<2x4xf32>, vector<4x16xf32>, vector<2x16xf32> -> vector<2x16xf32>
    %848 = arith.addf %846, %847 : vector<2x16xf32>
    %849 = vector.extract_strided_slice %848 {offsets = [0, 0], sizes = [2, 4], strides = [1, 1]} : vector<2x16xf32> to vector<2x4xf32>
    %cst_261 = arith.constant 0.000000e+00 : f32
    %850 = vector.broadcast %cst_261 : f32 to vector<2x4xf32>
    %851 = arith.subf %850, %849 : vector<2x4xf32>
    %852 = math.exp %851 : vector<2x4xf32>
    %cst_262 = arith.constant 1.000000e+00 : f32
    %853 = vector.broadcast %cst_262 : f32 to vector<2x4xf32>
    %854 = arith.addf %853, %852 : vector<2x4xf32>
    %cst_263 = arith.constant 1.000000e+00 : f32
    %855 = vector.broadcast %cst_263 : f32 to vector<2x4xf32>
    %856 = arith.divf %855, %854 : vector<2x4xf32>
    %857 = vector.extract_strided_slice %848 {offsets = [0, 4], sizes = [2, 4], strides = [1, 1]} : vector<2x16xf32> to vector<2x4xf32>
    %cst_264 = arith.constant 0.000000e+00 : f32
    %858 = vector.broadcast %cst_264 : f32 to vector<2x4xf32>
    %859 = arith.subf %858, %857 : vector<2x4xf32>
    %860 = math.exp %859 : vector<2x4xf32>
    %cst_265 = arith.constant 1.000000e+00 : f32
    %861 = vector.broadcast %cst_265 : f32 to vector<2x4xf32>
    %862 = arith.addf %861, %860 : vector<2x4xf32>
    %cst_266 = arith.constant 1.000000e+00 : f32
    %863 = vector.broadcast %cst_266 : f32 to vector<2x4xf32>
    %864 = arith.divf %863, %862 : vector<2x4xf32>
    %865 = vector.extract_strided_slice %848 {offsets = [0, 8], sizes = [2, 4], strides = [1, 1]} : vector<2x16xf32> to vector<2x4xf32>
    %866 = math.tanh %865 : vector<2x4xf32>
    %867 = vector.extract_strided_slice %848 {offsets = [0, 12], sizes = [2, 4], strides = [1, 1]} : vector<2x16xf32> to vector<2x4xf32>
    %cst_267 = arith.constant 0.000000e+00 : f32
    %868 = vector.broadcast %cst_267 : f32 to vector<2x4xf32>
    %869 = arith.subf %868, %867 : vector<2x4xf32>
    %870 = math.exp %869 : vector<2x4xf32>
    %cst_268 = arith.constant 1.000000e+00 : f32
    %871 = vector.broadcast %cst_268 : f32 to vector<2x4xf32>
    %872 = arith.addf %871, %870 : vector<2x4xf32>
    %cst_269 = arith.constant 1.000000e+00 : f32
    %873 = vector.broadcast %cst_269 : f32 to vector<2x4xf32>
    %874 = arith.divf %873, %872 : vector<2x4xf32>
    %875 = arith.mulf %864, %843 : vector<2x4xf32>
    %876 = arith.mulf %856, %866 : vector<2x4xf32>
    %877 = arith.addf %875, %876 : vector<2x4xf32>
    %878 = math.tanh %877 : vector<2x4xf32>
    %879 = arith.mulf %874, %878 : vector<2x4xf32>
    %880 = vector.extract_strided_slice %741 {offsets = [8, 0], sizes = [2, 16], strides = [1, 1]} : vector<16x16xf32> to vector<2x16xf32>
    %cst_270 = arith.constant dense<0.000000e+00> : vector<2x16xf32>
    %881 = tpu.matmul %879, %736, %cst_270 {dimension_numbers = #tpu.dot_dimension_numbers<[1], [0], [0], [1], [0, 0, 1, 1], [], []>} : vector<2x4xf32>, vector<4x16xf32>, vector<2x16xf32> -> vector<2x16xf32>
    %882 = arith.addf %880, %881 : vector<2x16xf32>
    %883 = vector.extract_strided_slice %882 {offsets = [0, 0], sizes = [2, 4], strides = [1, 1]} : vector<2x16xf32> to vector<2x4xf32>
    %cst_271 = arith.constant 0.000000e+00 : f32
    %884 = vector.broadcast %cst_271 : f32 to vector<2x4xf32>
    %885 = arith.subf %884, %883 : vector<2x4xf32>
    %886 = math.exp %885 : vector<2x4xf32>
    %cst_272 = arith.constant 1.000000e+00 : f32
    %887 = vector.broadcast %cst_272 : f32 to vector<2x4xf32>
    %888 = arith.addf %887, %886 : vector<2x4xf32>
    %cst_273 = arith.constant 1.000000e+00 : f32
    %889 = vector.broadcast %cst_273 : f32 to vector<2x4xf32>
    %890 = arith.divf %889, %888 : vector<2x4xf32>
    %891 = vector.extract_strided_slice %882 {offsets = [0, 4], sizes = [2, 4], strides = [1, 1]} : vector<2x16xf32> to vector<2x4xf32>
    %cst_274 = arith.constant 0.000000e+00 : f32
    %892 = vector.broadcast %cst_274 : f32 to vector<2x4xf32>
    %893 = arith.subf %892, %891 : vector<2x4xf32>
    %894 = math.exp %893 : vector<2x4xf32>
    %cst_275 = arith.constant 1.000000e+00 : f32
    %895 = vector.broadcast %cst_275 : f32 to vector<2x4xf32>
    %896 = arith.addf %895, %894 : vector<2x4xf32>
    %cst_276 = arith.constant 1.000000e+00 : f32
    %897 = vector.broadcast %cst_276 : f32 to vector<2x4xf32>
    %898 = arith.divf %897, %896 : vector<2x4xf32>
    %899 = vector.extract_strided_slice %882 {offsets = [0, 8], sizes = [2, 4], strides = [1, 1]} : vector<2x16xf32> to vector<2x4xf32>
    %900 = math.tanh %899 : vector<2x4xf32>
    %901 = vector.extract_strided_slice %882 {offsets = [0, 12], sizes = [2, 4], strides = [1, 1]} : vector<2x16xf32> to vector<2x4xf32>
    %cst_277 = arith.constant 0.000000e+00 : f32
    %902 = vector.broadcast %cst_277 : f32 to vector<2x4xf32>
    %903 = arith.subf %902, %901 : vector<2x4xf32>
    %904 = math.exp %903 : vector<2x4xf32>
    %cst_278 = arith.constant 1.000000e+00 : f32
    %905 = vector.broadcast %cst_278 : f32 to vector<2x4xf32>
    %906 = arith.addf %905, %904 : vector<2x4xf32>
    %cst_279 = arith.constant 1.000000e+00 : f32
    %907 = vector.broadcast %cst_279 : f32 to vector<2x4xf32>
    %908 = arith.divf %907, %906 : vector<2x4xf32>
    %909 = arith.mulf %898, %877 : vector<2x4xf32>
    %910 = arith.mulf %890, %900 : vector<2x4xf32>
    %911 = arith.addf %909, %910 : vector<2x4xf32>
    %912 = math.tanh %911 : vector<2x4xf32>
    %913 = arith.mulf %908, %912 : vector<2x4xf32>
    %914 = vector.extract_strided_slice %741 {offsets = [10, 0], sizes = [2, 16], strides = [1, 1]} : vector<16x16xf32> to vector<2x16xf32>
    %cst_280 = arith.constant dense<0.000000e+00> : vector<2x16xf32>
    %915 = tpu.matmul %913, %736, %cst_280 {dimension_numbers = #tpu.dot_dimension_numbers<[1], [0], [0], [1], [0, 0, 1, 1], [], []>} : vector<2x4xf32>, vector<4x16xf32>, vector<2x16xf32> -> vector<2x16xf32>
    %916 = arith.addf %914, %915 : vector<2x16xf32>
    %917 = vector.extract_strided_slice %916 {offsets = [0, 0], sizes = [2, 4], strides = [1, 1]} : vector<2x16xf32> to vector<2x4xf32>
    %cst_281 = arith.constant 0.000000e+00 : f32
    %918 = vector.broadcast %cst_281 : f32 to vector<2x4xf32>
    %919 = arith.subf %918, %917 : vector<2x4xf32>
    %920 = math.exp %919 : vector<2x4xf32>
    %cst_282 = arith.constant 1.000000e+00 : f32
    %921 = vector.broadcast %cst_282 : f32 to vector<2x4xf32>
    %922 = arith.addf %921, %920 : vector<2x4xf32>
    %cst_283 = arith.constant 1.000000e+00 : f32
    %923 = vector.broadcast %cst_283 : f32 to vector<2x4xf32>
    %924 = arith.divf %923, %922 : vector<2x4xf32>
    %925 = vector.extract_strided_slice %916 {offsets = [0, 4], sizes = [2, 4], strides = [1, 1]} : vector<2x16xf32> to vector<2x4xf32>
    %cst_284 = arith.constant 0.000000e+00 : f32
    %926 = vector.broadcast %cst_284 : f32 to vector<2x4xf32>
    %927 = arith.subf %926, %925 : vector<2x4xf32>
    %928 = math.exp %927 : vector<2x4xf32>
    %cst_285 = arith.constant 1.000000e+00 : f32
    %929 = vector.broadcast %cst_285 : f32 to vector<2x4xf32>
    %930 = arith.addf %929, %928 : vector<2x4xf32>
    %cst_286 = arith.constant 1.000000e+00 : f32
    %931 = vector.broadcast %cst_286 : f32 to vector<2x4xf32>
    %932 = arith.divf %931, %930 : vector<2x4xf32>
    %933 = vector.extract_strided_slice %916 {offsets = [0, 8], sizes = [2, 4], strides = [1, 1]} : vector<2x16xf32> to vector<2x4xf32>
    %934 = math.tanh %933 : vector<2x4xf32>
    %935 = vector.extract_strided_slice %916 {offsets = [0, 12], sizes = [2, 4], strides = [1, 1]} : vector<2x16xf32> to vector<2x4xf32>
    %cst_287 = arith.constant 0.000000e+00 : f32
    %936 = vector.broadcast %cst_287 : f32 to vector<2x4xf32>
    %937 = arith.subf %936, %935 : vector<2x4xf32>
    %938 = math.exp %937 : vector<2x4xf32>
    %cst_288 = arith.constant 1.000000e+00 : f32
    %939 = vector.broadcast %cst_288 : f32 to vector<2x4xf32>
    %940 = arith.addf %939, %938 : vector<2x4xf32>
    %cst_289 = arith.constant 1.000000e+00 : f32
    %941 = vector.broadcast %cst_289 : f32 to vector<2x4xf32>
    %942 = arith.divf %941, %940 : vector<2x4xf32>
    %943 = arith.mulf %932, %911 : vector<2x4xf32>
    %944 = arith.mulf %924, %934 : vector<2x4xf32>
    %945 = arith.addf %943, %944 : vector<2x4xf32>
    %946 = math.tanh %945 : vector<2x4xf32>
    %947 = arith.mulf %942, %946 : vector<2x4xf32>
    %948 = vector.extract_strided_slice %741 {offsets = [12, 0], sizes = [2, 16], strides = [1, 1]} : vector<16x16xf32> to vector<2x16xf32>
    %cst_290 = arith.constant dense<0.000000e+00> : vector<2x16xf32>
    %949 = tpu.matmul %947, %736, %cst_290 {dimension_numbers = #tpu.dot_dimension_numbers<[1], [0], [0], [1], [0, 0, 1, 1], [], []>} : vector<2x4xf32>, vector<4x16xf32>, vector<2x16xf32> -> vector<2x16xf32>
    %950 = arith.addf %948, %949 : vector<2x16xf32>
    %951 = vector.extract_strided_slice %950 {offsets = [0, 0], sizes = [2, 4], strides = [1, 1]} : vector<2x16xf32> to vector<2x4xf32>
    %cst_291 = arith.constant 0.000000e+00 : f32
    %952 = vector.broadcast %cst_291 : f32 to vector<2x4xf32>
    %953 = arith.subf %952, %951 : vector<2x4xf32>
    %954 = math.exp %953 : vector<2x4xf32>
    %cst_292 = arith.constant 1.000000e+00 : f32
    %955 = vector.broadcast %cst_292 : f32 to vector<2x4xf32>
    %956 = arith.addf %955, %954 : vector<2x4xf32>
    %cst_293 = arith.constant 1.000000e+00 : f32
    %957 = vector.broadcast %cst_293 : f32 to vector<2x4xf32>
    %958 = arith.divf %957, %956 : vector<2x4xf32>
    %959 = vector.extract_strided_slice %950 {offsets = [0, 4], sizes = [2, 4], strides = [1, 1]} : vector<2x16xf32> to vector<2x4xf32>
    %cst_294 = arith.constant 0.000000e+00 : f32
    %960 = vector.broadcast %cst_294 : f32 to vector<2x4xf32>
    %961 = arith.subf %960, %959 : vector<2x4xf32>
    %962 = math.exp %961 : vector<2x4xf32>
    %cst_295 = arith.constant 1.000000e+00 : f32
    %963 = vector.broadcast %cst_295 : f32 to vector<2x4xf32>
    %964 = arith.addf %963, %962 : vector<2x4xf32>
    %cst_296 = arith.constant 1.000000e+00 : f32
    %965 = vector.broadcast %cst_296 : f32 to vector<2x4xf32>
    %966 = arith.divf %965, %964 : vector<2x4xf32>
    %967 = vector.extract_strided_slice %950 {offsets = [0, 8], sizes = [2, 4], strides = [1, 1]} : vector<2x16xf32> to vector<2x4xf32>
    %968 = math.tanh %967 : vector<2x4xf32>
    %969 = vector.extract_strided_slice %950 {offsets = [0, 12], sizes = [2, 4], strides = [1, 1]} : vector<2x16xf32> to vector<2x4xf32>
    %cst_297 = arith.constant 0.000000e+00 : f32
    %970 = vector.broadcast %cst_297 : f32 to vector<2x4xf32>
    %971 = arith.subf %970, %969 : vector<2x4xf32>
    %972 = math.exp %971 : vector<2x4xf32>
    %cst_298 = arith.constant 1.000000e+00 : f32
    %973 = vector.broadcast %cst_298 : f32 to vector<2x4xf32>
    %974 = arith.addf %973, %972 : vector<2x4xf32>
    %cst_299 = arith.constant 1.000000e+00 : f32
    %975 = vector.broadcast %cst_299 : f32 to vector<2x4xf32>
    %976 = arith.divf %975, %974 : vector<2x4xf32>
    %977 = arith.mulf %966, %945 : vector<2x4xf32>
    %978 = arith.mulf %958, %968 : vector<2x4xf32>
    %979 = arith.addf %977, %978 : vector<2x4xf32>
    %980 = math.tanh %979 : vector<2x4xf32>
    %981 = arith.mulf %976, %980 : vector<2x4xf32>
    %982 = vector.extract_strided_slice %741 {offsets = [14, 0], sizes = [2, 16], strides = [1, 1]} : vector<16x16xf32> to vector<2x16xf32>
    %cst_300 = arith.constant dense<0.000000e+00> : vector<2x16xf32>
    %983 = tpu.matmul %981, %736, %cst_300 {dimension_numbers = #tpu.dot_dimension_numbers<[1], [0], [0], [1], [0, 0, 1, 1], [], []>} : vector<2x4xf32>, vector<4x16xf32>, vector<2x16xf32> -> vector<2x16xf32>
    %984 = arith.addf %982, %983 : vector<2x16xf32>
    %985 = vector.extract_strided_slice %984 {offsets = [0, 0], sizes = [2, 4], strides = [1, 1]} : vector<2x16xf32> to vector<2x4xf32>
    %cst_301 = arith.constant 0.000000e+00 : f32
    %986 = vector.broadcast %cst_301 : f32 to vector<2x4xf32>
    %987 = arith.subf %986, %985 : vector<2x4xf32>
    %988 = math.exp %987 : vector<2x4xf32>
    %cst_302 = arith.constant 1.000000e+00 : f32
    %989 = vector.broadcast %cst_302 : f32 to vector<2x4xf32>
    %990 = arith.addf %989, %988 : vector<2x4xf32>
    %cst_303 = arith.constant 1.000000e+00 : f32
    %991 = vector.broadcast %cst_303 : f32 to vector<2x4xf32>
    %992 = arith.divf %991, %990 : vector<2x4xf32>
    %993 = vector.extract_strided_slice %984 {offsets = [0, 4], sizes = [2, 4], strides = [1, 1]} : vector<2x16xf32> to vector<2x4xf32>
    %cst_304 = arith.constant 0.000000e+00 : f32
    %994 = vector.broadcast %cst_304 : f32 to vector<2x4xf32>
    %995 = arith.subf %994, %993 : vector<2x4xf32>
    %996 = math.exp %995 : vector<2x4xf32>
    %cst_305 = arith.constant 1.000000e+00 : f32
    %997 = vector.broadcast %cst_305 : f32 to vector<2x4xf32>
    %998 = arith.addf %997, %996 : vector<2x4xf32>
    %cst_306 = arith.constant 1.000000e+00 : f32
    %999 = vector.broadcast %cst_306 : f32 to vector<2x4xf32>
    %1000 = arith.divf %999, %998 : vector<2x4xf32>
    %1001 = vector.extract_strided_slice %984 {offsets = [0, 8], sizes = [2, 4], strides = [1, 1]} : vector<2x16xf32> to vector<2x4xf32>
    %1002 = math.tanh %1001 : vector<2x4xf32>
    %1003 = vector.extract_strided_slice %984 {offsets = [0, 12], sizes = [2, 4], strides = [1, 1]} : vector<2x16xf32> to vector<2x4xf32>
    %cst_307 = arith.constant 0.000000e+00 : f32
    %1004 = vector.broadcast %cst_307 : f32 to vector<2x4xf32>
    %1005 = arith.subf %1004, %1003 : vector<2x4xf32>
    %1006 = math.exp %1005 : vector<2x4xf32>
    %cst_308 = arith.constant 1.000000e+00 : f32
    %1007 = vector.broadcast %cst_308 : f32 to vector<2x4xf32>
    %1008 = arith.addf %1007, %1006 : vector<2x4xf32>
    %cst_309 = arith.constant 1.000000e+00 : f32
    %1009 = vector.broadcast %cst_309 : f32 to vector<2x4xf32>
    %1010 = arith.divf %1009, %1008 : vector<2x4xf32>
    %1011 = arith.mulf %1000, %979 : vector<2x4xf32>
    %1012 = arith.mulf %992, %1002 : vector<2x4xf32>
    %1013 = arith.addf %1011, %1012 : vector<2x4xf32>
    %1014 = math.tanh %1013 : vector<2x4xf32>
    %1015 = arith.mulf %1010, %1014 : vector<2x4xf32>
    %c48_310 = arith.constant 48 : index
    %c0_311 = arith.constant 0 : index
    %1016 = vector.load %arg3[%c48_310, %c0_311] : memref<72x16xf32, #tpu.memory_space<vmem>>, vector<4x16xf32>
    %c56 = arith.constant 56 : index
    %c0_312 = arith.constant 0 : index
    %1017 = vector.load %arg3[%c56, %c0_312] : memref<72x16xf32, #tpu.memory_space<vmem>>, vector<4x16xf32>
    %c64 = arith.constant 64 : index
    %c0_313 = arith.constant 0 : index
    %1018 = vector.load %arg3[%c64, %c0_313] : memref<72x16xf32, #tpu.memory_space<vmem>>, vector<1x16xf32>
    %1019 = tpu.concatenate %777, %811, %845, %879, %913, %947, %981, %1015 in 0 : vector<2x4xf32>, vector<2x4xf32>, vector<2x4xf32>, vector<2x4xf32>, vector<2x4xf32>, vector<2x4xf32>, vector<2x4xf32>, vector<2x4xf32> -> vector<16x4xf32>
    %cst_314 = arith.constant dense<0.000000e+00> : vector<16x16xf32>
    %1020 = tpu.matmul %1019, %1016, %cst_314 {dimension_numbers = #tpu.dot_dimension_numbers<[1], [0], [0], [1], [0, 0, 1, 1], [], []>} : vector<16x4xf32>, vector<4x16xf32>, vector<16x16xf32> -> vector<16x16xf32>
    %1021 = vector.broadcast %1018 : vector<1x16xf32> to vector<16x16xf32>
    %1022 = arith.addf %1020, %1021 : vector<16x16xf32>
    %cst_315 = arith.constant 0.000000e+00 : f32
    %1023 = vector.broadcast %cst_315 : f32 to vector<2x4xf32>
    %cst_316 = arith.constant 0.000000e+00 : f32
    %1024 = vector.broadcast %cst_316 : f32 to vector<2x4xf32>
    %1025 = vector.extract_strided_slice %1022 {offsets = [0, 0], sizes = [2, 16], strides = [1, 1]} : vector<16x16xf32> to vector<2x16xf32>
    %cst_317 = arith.constant dense<0.000000e+00> : vector<2x16xf32>
    %1026 = tpu.matmul %1023, %1017, %cst_317 {dimension_numbers = #tpu.dot_dimension_numbers<[1], [0], [0], [1], [0, 0, 1, 1], [], []>} : vector<2x4xf32>, vector<4x16xf32>, vector<2x16xf32> -> vector<2x16xf32>
    %1027 = arith.addf %1025, %1026 : vector<2x16xf32>
    %1028 = vector.extract_strided_slice %1027 {offsets = [0, 0], sizes = [2, 4], strides = [1, 1]} : vector<2x16xf32> to vector<2x4xf32>
    %cst_318 = arith.constant 0.000000e+00 : f32
    %1029 = vector.broadcast %cst_318 : f32 to vector<2x4xf32>
    %1030 = arith.subf %1029, %1028 : vector<2x4xf32>
    %1031 = math.exp %1030 : vector<2x4xf32>
    %cst_319 = arith.constant 1.000000e+00 : f32
    %1032 = vector.broadcast %cst_319 : f32 to vector<2x4xf32>
    %1033 = arith.addf %1032, %1031 : vector<2x4xf32>
    %cst_320 = arith.constant 1.000000e+00 : f32
    %1034 = vector.broadcast %cst_320 : f32 to vector<2x4xf32>
    %1035 = arith.divf %1034, %1033 : vector<2x4xf32>
    %1036 = vector.extract_strided_slice %1027 {offsets = [0, 4], sizes = [2, 4], strides = [1, 1]} : vector<2x16xf32> to vector<2x4xf32>
    %cst_321 = arith.constant 0.000000e+00 : f32
    %1037 = vector.broadcast %cst_321 : f32 to vector<2x4xf32>
    %1038 = arith.subf %1037, %1036 : vector<2x4xf32>
    %1039 = math.exp %1038 : vector<2x4xf32>
    %cst_322 = arith.constant 1.000000e+00 : f32
    %1040 = vector.broadcast %cst_322 : f32 to vector<2x4xf32>
    %1041 = arith.addf %1040, %1039 : vector<2x4xf32>
    %cst_323 = arith.constant 1.000000e+00 : f32
    %1042 = vector.broadcast %cst_323 : f32 to vector<2x4xf32>
    %1043 = arith.divf %1042, %1041 : vector<2x4xf32>
    %1044 = vector.extract_strided_slice %1027 {offsets = [0, 8], sizes = [2, 4], strides = [1, 1]} : vector<2x16xf32> to vector<2x4xf32>
    %1045 = math.tanh %1044 : vector<2x4xf32>
    %1046 = vector.extract_strided_slice %1027 {offsets = [0, 12], sizes = [2, 4], strides = [1, 1]} : vector<2x16xf32> to vector<2x4xf32>
    %cst_324 = arith.constant 0.000000e+00 : f32
    %1047 = vector.broadcast %cst_324 : f32 to vector<2x4xf32>
    %1048 = arith.subf %1047, %1046 : vector<2x4xf32>
    %1049 = math.exp %1048 : vector<2x4xf32>
    %cst_325 = arith.constant 1.000000e+00 : f32
    %1050 = vector.broadcast %cst_325 : f32 to vector<2x4xf32>
    %1051 = arith.addf %1050, %1049 : vector<2x4xf32>
    %cst_326 = arith.constant 1.000000e+00 : f32
    %1052 = vector.broadcast %cst_326 : f32 to vector<2x4xf32>
    %1053 = arith.divf %1052, %1051 : vector<2x4xf32>
    %1054 = arith.mulf %1043, %1024 : vector<2x4xf32>
    %1055 = arith.mulf %1035, %1045 : vector<2x4xf32>
    %1056 = arith.addf %1054, %1055 : vector<2x4xf32>
    %1057 = math.tanh %1056 : vector<2x4xf32>
    %1058 = arith.mulf %1053, %1057 : vector<2x4xf32>
    %1059 = vector.extract_strided_slice %1022 {offsets = [2, 0], sizes = [2, 16], strides = [1, 1]} : vector<16x16xf32> to vector<2x16xf32>
    %cst_327 = arith.constant dense<0.000000e+00> : vector<2x16xf32>
    %1060 = tpu.matmul %1058, %1017, %cst_327 {dimension_numbers = #tpu.dot_dimension_numbers<[1], [0], [0], [1], [0, 0, 1, 1], [], []>} : vector<2x4xf32>, vector<4x16xf32>, vector<2x16xf32> -> vector<2x16xf32>
    %1061 = arith.addf %1059, %1060 : vector<2x16xf32>
    %1062 = vector.extract_strided_slice %1061 {offsets = [0, 0], sizes = [2, 4], strides = [1, 1]} : vector<2x16xf32> to vector<2x4xf32>
    %cst_328 = arith.constant 0.000000e+00 : f32
    %1063 = vector.broadcast %cst_328 : f32 to vector<2x4xf32>
    %1064 = arith.subf %1063, %1062 : vector<2x4xf32>
    %1065 = math.exp %1064 : vector<2x4xf32>
    %cst_329 = arith.constant 1.000000e+00 : f32
    %1066 = vector.broadcast %cst_329 : f32 to vector<2x4xf32>
    %1067 = arith.addf %1066, %1065 : vector<2x4xf32>
    %cst_330 = arith.constant 1.000000e+00 : f32
    %1068 = vector.broadcast %cst_330 : f32 to vector<2x4xf32>
    %1069 = arith.divf %1068, %1067 : vector<2x4xf32>
    %1070 = vector.extract_strided_slice %1061 {offsets = [0, 4], sizes = [2, 4], strides = [1, 1]} : vector<2x16xf32> to vector<2x4xf32>
    %cst_331 = arith.constant 0.000000e+00 : f32
    %1071 = vector.broadcast %cst_331 : f32 to vector<2x4xf32>
    %1072 = arith.subf %1071, %1070 : vector<2x4xf32>
    %1073 = math.exp %1072 : vector<2x4xf32>
    %cst_332 = arith.constant 1.000000e+00 : f32
    %1074 = vector.broadcast %cst_332 : f32 to vector<2x4xf32>
    %1075 = arith.addf %1074, %1073 : vector<2x4xf32>
    %cst_333 = arith.constant 1.000000e+00 : f32
    %1076 = vector.broadcast %cst_333 : f32 to vector<2x4xf32>
    %1077 = arith.divf %1076, %1075 : vector<2x4xf32>
    %1078 = vector.extract_strided_slice %1061 {offsets = [0, 8], sizes = [2, 4], strides = [1, 1]} : vector<2x16xf32> to vector<2x4xf32>
    %1079 = math.tanh %1078 : vector<2x4xf32>
    %1080 = vector.extract_strided_slice %1061 {offsets = [0, 12], sizes = [2, 4], strides = [1, 1]} : vector<2x16xf32> to vector<2x4xf32>
    %cst_334 = arith.constant 0.000000e+00 : f32
    %1081 = vector.broadcast %cst_334 : f32 to vector<2x4xf32>
    %1082 = arith.subf %1081, %1080 : vector<2x4xf32>
    %1083 = math.exp %1082 : vector<2x4xf32>
    %cst_335 = arith.constant 1.000000e+00 : f32
    %1084 = vector.broadcast %cst_335 : f32 to vector<2x4xf32>
    %1085 = arith.addf %1084, %1083 : vector<2x4xf32>
    %cst_336 = arith.constant 1.000000e+00 : f32
    %1086 = vector.broadcast %cst_336 : f32 to vector<2x4xf32>
    %1087 = arith.divf %1086, %1085 : vector<2x4xf32>
    %1088 = arith.mulf %1077, %1056 : vector<2x4xf32>
    %1089 = arith.mulf %1069, %1079 : vector<2x4xf32>
    %1090 = arith.addf %1088, %1089 : vector<2x4xf32>
    %1091 = math.tanh %1090 : vector<2x4xf32>
    %1092 = arith.mulf %1087, %1091 : vector<2x4xf32>
    %1093 = vector.extract_strided_slice %1022 {offsets = [4, 0], sizes = [2, 16], strides = [1, 1]} : vector<16x16xf32> to vector<2x16xf32>
    %cst_337 = arith.constant dense<0.000000e+00> : vector<2x16xf32>
    %1094 = tpu.matmul %1092, %1017, %cst_337 {dimension_numbers = #tpu.dot_dimension_numbers<[1], [0], [0], [1], [0, 0, 1, 1], [], []>} : vector<2x4xf32>, vector<4x16xf32>, vector<2x16xf32> -> vector<2x16xf32>
    %1095 = arith.addf %1093, %1094 : vector<2x16xf32>
    %1096 = vector.extract_strided_slice %1095 {offsets = [0, 0], sizes = [2, 4], strides = [1, 1]} : vector<2x16xf32> to vector<2x4xf32>
    %cst_338 = arith.constant 0.000000e+00 : f32
    %1097 = vector.broadcast %cst_338 : f32 to vector<2x4xf32>
    %1098 = arith.subf %1097, %1096 : vector<2x4xf32>
    %1099 = math.exp %1098 : vector<2x4xf32>
    %cst_339 = arith.constant 1.000000e+00 : f32
    %1100 = vector.broadcast %cst_339 : f32 to vector<2x4xf32>
    %1101 = arith.addf %1100, %1099 : vector<2x4xf32>
    %cst_340 = arith.constant 1.000000e+00 : f32
    %1102 = vector.broadcast %cst_340 : f32 to vector<2x4xf32>
    %1103 = arith.divf %1102, %1101 : vector<2x4xf32>
    %1104 = vector.extract_strided_slice %1095 {offsets = [0, 4], sizes = [2, 4], strides = [1, 1]} : vector<2x16xf32> to vector<2x4xf32>
    %cst_341 = arith.constant 0.000000e+00 : f32
    %1105 = vector.broadcast %cst_341 : f32 to vector<2x4xf32>
    %1106 = arith.subf %1105, %1104 : vector<2x4xf32>
    %1107 = math.exp %1106 : vector<2x4xf32>
    %cst_342 = arith.constant 1.000000e+00 : f32
    %1108 = vector.broadcast %cst_342 : f32 to vector<2x4xf32>
    %1109 = arith.addf %1108, %1107 : vector<2x4xf32>
    %cst_343 = arith.constant 1.000000e+00 : f32
    %1110 = vector.broadcast %cst_343 : f32 to vector<2x4xf32>
    %1111 = arith.divf %1110, %1109 : vector<2x4xf32>
    %1112 = vector.extract_strided_slice %1095 {offsets = [0, 8], sizes = [2, 4], strides = [1, 1]} : vector<2x16xf32> to vector<2x4xf32>
    %1113 = math.tanh %1112 : vector<2x4xf32>
    %1114 = vector.extract_strided_slice %1095 {offsets = [0, 12], sizes = [2, 4], strides = [1, 1]} : vector<2x16xf32> to vector<2x4xf32>
    %cst_344 = arith.constant 0.000000e+00 : f32
    %1115 = vector.broadcast %cst_344 : f32 to vector<2x4xf32>
    %1116 = arith.subf %1115, %1114 : vector<2x4xf32>
    %1117 = math.exp %1116 : vector<2x4xf32>
    %cst_345 = arith.constant 1.000000e+00 : f32
    %1118 = vector.broadcast %cst_345 : f32 to vector<2x4xf32>
    %1119 = arith.addf %1118, %1117 : vector<2x4xf32>
    %cst_346 = arith.constant 1.000000e+00 : f32
    %1120 = vector.broadcast %cst_346 : f32 to vector<2x4xf32>
    %1121 = arith.divf %1120, %1119 : vector<2x4xf32>
    %1122 = arith.mulf %1111, %1090 : vector<2x4xf32>
    %1123 = arith.mulf %1103, %1113 : vector<2x4xf32>
    %1124 = arith.addf %1122, %1123 : vector<2x4xf32>
    %1125 = math.tanh %1124 : vector<2x4xf32>
    %1126 = arith.mulf %1121, %1125 : vector<2x4xf32>
    %1127 = vector.extract_strided_slice %1022 {offsets = [6, 0], sizes = [2, 16], strides = [1, 1]} : vector<16x16xf32> to vector<2x16xf32>
    %cst_347 = arith.constant dense<0.000000e+00> : vector<2x16xf32>
    %1128 = tpu.matmul %1126, %1017, %cst_347 {dimension_numbers = #tpu.dot_dimension_numbers<[1], [0], [0], [1], [0, 0, 1, 1], [], []>} : vector<2x4xf32>, vector<4x16xf32>, vector<2x16xf32> -> vector<2x16xf32>
    %1129 = arith.addf %1127, %1128 : vector<2x16xf32>
    %1130 = vector.extract_strided_slice %1129 {offsets = [0, 0], sizes = [2, 4], strides = [1, 1]} : vector<2x16xf32> to vector<2x4xf32>
    %cst_348 = arith.constant 0.000000e+00 : f32
    %1131 = vector.broadcast %cst_348 : f32 to vector<2x4xf32>
    %1132 = arith.subf %1131, %1130 : vector<2x4xf32>
    %1133 = math.exp %1132 : vector<2x4xf32>
    %cst_349 = arith.constant 1.000000e+00 : f32
    %1134 = vector.broadcast %cst_349 : f32 to vector<2x4xf32>
    %1135 = arith.addf %1134, %1133 : vector<2x4xf32>
    %cst_350 = arith.constant 1.000000e+00 : f32
    %1136 = vector.broadcast %cst_350 : f32 to vector<2x4xf32>
    %1137 = arith.divf %1136, %1135 : vector<2x4xf32>
    %1138 = vector.extract_strided_slice %1129 {offsets = [0, 4], sizes = [2, 4], strides = [1, 1]} : vector<2x16xf32> to vector<2x4xf32>
    %cst_351 = arith.constant 0.000000e+00 : f32
    %1139 = vector.broadcast %cst_351 : f32 to vector<2x4xf32>
    %1140 = arith.subf %1139, %1138 : vector<2x4xf32>
    %1141 = math.exp %1140 : vector<2x4xf32>
    %cst_352 = arith.constant 1.000000e+00 : f32
    %1142 = vector.broadcast %cst_352 : f32 to vector<2x4xf32>
    %1143 = arith.addf %1142, %1141 : vector<2x4xf32>
    %cst_353 = arith.constant 1.000000e+00 : f32
    %1144 = vector.broadcast %cst_353 : f32 to vector<2x4xf32>
    %1145 = arith.divf %1144, %1143 : vector<2x4xf32>
    %1146 = vector.extract_strided_slice %1129 {offsets = [0, 8], sizes = [2, 4], strides = [1, 1]} : vector<2x16xf32> to vector<2x4xf32>
    %1147 = math.tanh %1146 : vector<2x4xf32>
    %1148 = vector.extract_strided_slice %1129 {offsets = [0, 12], sizes = [2, 4], strides = [1, 1]} : vector<2x16xf32> to vector<2x4xf32>
    %cst_354 = arith.constant 0.000000e+00 : f32
    %1149 = vector.broadcast %cst_354 : f32 to vector<2x4xf32>
    %1150 = arith.subf %1149, %1148 : vector<2x4xf32>
    %1151 = math.exp %1150 : vector<2x4xf32>
    %cst_355 = arith.constant 1.000000e+00 : f32
    %1152 = vector.broadcast %cst_355 : f32 to vector<2x4xf32>
    %1153 = arith.addf %1152, %1151 : vector<2x4xf32>
    %cst_356 = arith.constant 1.000000e+00 : f32
    %1154 = vector.broadcast %cst_356 : f32 to vector<2x4xf32>
    %1155 = arith.divf %1154, %1153 : vector<2x4xf32>
    %1156 = arith.mulf %1145, %1124 : vector<2x4xf32>
    %1157 = arith.mulf %1137, %1147 : vector<2x4xf32>
    %1158 = arith.addf %1156, %1157 : vector<2x4xf32>
    %1159 = math.tanh %1158 : vector<2x4xf32>
    %1160 = arith.mulf %1155, %1159 : vector<2x4xf32>
    %1161 = vector.extract_strided_slice %1022 {offsets = [8, 0], sizes = [2, 16], strides = [1, 1]} : vector<16x16xf32> to vector<2x16xf32>
    %cst_357 = arith.constant dense<0.000000e+00> : vector<2x16xf32>
    %1162 = tpu.matmul %1160, %1017, %cst_357 {dimension_numbers = #tpu.dot_dimension_numbers<[1], [0], [0], [1], [0, 0, 1, 1], [], []>} : vector<2x4xf32>, vector<4x16xf32>, vector<2x16xf32> -> vector<2x16xf32>
    %1163 = arith.addf %1161, %1162 : vector<2x16xf32>
    %1164 = vector.extract_strided_slice %1163 {offsets = [0, 0], sizes = [2, 4], strides = [1, 1]} : vector<2x16xf32> to vector<2x4xf32>
    %cst_358 = arith.constant 0.000000e+00 : f32
    %1165 = vector.broadcast %cst_358 : f32 to vector<2x4xf32>
    %1166 = arith.subf %1165, %1164 : vector<2x4xf32>
    %1167 = math.exp %1166 : vector<2x4xf32>
    %cst_359 = arith.constant 1.000000e+00 : f32
    %1168 = vector.broadcast %cst_359 : f32 to vector<2x4xf32>
    %1169 = arith.addf %1168, %1167 : vector<2x4xf32>
    %cst_360 = arith.constant 1.000000e+00 : f32
    %1170 = vector.broadcast %cst_360 : f32 to vector<2x4xf32>
    %1171 = arith.divf %1170, %1169 : vector<2x4xf32>
    %1172 = vector.extract_strided_slice %1163 {offsets = [0, 4], sizes = [2, 4], strides = [1, 1]} : vector<2x16xf32> to vector<2x4xf32>
    %cst_361 = arith.constant 0.000000e+00 : f32
    %1173 = vector.broadcast %cst_361 : f32 to vector<2x4xf32>
    %1174 = arith.subf %1173, %1172 : vector<2x4xf32>
    %1175 = math.exp %1174 : vector<2x4xf32>
    %cst_362 = arith.constant 1.000000e+00 : f32
    %1176 = vector.broadcast %cst_362 : f32 to vector<2x4xf32>
    %1177 = arith.addf %1176, %1175 : vector<2x4xf32>
    %cst_363 = arith.constant 1.000000e+00 : f32
    %1178 = vector.broadcast %cst_363 : f32 to vector<2x4xf32>
    %1179 = arith.divf %1178, %1177 : vector<2x4xf32>
    %1180 = vector.extract_strided_slice %1163 {offsets = [0, 8], sizes = [2, 4], strides = [1, 1]} : vector<2x16xf32> to vector<2x4xf32>
    %1181 = math.tanh %1180 : vector<2x4xf32>
    %1182 = vector.extract_strided_slice %1163 {offsets = [0, 12], sizes = [2, 4], strides = [1, 1]} : vector<2x16xf32> to vector<2x4xf32>
    %cst_364 = arith.constant 0.000000e+00 : f32
    %1183 = vector.broadcast %cst_364 : f32 to vector<2x4xf32>
    %1184 = arith.subf %1183, %1182 : vector<2x4xf32>
    %1185 = math.exp %1184 : vector<2x4xf32>
    %cst_365 = arith.constant 1.000000e+00 : f32
    %1186 = vector.broadcast %cst_365 : f32 to vector<2x4xf32>
    %1187 = arith.addf %1186, %1185 : vector<2x4xf32>
    %cst_366 = arith.constant 1.000000e+00 : f32
    %1188 = vector.broadcast %cst_366 : f32 to vector<2x4xf32>
    %1189 = arith.divf %1188, %1187 : vector<2x4xf32>
    %1190 = arith.mulf %1179, %1158 : vector<2x4xf32>
    %1191 = arith.mulf %1171, %1181 : vector<2x4xf32>
    %1192 = arith.addf %1190, %1191 : vector<2x4xf32>
    %1193 = math.tanh %1192 : vector<2x4xf32>
    %1194 = arith.mulf %1189, %1193 : vector<2x4xf32>
    %1195 = vector.extract_strided_slice %1022 {offsets = [10, 0], sizes = [2, 16], strides = [1, 1]} : vector<16x16xf32> to vector<2x16xf32>
    %cst_367 = arith.constant dense<0.000000e+00> : vector<2x16xf32>
    %1196 = tpu.matmul %1194, %1017, %cst_367 {dimension_numbers = #tpu.dot_dimension_numbers<[1], [0], [0], [1], [0, 0, 1, 1], [], []>} : vector<2x4xf32>, vector<4x16xf32>, vector<2x16xf32> -> vector<2x16xf32>
    %1197 = arith.addf %1195, %1196 : vector<2x16xf32>
    %1198 = vector.extract_strided_slice %1197 {offsets = [0, 0], sizes = [2, 4], strides = [1, 1]} : vector<2x16xf32> to vector<2x4xf32>
    %cst_368 = arith.constant 0.000000e+00 : f32
    %1199 = vector.broadcast %cst_368 : f32 to vector<2x4xf32>
    %1200 = arith.subf %1199, %1198 : vector<2x4xf32>
    %1201 = math.exp %1200 : vector<2x4xf32>
    %cst_369 = arith.constant 1.000000e+00 : f32
    %1202 = vector.broadcast %cst_369 : f32 to vector<2x4xf32>
    %1203 = arith.addf %1202, %1201 : vector<2x4xf32>
    %cst_370 = arith.constant 1.000000e+00 : f32
    %1204 = vector.broadcast %cst_370 : f32 to vector<2x4xf32>
    %1205 = arith.divf %1204, %1203 : vector<2x4xf32>
    %1206 = vector.extract_strided_slice %1197 {offsets = [0, 4], sizes = [2, 4], strides = [1, 1]} : vector<2x16xf32> to vector<2x4xf32>
    %cst_371 = arith.constant 0.000000e+00 : f32
    %1207 = vector.broadcast %cst_371 : f32 to vector<2x4xf32>
    %1208 = arith.subf %1207, %1206 : vector<2x4xf32>
    %1209 = math.exp %1208 : vector<2x4xf32>
    %cst_372 = arith.constant 1.000000e+00 : f32
    %1210 = vector.broadcast %cst_372 : f32 to vector<2x4xf32>
    %1211 = arith.addf %1210, %1209 : vector<2x4xf32>
    %cst_373 = arith.constant 1.000000e+00 : f32
    %1212 = vector.broadcast %cst_373 : f32 to vector<2x4xf32>
    %1213 = arith.divf %1212, %1211 : vector<2x4xf32>
    %1214 = vector.extract_strided_slice %1197 {offsets = [0, 8], sizes = [2, 4], strides = [1, 1]} : vector<2x16xf32> to vector<2x4xf32>
    %1215 = math.tanh %1214 : vector<2x4xf32>
    %1216 = vector.extract_strided_slice %1197 {offsets = [0, 12], sizes = [2, 4], strides = [1, 1]} : vector<2x16xf32> to vector<2x4xf32>
    %cst_374 = arith.constant 0.000000e+00 : f32
    %1217 = vector.broadcast %cst_374 : f32 to vector<2x4xf32>
    %1218 = arith.subf %1217, %1216 : vector<2x4xf32>
    %1219 = math.exp %1218 : vector<2x4xf32>
    %cst_375 = arith.constant 1.000000e+00 : f32
    %1220 = vector.broadcast %cst_375 : f32 to vector<2x4xf32>
    %1221 = arith.addf %1220, %1219 : vector<2x4xf32>
    %cst_376 = arith.constant 1.000000e+00 : f32
    %1222 = vector.broadcast %cst_376 : f32 to vector<2x4xf32>
    %1223 = arith.divf %1222, %1221 : vector<2x4xf32>
    %1224 = arith.mulf %1213, %1192 : vector<2x4xf32>
    %1225 = arith.mulf %1205, %1215 : vector<2x4xf32>
    %1226 = arith.addf %1224, %1225 : vector<2x4xf32>
    %1227 = math.tanh %1226 : vector<2x4xf32>
    %1228 = arith.mulf %1223, %1227 : vector<2x4xf32>
    %1229 = vector.extract_strided_slice %1022 {offsets = [12, 0], sizes = [2, 16], strides = [1, 1]} : vector<16x16xf32> to vector<2x16xf32>
    %cst_377 = arith.constant dense<0.000000e+00> : vector<2x16xf32>
    %1230 = tpu.matmul %1228, %1017, %cst_377 {dimension_numbers = #tpu.dot_dimension_numbers<[1], [0], [0], [1], [0, 0, 1, 1], [], []>} : vector<2x4xf32>, vector<4x16xf32>, vector<2x16xf32> -> vector<2x16xf32>
    %1231 = arith.addf %1229, %1230 : vector<2x16xf32>
    %1232 = vector.extract_strided_slice %1231 {offsets = [0, 0], sizes = [2, 4], strides = [1, 1]} : vector<2x16xf32> to vector<2x4xf32>
    %cst_378 = arith.constant 0.000000e+00 : f32
    %1233 = vector.broadcast %cst_378 : f32 to vector<2x4xf32>
    %1234 = arith.subf %1233, %1232 : vector<2x4xf32>
    %1235 = math.exp %1234 : vector<2x4xf32>
    %cst_379 = arith.constant 1.000000e+00 : f32
    %1236 = vector.broadcast %cst_379 : f32 to vector<2x4xf32>
    %1237 = arith.addf %1236, %1235 : vector<2x4xf32>
    %cst_380 = arith.constant 1.000000e+00 : f32
    %1238 = vector.broadcast %cst_380 : f32 to vector<2x4xf32>
    %1239 = arith.divf %1238, %1237 : vector<2x4xf32>
    %1240 = vector.extract_strided_slice %1231 {offsets = [0, 4], sizes = [2, 4], strides = [1, 1]} : vector<2x16xf32> to vector<2x4xf32>
    %cst_381 = arith.constant 0.000000e+00 : f32
    %1241 = vector.broadcast %cst_381 : f32 to vector<2x4xf32>
    %1242 = arith.subf %1241, %1240 : vector<2x4xf32>
    %1243 = math.exp %1242 : vector<2x4xf32>
    %cst_382 = arith.constant 1.000000e+00 : f32
    %1244 = vector.broadcast %cst_382 : f32 to vector<2x4xf32>
    %1245 = arith.addf %1244, %1243 : vector<2x4xf32>
    %cst_383 = arith.constant 1.000000e+00 : f32
    %1246 = vector.broadcast %cst_383 : f32 to vector<2x4xf32>
    %1247 = arith.divf %1246, %1245 : vector<2x4xf32>
    %1248 = vector.extract_strided_slice %1231 {offsets = [0, 8], sizes = [2, 4], strides = [1, 1]} : vector<2x16xf32> to vector<2x4xf32>
    %1249 = math.tanh %1248 : vector<2x4xf32>
    %1250 = vector.extract_strided_slice %1231 {offsets = [0, 12], sizes = [2, 4], strides = [1, 1]} : vector<2x16xf32> to vector<2x4xf32>
    %cst_384 = arith.constant 0.000000e+00 : f32
    %1251 = vector.broadcast %cst_384 : f32 to vector<2x4xf32>
    %1252 = arith.subf %1251, %1250 : vector<2x4xf32>
    %1253 = math.exp %1252 : vector<2x4xf32>
    %cst_385 = arith.constant 1.000000e+00 : f32
    %1254 = vector.broadcast %cst_385 : f32 to vector<2x4xf32>
    %1255 = arith.addf %1254, %1253 : vector<2x4xf32>
    %cst_386 = arith.constant 1.000000e+00 : f32
    %1256 = vector.broadcast %cst_386 : f32 to vector<2x4xf32>
    %1257 = arith.divf %1256, %1255 : vector<2x4xf32>
    %1258 = arith.mulf %1247, %1226 : vector<2x4xf32>
    %1259 = arith.mulf %1239, %1249 : vector<2x4xf32>
    %1260 = arith.addf %1258, %1259 : vector<2x4xf32>
    %1261 = math.tanh %1260 : vector<2x4xf32>
    %1262 = arith.mulf %1257, %1261 : vector<2x4xf32>
    %1263 = vector.extract_strided_slice %1022 {offsets = [14, 0], sizes = [2, 16], strides = [1, 1]} : vector<16x16xf32> to vector<2x16xf32>
    %cst_387 = arith.constant dense<0.000000e+00> : vector<2x16xf32>
    %1264 = tpu.matmul %1262, %1017, %cst_387 {dimension_numbers = #tpu.dot_dimension_numbers<[1], [0], [0], [1], [0, 0, 1, 1], [], []>} : vector<2x4xf32>, vector<4x16xf32>, vector<2x16xf32> -> vector<2x16xf32>
    %1265 = arith.addf %1263, %1264 : vector<2x16xf32>
    %1266 = vector.extract_strided_slice %1265 {offsets = [0, 0], sizes = [2, 4], strides = [1, 1]} : vector<2x16xf32> to vector<2x4xf32>
    %cst_388 = arith.constant 0.000000e+00 : f32
    %1267 = vector.broadcast %cst_388 : f32 to vector<2x4xf32>
    %1268 = arith.subf %1267, %1266 : vector<2x4xf32>
    %1269 = math.exp %1268 : vector<2x4xf32>
    %cst_389 = arith.constant 1.000000e+00 : f32
    %1270 = vector.broadcast %cst_389 : f32 to vector<2x4xf32>
    %1271 = arith.addf %1270, %1269 : vector<2x4xf32>
    %cst_390 = arith.constant 1.000000e+00 : f32
    %1272 = vector.broadcast %cst_390 : f32 to vector<2x4xf32>
    %1273 = arith.divf %1272, %1271 : vector<2x4xf32>
    %1274 = vector.extract_strided_slice %1265 {offsets = [0, 4], sizes = [2, 4], strides = [1, 1]} : vector<2x16xf32> to vector<2x4xf32>
    %cst_391 = arith.constant 0.000000e+00 : f32
    %1275 = vector.broadcast %cst_391 : f32 to vector<2x4xf32>
    %1276 = arith.subf %1275, %1274 : vector<2x4xf32>
    %1277 = math.exp %1276 : vector<2x4xf32>
    %cst_392 = arith.constant 1.000000e+00 : f32
    %1278 = vector.broadcast %cst_392 : f32 to vector<2x4xf32>
    %1279 = arith.addf %1278, %1277 : vector<2x4xf32>
    %cst_393 = arith.constant 1.000000e+00 : f32
    %1280 = vector.broadcast %cst_393 : f32 to vector<2x4xf32>
    %1281 = arith.divf %1280, %1279 : vector<2x4xf32>
    %1282 = vector.extract_strided_slice %1265 {offsets = [0, 8], sizes = [2, 4], strides = [1, 1]} : vector<2x16xf32> to vector<2x4xf32>
    %1283 = math.tanh %1282 : vector<2x4xf32>
    %1284 = vector.extract_strided_slice %1265 {offsets = [0, 12], sizes = [2, 4], strides = [1, 1]} : vector<2x16xf32> to vector<2x4xf32>
    %cst_394 = arith.constant 0.000000e+00 : f32
    %1285 = vector.broadcast %cst_394 : f32 to vector<2x4xf32>
    %1286 = arith.subf %1285, %1284 : vector<2x4xf32>
    %1287 = math.exp %1286 : vector<2x4xf32>
    %cst_395 = arith.constant 1.000000e+00 : f32
    %1288 = vector.broadcast %cst_395 : f32 to vector<2x4xf32>
    %1289 = arith.addf %1288, %1287 : vector<2x4xf32>
    %cst_396 = arith.constant 1.000000e+00 : f32
    %1290 = vector.broadcast %cst_396 : f32 to vector<2x4xf32>
    %1291 = arith.divf %1290, %1289 : vector<2x4xf32>
    %1292 = arith.mulf %1281, %1260 : vector<2x4xf32>
    %1293 = arith.mulf %1273, %1283 : vector<2x4xf32>
    %1294 = arith.addf %1292, %1293 : vector<2x4xf32>
    %1295 = math.tanh %1294 : vector<2x4xf32>
    %1296 = arith.mulf %1291, %1295 : vector<2x4xf32>
    %c0_397 = arith.constant 0 : index
    %c0_398 = arith.constant 0 : index
    %1297 = vector.load %arg10[%c0_397, %c0_398] : memref<2x32xf32, #tpu.memory_space<vmem>>, vector<2x32xf32>
    tpu.vector_store %arg10[%c0_397, %c0_398], %608 {strides = array<i32>} : memref<2x32xf32, #tpu.memory_space<vmem>>, vector<2x32xf32>,
    %c0_399 = arith.constant 0 : index
    %c0_400 = arith.constant 0 : index
    %1298 = vector.load %arg9[%c0_399, %c0_400] : memref<2x3xf32, #tpu.memory_space<vmem>>, vector<2x3xf32>
    tpu.vector_store %arg9[%c0_399, %c0_400], %658 {strides = array<i32>} : memref<2x3xf32, #tpu.memory_space<vmem>>, vector<2x3xf32>,
    %c0_401 = arith.constant 0 : index
    %c0_402 = arith.constant 0 : index
    %1299 = vector.load %arg11[%c0_401, %c0_402] : memref<2x32xf32, #tpu.memory_space<vmem>>, vector<2x32xf32>
    tpu.vector_store %arg11[%c0_401, %c0_402], %719 {strides = array<i32>} : memref<2x32xf32, #tpu.memory_space<vmem>>, vector<2x32xf32>,
    %c0_403 = arith.constant 0 : index
    %c0_404 = arith.constant 0 : index
    %1300 = vector.load %arg8[%c0_403, %c0_404] : memref<2x1xf32, #tpu.memory_space<vmem>>, vector<2x1xf32>
    tpu.vector_store %arg8[%c0_403, %c0_404], %720 {strides = array<i32>} : memref<2x1xf32, #tpu.memory_space<vmem>>, vector<2x1xf32>,
    %c0_405 = arith.constant 0 : index
    %c0_406 = arith.constant 0 : index
    %c0_407 = arith.constant 0 : index
    %1301 = vector.load %arg7[%c0_405, %c0_406, %c0_407] : memref<2x8x4xf32, #tpu.memory_space<vmem>>, vector<2x1x4xf32>
    %1302 = vector.shape_cast %1301 : vector<2x1x4xf32> to vector<2x4xf32>
    %1303 = vector.shape_cast %1058 : vector<2x4xf32> to vector<2x1x4xf32>
    tpu.vector_store %arg7[%c0_405, %c0_406, %c0_407], %1303 {strides = array<i32>} : memref<2x8x4xf32, #tpu.memory_space<vmem>>, vector<2x1x4xf32>,
    %c0_408 = arith.constant 0 : index
    %c1 = arith.constant 1 : index
    %c0_409 = arith.constant 0 : index
    %1304 = vector.load %arg7[%c0_408, %c1, %c0_409] : memref<2x8x4xf32, #tpu.memory_space<vmem>>, vector<2x1x4xf32>
    %1305 = vector.shape_cast %1304 : vector<2x1x4xf32> to vector<2x4xf32>
    %1306 = vector.shape_cast %1092 : vector<2x4xf32> to vector<2x1x4xf32>
    tpu.vector_store %arg7[%c0_408, %c1, %c0_409], %1306 {strides = array<i32>} : memref<2x8x4xf32, #tpu.memory_space<vmem>>, vector<2x1x4xf32>,
    %c0_410 = arith.constant 0 : index
    %c2 = arith.constant 2 : index
    %c0_411 = arith.constant 0 : index
    %1307 = vector.load %arg7[%c0_410, %c2, %c0_411] : memref<2x8x4xf32, #tpu.memory_space<vmem>>, vector<2x1x4xf32>
    %1308 = vector.shape_cast %1307 : vector<2x1x4xf32> to vector<2x4xf32>
    %1309 = vector.shape_cast %1126 : vector<2x4xf32> to vector<2x1x4xf32>
    tpu.vector_store %arg7[%c0_410, %c2, %c0_411], %1309 {strides = array<i32>} : memref<2x8x4xf32, #tpu.memory_space<vmem>>, vector<2x1x4xf32>,
    %c0_412 = arith.constant 0 : index
    %c3 = arith.constant 3 : index
    %c0_413 = arith.constant 0 : index
    %1310 = vector.load %arg7[%c0_412, %c3, %c0_413] : memref<2x8x4xf32, #tpu.memory_space<vmem>>, vector<2x1x4xf32>
    %1311 = vector.shape_cast %1310 : vector<2x1x4xf32> to vector<2x4xf32>
    %1312 = vector.shape_cast %1160 : vector<2x4xf32> to vector<2x1x4xf32>
    tpu.vector_store %arg7[%c0_412, %c3, %c0_413], %1312 {strides = array<i32>} : memref<2x8x4xf32, #tpu.memory_space<vmem>>, vector<2x1x4xf32>,
    %c0_414 = arith.constant 0 : index
    %c4 = arith.constant 4 : index
    %c0_415 = arith.constant 0 : index
    %1313 = vector.load %arg7[%c0_414, %c4, %c0_415] : memref<2x8x4xf32, #tpu.memory_space<vmem>>, vector<2x1x4xf32>
    %1314 = vector.shape_cast %1313 : vector<2x1x4xf32> to vector<2x4xf32>
    %1315 = vector.shape_cast %1194 : vector<2x4xf32> to vector<2x1x4xf32>
    tpu.vector_store %arg7[%c0_414, %c4, %c0_415], %1315 {strides = array<i32>} : memref<2x8x4xf32, #tpu.memory_space<vmem>>, vector<2x1x4xf32>,
    %c0_416 = arith.constant 0 : index
    %c5 = arith.constant 5 : index
    %c0_417 = arith.constant 0 : index
    %1316 = vector.load %arg7[%c0_416, %c5, %c0_417] : memref<2x8x4xf32, #tpu.memory_space<vmem>>, vector<2x1x4xf32>
    %1317 = vector.shape_cast %1316 : vector<2x1x4xf32> to vector<2x4xf32>
    %1318 = vector.shape_cast %1228 : vector<2x4xf32> to vector<2x1x4xf32>
    tpu.vector_store %arg7[%c0_416, %c5, %c0_417], %1318 {strides = array<i32>} : memref<2x8x4xf32, #tpu.memory_space<vmem>>, vector<2x1x4xf32>,
    %c0_418 = arith.constant 0 : index
    %c6 = arith.constant 6 : index
    %c0_419 = arith.constant 0 : index
    %1319 = vector.load %arg7[%c0_418, %c6, %c0_419] : memref<2x8x4xf32, #tpu.memory_space<vmem>>, vector<2x1x4xf32>
    %1320 = vector.shape_cast %1319 : vector<2x1x4xf32> to vector<2x4xf32>
    %1321 = vector.shape_cast %1262 : vector<2x4xf32> to vector<2x1x4xf32>
    tpu.vector_store %arg7[%c0_418, %c6, %c0_419], %1321 {strides = array<i32>} : memref<2x8x4xf32, #tpu.memory_space<vmem>>, vector<2x1x4xf32>,
    %c0_420 = arith.constant 0 : index
    %c7 = arith.constant 7 : index
    %c0_421 = arith.constant 0 : index
    %1322 = vector.load %arg7[%c0_420, %c7, %c0_421] : memref<2x8x4xf32, #tpu.memory_space<vmem>>, vector<2x1x4xf32>
    %1323 = vector.shape_cast %1322 : vector<2x1x4xf32> to vector<2x4xf32>
    %1324 = vector.shape_cast %1296 : vector<2x4xf32> to vector<2x1x4xf32>
    tpu.vector_store %arg7[%c0_420, %c7, %c0_421], %1324 {strides = array<i32>} : memref<2x8x4xf32, #tpu.memory_space<vmem>>, vector<2x1x4xf32>,
    return
  }
}

</mosaic_0001>

<bundles_post_ra>
// kernel: _lambda_.1
= control target key start
LH: loop header
LB: loop body
LE: loop exit
PB: predicated region body
PF: predicated region fallthrough
CT: control target
= control target key end

     0   :  { %17 = vsyncpa [#allocation3], 0  ;;  %s4609_s0 = inlined_call_operand.vmem [shape: f32[2,8,4], index: 0, kind: input, shape index: {}]   ;;  %s4610_s1 = inlined_call_operand.vmem [shape: f32[2,1], index: 1, kind: input, shape index: {}]   ;;  %s4611_s2 = inlined_call_operand.vmem [shape: f32[120,128], index: 2, kind: input, shape index: {}]   ;;  %s4612_s3 = inlined_call_operand.vmem [shape: f32[72,16], index: 3, kind: input, shape index: {}]   ;;  %s4613_s4 = inlined_call_operand.vmem [shape: f32[264,32], index: 4, kind: input, shape index: {}]   ;;  %s4614_s5 = inlined_call_operand.hbm [shape: f32[40,256], index: 5, kind: input, shape index: {}]   ;;  %s4615_s6 = inlined_call_operand.vmem [shape: f32[192,128], index: 6, kind: input, shape index: {}]   ;;  %s4616_s7 = inlined_call_operand.vmem [shape: f32[2,8,4], index: 7, kind: output, shape index: {0}]   ;;  %s4617_s8 = inlined_call_operand.vmem [shape: f32[2,1], index: 8, kind: output, shape index: {1}]   ;;  %s4618_s9 = inlined_call_operand.hbm [shape: f32[2,3], index: 9, kind: output, shape index: {2}]   ;;  %s4619_s10 = inlined_call_operand.hbm [shape: f32[2,32], index: 10, kind: output, shape index: {3}]   ;;  %s4620_s11 = inlined_call_operand.hbm [shape: f32[2,32], index: 11, kind: output, shape index: {4}]  }
   0x1   :  { %18 = vsyncpa [#allocation4], 0 }
   0x2   :  { %19 = vsyncpa [#allocation7], 0  ;;  %s34_s19 = sshll.u32 %s4614_s5, 4  ;;  %s3647_s20 = smov [#allocation2]   ;;  %s35_s19 = int_to_ptr.hbm [resolvable:$true] %s34_s19 }
   0x3   :  { %s36_s21 = sshll.u32 %s3647_s20, 4  ;;  %s3648_s22 = smov 256   ;;  %s37_s21 = int_to_ptr.vmem [resolvable:$true] %s36_s21 }
   0x4   :  { %s3649_s23 = smov 16  }
   0x5   :  { %42 = dma.hbm_to_vmem [thread:$0]  %s35_s19, 1280, %s37_s21, [#allocation3], %s3648_s22, %s3648_s22, %s3649_s23  }
   0x6   :  { %3641 = dma.done.wait [#allocation3], 1280  }
   0x7   :  { %3642 = vsyncadd [#allocation3], 4294966016  ;;  %vm96_vm0 = vcmask 1043456   ;;  %v56_v0 = vld [vmem:[%s4611_s2 + $0x20] sm:$0xff]  ;;  %v55_v1 = vld [vmem:[%s4611_s2 + $0x18] sm:$0xff]  ;;  %vm61_vm1 = vcmask 1041409  }
   0x8   :  { %v52_v2 = vld [vmem:[%s4611_s2] sm:$0xf]  ;;  %vm66_vm2 = vcmask 1043459   ;;  %153 = vmatpush.msra.mxu1 %v56_v0  ;;  %v3743_v4 = vld [vmem:[%s4609_s0 + $0x8] sm:$0xff]  ;;  %vm71_vm3 = vcmask 1045509   ;;  %vm76_vm4 = vcmask 1047559   ;;  %216 = vmatpush.msra.mxu2 %v56_v0 }
   0x9   :  { %3144 = vmatpush.msk.msra.mxu0 %vm96_vm0, %v52_v2  ;;  %v3738_v3 = vld [vmem:[%s4609_s0] sm:$0xff]  ;;  %vm94_vm5 = vcmask 1041408   ;;  %vm98_vm6 = vcmask 1045504   ;;  %v54_v5 = vld [vmem:[%s4611_s2 + $0x10] sm:$0xff]  ;;  %v60_v6 = vrot.slane %v3743_v4, 7  ;;  %v65_v8 = vrot.slane %v3743_v4, 6  ;;  %286 = vmatpush.msra.mxu3 %v56_v0 }
   0xa   :  { %v64_v7 = vrot.slane %v3738_v3, 7  ;;  %v69_v9 = vrot.slane %v3738_v3, 6  ;;  %154 = vmatpush.msra.mxu1 %v55_v1  ;;  %v70_v10 = vrot.slane %v3743_v4, 5  ;;  %v74_v11 = vrot.slane %v3738_v3, 5  ;;  %v53_v15 = vld [vmem:[%s4611_s2 + $0x8] sm:$0xff]  ;;  %217 = vmatpush.msra.mxu2 %v55_v1  ;;  %s3651_s19 = smov 64  }
   0xb   :  { %v75_v12 = vrot.slane %v3743_v4, 4  ;;  %vm104_vm7 = vcmask 31744   ;;  %562 = vmatpush.msrb.mxu0 %v56_v0  ;;  %v62_v13 = vsel %vm61_vm1, %v60_v6, %v3738_v3  ;;  %287 = vmatpush.msra.mxu3 %v55_v1  ;;  %v3650_v21 = vmov 0.0   ;;  %v3771_v22 = vld [vmem:[%s4611_s2 + $0x28] ss:$0 sm:$0xff]  ;;  %s3652_s20 = smov 32  }
   0xc   :  { %v67_v14 = vsel %vm66_vm2, %v65_v8, %v64_v7  ;;  %155 = vmatpush.msra.mxu1 %v54_v5  ;;  %v72_v16 = vsel %vm71_vm3, %v70_v10, %v69_v9  ;;  %218 = vmatpush.msra.mxu2 %v54_v5  ;;  %vm137_vm12 = vcmask 261120   ;;  %s3655_s25 = smov 120   ;;  %s3656_s26 = smov 4  }
   0xd   :  { %v77_v17 = vsel %vm76_vm4, %v75_v12, %v74_v11  ;;  %v95_v18 = vsel %vm94_vm5, %v62_v13, %v67_v14  ;;  %563 = vmatpush.msrb.mxu0 %v55_v1  ;;  %288 = vmatpush.msra.mxu3 %v54_v5  ;;  %s3657_s27 = smov 8   ;;  %s3658_s28 = smov 116  }
   0xe   :  { %v97_v19 = vsel %vm96_vm0, %v95_v18, %v72_v16  ;;  %156 = vmatpush.msra.mxu1 %v53_v15  ;;  %219 = vmatpush.msra.mxu2 %v53_v15  ;;  %s3110_s22 = sshll.u32 %s4619_s10, 4  ;;  %s3659_s23 = smov [#allocation6]   ;;  %s3111_s22 = int_to_ptr.hbm [resolvable:$true] %s3110_s22 }
   0xf   :  { %v99_v20 = vsel %vm98_vm6, %v97_v19, %v77_v17  ;;  %564 = vmatpush.msrb.mxu0 %v54_v5  ;;  %157 = vmatmul.f32.vlgmr.msra.gmra.mxu1 %v3650_v21  ;;  %s3108_s24 = sshll.u32 %s3659_s23, 4  ;;  %s3660_s30 = smov [#allocation5]   ;;  %s3109_s24 = int_to_ptr.vmem [resolvable:$true] %s3108_s24 }
  0x10   :  { %3145 = vmatmul.msk.f32.vlgmr.msra.gmra.mxu0 %vm104_vm7, %v99_v20  ;;  %289 = vmatpush.msra.mxu3 %v53_v15  ;;  %s3097_s12 = sshll.u32 %s3660_s30, 4  ;;  %s3661_s13 = smov [#allocation8]   ;;  %s3098_s12 = int_to_ptr.vmem [resolvable:$true] %s3097_s12 }
  0x11   :  { %356 = vmatpush.msrb.mxu1 %v56_v0  ;;  %426 = vmatpush.msrb.mxu2 %v56_v0  ;;  %s3121_s15 = sshll.u32 %s4620_s11, 4  ;;  %s3122_s15 = int_to_ptr.hbm [resolvable:$true] %s3121_s15 }
  0x12   :  { %492 = vmatpush.msrb.mxu3 %v56_v0  ;;  %565 = vmatpush.msrb.mxu0 %v53_v15 }
  0x13   :  { %357 = vmatpush.msrb.mxu1 %v55_v1  ;;  %427 = vmatpush.msrb.mxu2 %v55_v1 }
  0x14   :  { %493 = vmatpush.msrb.mxu3 %v55_v1 }
  0x15   :  { %358 = vmatpush.msrb.mxu1 %v54_v5  ;;  %428 = vmatpush.msrb.mxu2 %v54_v5 }
  0x16   :  { %494 = vmatpush.msrb.mxu3 %v54_v5 }
  0x17   :  { %359 = vmatpush.msrb.mxu1 %v53_v15  ;;  %429 = vmatpush.msrb.mxu2 %v53_v15 }
  0x18   :  { %495 = vmatpush.msrb.mxu3 %v53_v15 }
  0x19   :  { %632 = vmatpush.msra.mxu1 %v56_v0 }
  0x1b   :  { %633 = vmatpush.msra.mxu1 %v55_v1 }
  0x1d   :  { %634 = vmatpush.msra.mxu1 %v54_v5 }
  0x1f   :  { %635 = vmatpush.msra.mxu1 %v53_v15 }
  0x8c   :  { %v158_v24 = vpop.f32.mrf.mxu1 }
  0x8d   :  { %v131_v23 = vpop.f32.mrf.mxu0 }
  0x8e   :  { %v3774_v25 = vadd.f32 %v3771_v22, %v131_v23 }
  0x90   :  { %v161_v26 = vadd.f32 %v158_v24, %v3774_v25 }
  0x92   :  { %3245 = vtanh.f32 %v161_v26  ;;  %v162_v28 = vsub.f32 0.0, %v161_v26 }
  0x94   :  { %v163_v29 = vmul.f32 1.442695, %v162_v28 }
  0x96   :  { %3247 = vpow2.f32 %v163_v29 }
  0x98   :  { %v3246_v27 = vpop.eup %3245 }
  0x99   :  { %184 = vrot.lane.b32.xlu0 %v3246_v27, %s3651_s19 }
  0x9c   :  { %v3248_v30 = vpop.eup %3247 }
  0x9d   :  { %v165_v31 = vadd.f32 1.0, %v3248_v30 }
  0x9f   :  { %3249 = vrcp.f32 %v165_v31  ;;  %v177_v37 = vand.u32 2147483648, %v165_v31  ;;  %vm171_vm9 = vweird.f32 %v165_v31  ;;  %v175_v38 = vand.u32 2147483647, %v165_v31 }
  0xa1   :  { %v178_v40 = vor.u32 1.1754944e-38, %v177_v37  ;;  %vm176_vm11 = vcmp.eq.f32.partialorder %v175_v38, 8.507059e+37 }
  0xa5   :  { %v3250_v32 = vpop.eup %3249 }
  0xa6   :  { %v167_v33 = vmul.f32 %v3250_v32, %v165_v31  ;;  %vm172_vm8 = vweird.f32 %v3250_v32 }
  0xa7   :  { %vm173_vm10 = vmor %vm171_vm9, %vm172_vm8 }
  0xa8   :  { %v168_v34 = vsub.f32 1.0, %v167_v33 }
  0xaa   :  { %v169_v35 = vmul.f32 %v3250_v32, %v168_v34 }
  0xac   :  { %v170_v36 = vadd.f32 %v3250_v32, %v169_v35 }
  0xae   :  { %v174_v39 = vsel %vm173_vm10, %v3250_v32, %v170_v36 }
  0xaf   :  { %v179_v42 = vsel %vm176_vm11, %v178_v40, %v174_v39 }
  0xb0   :  { %v182_v44 = vmul.f32 0.0, %v179_v42 }
 0x10b   :  { %v185_v41 = vpop.permute.xlu0 %184 }
 0x10c   :  { %v187_v43 = vmul.f32 %v185_v41, %v179_v42 }
 0x10e   :  { %189 = vrot.lane.b32.xlu0 %v187_v43, %s3652_s20 }
 0x180   :  { %v190_v45 = vpop.permute.xlu0 %189 }
 0x181   :  { %v192_v46 = vadd.f32 %v190_v45, %v182_v44 }
 0x183   :  { %3251 = vtanh.f32 %v192_v46  ;;  %v249_v9 = vrot.slane %v192_v46, 6 }
 0x189   :  { %v3252_v47 = vpop.eup %3251 }
 0x18a   :  { %195 = vrot.lane.b32.xlu1 %v3252_v47, %s3651_s19 }
 0x1fc   :  { %v196_v48 = vpop.permute.xlu1 %195 }
 0x1fd   :  { %v3780_v49 = vmul.f32 %v196_v48, %v179_v42 }
 0x1ff   :  { %200 = vrot.lane.b32.xlu1 %v3780_v49, %s3652_s20 }
 0x271   :  { %v201_v50 = vpop.permute.xlu1 %200 }
 0x272   :  { %3147 = vmatmul.msk.f32.vlgmr.msra.gmra.mxu2 %vm137_vm12, %v201_v50 }
 0x2f5   :  { %v221_v51 = vpop.f32.mrf.mxu2 }
 0x2f6   :  { %v225_v52 = vrot.slane %v221_v51, 6 }
 0x2f8   :  { %v227_v53 = vadd.f32 %v225_v52, %v3774_v25 }
 0x2fa   :  { %3253 = vtanh.f32 %v227_v53  ;;  %v228_v55 = vsub.f32 0.0, %v227_v53 }
 0x2fc   :  { %v229_v56 = vmul.f32 1.442695, %v228_v55 }
 0x2fe   :  { %3255 = vpow2.f32 %v229_v56 }
 0x300   :  { %v3254_v54 = vpop.eup %3253 }
 0x301   :  { %253 = vrot.lane.b32.xlu2 %v3254_v54, %s3651_s19 }
 0x304   :  { %v3256_v57 = vpop.eup %3255 }
 0x305   :  { %v231_v58 = vadd.f32 1.0, %v3256_v57 }
 0x307   :  { %3257 = vrcp.f32 %v231_v58  ;;  %v243_v0 = vand.u32 2147483648, %v231_v58  ;;  %vm237_vm14 = vweird.f32 %v231_v58  ;;  %v241_v1 = vand.u32 2147483647, %v231_v58 }
 0x309   :  { %v244_v5 = vor.u32 1.1754944e-38, %v243_v0  ;;  %vm242_vm8 = vcmp.eq.f32.partialorder %v241_v1, 8.507059e+37 }
 0x30d   :  { %v3258_v59 = vpop.eup %3257 }
 0x30e   :  { %v233_v60 = vmul.f32 %v3258_v59, %v231_v58  ;;  %vm238_vm13 = vweird.f32 %v3258_v59 }
 0x30f   :  { %vm239_vm15 = vmor %vm237_vm14, %vm238_vm13 }
 0x310   :  { %v234_v61 = vsub.f32 1.0, %v233_v60 }
 0x312   :  { %v235_v62 = vmul.f32 %v3258_v59, %v234_v61 }
 0x314   :  { %v236_v63 = vadd.f32 %v3258_v59, %v235_v62 }
 0x316   :  { %v240_v2 = vsel %vm239_vm15, %v3258_v59, %v236_v63 }
 0x317   :  { %v245_v7 = vsel %vm242_vm8, %v244_v5, %v240_v2 }
 0x318   :  { %v251_v10 = vmul.f32 %v249_v9, %v245_v7 }
 0x35b   :  { %v254_v6 = vpop.permute.xlu2 %253 }
 0x35c   :  { %v256_v8 = vmul.f32 %v254_v6, %v245_v7 }
 0x35e   :  { %258 = vrot.lane.b32.xlu2 %v256_v8, %s3652_s20 }
 0x3b8   :  { %v259_v11 = vpop.permute.xlu2 %258 }
 0x3b9   :  { %v261_v12 = vadd.f32 %v259_v11, %v251_v10 }
 0x3bb   :  { %3259 = vtanh.f32 %v261_v12  ;;  %v319_v41 = vrot.slane %v261_v12, 6 }
 0x3c1   :  { %v3260_v13 = vpop.eup %3259 }
 0x3c2   :  { %264 = vrot.lane.b32.xlu0 %v3260_v13, %s3651_s19 }
 0x434   :  { %v265_v14 = vpop.permute.xlu0 %264 }
 0x435   :  { %v267_v15 = vmul.f32 %v265_v14, %v245_v7 }
 0x437   :  { %v269_v16 = vrot.slane %v267_v15, 2  ;;  %v693_v48 = vsel %vm94_vm5, %v3780_v49, %v267_v15 }
 0x439   :  { %270 = vrot.lane.b32.xlu1 %v269_v16, %s3652_s20 }
 0x4ab   :  { %v271_v17 = vpop.permute.xlu1 %270 }
 0x4ac   :  { %3148 = vmatmul.msk.f32.vlgmr.msra.gmra.mxu3 %vm137_vm12, %v271_v17 }
 0x52f   :  { %v291_v18 = vpop.f32.mrf.mxu3 }
 0x530   :  { %v295_v19 = vrot.slane %v291_v18, 4  ;;  %v79_v18 = vrot.slane %v3738_v3, 4 }
 0x532   :  { %v297_v20 = vadd.f32 %v295_v19, %v3774_v25  ;;  %v80_v19 = vrot.slane %v3743_v4, 3 }
 0x534   :  { %3261 = vtanh.f32 %v297_v20  ;;  %v298_v24 = vsub.f32 0.0, %v297_v20  ;;  %v83_v20 = vrot.slane %v3738_v3, 3 }
 0x536   :  { %v299_v26 = vmul.f32 1.442695, %v298_v24  ;;  %v87_v24 = vrot.slane %v3738_v3, 2 }
 0x538   :  { %3263 = vpow2.f32 %v299_v26  ;;  %v88_v26 = vrot.slane %v3743_v4, 1 }
 0x53a   :  { %v3262_v23 = vpop.eup %3261 }
 0x53b   :  { %323 = vrot.lane.b32.xlu2 %v3262_v23, %s3651_s19  ;;  %v84_v23 = vrot.slane %v3743_v4, 2 }
 0x53e   :  { %v3264_v27 = vpop.eup %3263 }
 0x53f   :  { %v301_v28 = vadd.f32 1.0, %v3264_v27  ;;  %v81_v27 = vsel %vm61_vm1, %v80_v19, %v79_v18 }
 0x541   :  { %3265 = vrcp.f32 %v301_v28  ;;  %v313_v34 = vand.u32 2147483648, %v301_v28  ;;  %vm307_vm10 = vweird.f32 %v301_v28  ;;  %v311_v35 = vand.u32 2147483647, %v301_v28 }
 0x543   :  { %v314_v37 = vor.u32 1.1754944e-38, %v313_v34  ;;  %vm312_vm13 = vcmp.eq.f32.partialorder %v311_v35, 8.507059e+37 }
 0x547   :  { %v3266_v29 = vpop.eup %3265 }
 0x548   :  { %v303_v30 = vmul.f32 %v3266_v29, %v301_v28  ;;  %vm308_vm9 = vweird.f32 %v3266_v29  ;;  %v85_v28 = vsel %vm66_vm2, %v84_v23, %v83_v20 }
 0x549   :  { %vm309_vm11 = vmor %vm307_vm10, %vm308_vm9 }
 0x54a   :  { %v304_v31 = vsub.f32 1.0, %v303_v30  ;;  %v89_v30 = vsel %vm71_vm3, %v88_v26, %v87_v24 }
 0x54c   :  { %v305_v32 = vmul.f32 %v3266_v29, %v304_v31  ;;  %v100_v31 = vsel %vm94_vm5, %v81_v27, %v85_v28 }
 0x54e   :  { %v306_v33 = vadd.f32 %v3266_v29, %v305_v32 }
 0x550   :  { %v310_v36 = vsel %vm309_vm11, %v3266_v29, %v306_v33  ;;  %v91_v29 = vrot.slane %v3738_v3, 1  ;;  %v101_v33 = vsel %vm96_vm0, %v100_v31, %v89_v30 }
 0x551   :  { %v315_v39 = vsel %vm312_vm13, %v314_v37, %v310_v36 }
 0x552   :  { %v321_v42 = vmul.f32 %v319_v41, %v315_v39  ;;  %v92_v32 = vsel %vm76_vm4, %v3743_v4, %v91_v29 }
 0x553   :  { %v102_v34 = vsel %vm98_vm6, %v101_v33, %v92_v32 }
 0x554   :  { %3146 = vmatmul.msk.f32.gmra.mxu0 %vm104_vm7, %v102_v34 }
 0x595   :  { %v324_v38 = vpop.permute.xlu2 %323 }
 0x596   :  { %v326_v40 = vmul.f32 %v324_v38, %v315_v39 }
 0x598   :  { %328 = vrot.lane.b32.xlu0 %v326_v40, %s3652_s20 }
 0x5d1   :  { %v134_v36 = vpop.f32.mrf.mxu0 }
 0x5d2   :  { %v3827_v37 = vadd.f32 %v3771_v22, %v134_v36 }
 0x60a   :  { %v329_v43 = vpop.permute.xlu0 %328 }
 0x60b   :  { %v331_v44 = vadd.f32 %v329_v43, %v321_v42 }
 0x60d   :  { %3267 = vtanh.f32 %v331_v44  ;;  %v389_v9 = vrot.slane %v331_v44, 6 }
 0x613   :  { %v3268_v45 = vpop.eup %3267 }
 0x614   :  { %334 = vrot.lane.b32.xlu1 %v3268_v45, %s3651_s19 }
 0x686   :  { %v335_v46 = vpop.permute.xlu1 %334 }
 0x687   :  { %v337_v47 = vmul.f32 %v335_v46, %v315_v39 }
 0x689   :  { %v339_v50 = vrot.slane %v337_v47, 4  ;;  %v694_v51 = vsel %vm96_vm0, %v693_v48, %v337_v47 }
 0x68b   :  { %340 = vrot.lane.b32.xlu2 %v339_v50, %s3652_s20 }
 0x6e5   :  { %v341_v52 = vpop.permute.xlu2 %340 }
 0x6e6   :  { %3149 = vmatmul.msk.f32.vlgmr.msrb.gmra.mxu1 %vm137_vm12, %v341_v52 }
 0x763   :  { %v361_v53 = vpop.f32.mrf.mxu1 }
 0x764   :  { %v365_v54 = vrot.slane %v361_v53, 2 }
 0x766   :  { %v367_v55 = vadd.f32 %v365_v54, %v3774_v25 }
 0x768   :  { %3269 = vtanh.f32 %v367_v55  ;;  %v368_v57 = vsub.f32 0.0, %v367_v55  ;;  %v687_v55 = vld [vmem:[%s4611_s2 + $0x48] sm:$0xff] }
 0x769   :  { %722 = vmatpush.msra.mxu2 %v687_v55 }
 0x76a   :  { %v369_v58 = vmul.f32 1.442695, %v368_v57  ;;  %v685_v57 = vld [vmem:[%s4611_s2 + $0x38] sm:$0xff] }
 0x76c   :  { %3271 = vpow2.f32 %v369_v58  ;;  %v684_v58 = vld [vmem:[%s4611_s2 + $0x30] sm:$0xff] }
 0x76e   :  { %v3270_v56 = vpop.eup %3269 }
 0x76f   :  { %393 = vrot.lane.b32.xlu0 %v3270_v56, %s3651_s19  ;;  %v686_v56 = vld [vmem:[%s4611_s2 + $0x40] sm:$0xff] }
 0x770   :  { %723 = vmatpush.msra.mxu2 %v686_v56 }
 0x772   :  { %v3272_v49 = vpop.eup %3271  ;;  %724 = vmatpush.msra.mxu2 %v685_v57 }
 0x773   :  { %v371_v59 = vadd.f32 1.0, %v3272_v49 }
 0x774   :  { %725 = vmatpush.msra.mxu2 %v684_v58 }
 0x775   :  { %3273 = vrcp.f32 %v371_v59  ;;  %v383_v1 = vand.u32 2147483648, %v371_v59  ;;  %vm377_vm15 = vweird.f32 %v371_v59  ;;  %v381_v2 = vand.u32 2147483647, %v371_v59 }
 0x777   :  { %v384_v5 = vor.u32 1.1754944e-38, %v383_v1  ;;  %vm382_vm9 = vcmp.eq.f32.partialorder %v381_v2, 8.507059e+37  ;;  %v3858_v2 = vld [vmem:[%s4611_s2 + $0x68] sm:$0xff] }
 0x778   :  { %745 = vmatpush.msra.mxu3 %v3858_v2  ;;  %808 = vmatpush.msra.mxu0 %v3858_v2 }
 0x779   :  { %878 = vmatpush.msrb.mxu1 %v3858_v2 }
 0x77b   :  { %v3274_v60 = vpop.eup %3273 }
 0x77c   :  { %v373_v61 = vmul.f32 %v3274_v60, %v371_v59  ;;  %vm378_vm14 = vweird.f32 %v3274_v60 }
 0x77d   :  { %vm379_vm8 = vmor %vm377_vm15, %vm378_vm14 }
 0x77e   :  { %v374_v62 = vsub.f32 1.0, %v373_v61 }
 0x780   :  { %v375_v63 = vmul.f32 %v3274_v60, %v374_v62 }
 0x782   :  { %v376_v0 = vadd.f32 %v3274_v60, %v375_v63 }
 0x784   :  { %v380_v25 = vsel %vm379_vm8, %v3274_v60, %v376_v0 }
 0x785   :  { %v385_v7 = vsel %vm382_vm9, %v384_v5, %v380_v25  ;;  %v3863_v25 = vld [vmem:[%s4611_s2 + $0x60] sm:$0xff]  ;;  %v3870_v5 = vld [vmem:[%s4611_s2 + $0x58] sm:$0xff] }
 0x786   :  { %v391_v10 = vmul.f32 %v389_v9, %v385_v7  ;;  %746 = vmatpush.msra.mxu3 %v3863_v25  ;;  %809 = vmatpush.msra.mxu0 %v3863_v25 }
 0x787   :  { %879 = vmatpush.msrb.mxu1 %v3863_v25 }
 0x788   :  { %747 = vmatpush.msra.mxu3 %v3870_v5  ;;  %810 = vmatpush.msra.mxu0 %v3870_v5 }
 0x789   :  { %880 = vmatpush.msrb.mxu1 %v3870_v5 }
 0x7e1   :  { %v394_v6 = vpop.permute.xlu0 %393 }
 0x7e2   :  { %v396_v8 = vmul.f32 %v394_v6, %v385_v7  ;;  %v3879_v6 = vld [vmem:[%s4611_s2 + $0x50] sm:$0xff] }
 0x7e3   :  { %748 = vmatpush.msra.mxu3 %v3879_v6  ;;  %811 = vmatpush.msra.mxu0 %v3879_v6 }
 0x7e4   :  { %398 = vrot.lane.b32.xlu1 %v396_v8, %s3652_s20  ;;  %881 = vmatpush.msrb.mxu1 %v3879_v6 }
 0x856   :  { %v399_v11 = vpop.permute.xlu1 %398 }
 0x857   :  { %v3803_v12 = vadd.f32 %v399_v11, %v391_v10  ;;  %v3904_v10 = vld [vmem:[%s4611_s2 + $0x70] ss:$0 sm:$0xff]  ;;  %s3653_s2 = smov 96  }
 0x859   :  { %3275 = vtanh.f32 %v3803_v12  ;;  %v456_v49 = vrot.slane %v3803_v12, 6 }
 0x85f   :  { %v3276_v13 = vpop.eup %3275 }
 0x860   :  { %404 = vrot.lane.b32.xlu2 %v3276_v13, %s3651_s19 }
 0x8ba   :  { %v405_v14 = vpop.permute.xlu2 %404 }
 0x8bb   :  { %v407_v15 = vmul.f32 %v405_v14, %v385_v7 }
 0x8bd   :  { %v409_v16 = vrot.slane %v407_v15, 6  ;;  %v695_v17 = vsel %vm98_vm6, %v694_v51, %v407_v15 }
 0x8bf   :  { %410 = vrot.lane.b32.xlu0 %v409_v16, %s3652_s20 }
 0x931   :  { %v411_v35 = vpop.permute.xlu0 %410 }
 0x932   :  { %3150 = vmatmul.msk.f32.vlgmr.msrb.gmra.mxu2 %vm137_vm12, %v411_v35 }
 0x933   :  { %1154 = vmatpush.msrb.mxu2 %v3858_v2 }
 0x935   :  { %1155 = vmatpush.msrb.mxu2 %v3863_v25 }
 0x937   :  { %1156 = vmatpush.msrb.mxu2 %v3870_v5 }
 0x939   :  { %1157 = vmatpush.msrb.mxu2 %v3879_v6 }
 0x9b5   :  { %v431_v3 = vpop.f32.mrf.mxu2 }
 0x9b6   :  { %v434_v38 = vadd.f32 %v431_v3, %v3827_v37 }
 0x9b8   :  { %3277 = vtanh.f32 %v434_v38  ;;  %v435_v4 = vsub.f32 0.0, %v434_v38 }
 0x9ba   :  { %v436_v40 = vmul.f32 1.442695, %v435_v4 }
 0x9bc   :  { %3279 = vpow2.f32 %v436_v40 }
 0x9be   :  { %v3278_v39 = vpop.eup %3277 }
 0x9bf   :  { %460 = vrot.lane.b32.xlu1 %v3278_v39, %s3651_s19 }
 0x9c2   :  { %v3280_v41 = vpop.eup %3279 }
 0x9c3   :  { %v438_v42 = vadd.f32 1.0, %v3280_v41 }
 0x9c5   :  { %3281 = vrcp.f32 %v438_v42  ;;  %v450_v22 = vand.u32 2147483648, %v438_v42  ;;  %vm444_vm2 = vweird.f32 %v438_v42  ;;  %v448_v48 = vand.u32 2147483647, %v438_v42 }
 0x9c7   :  { %v451_v51 = vor.u32 1.1754944e-38, %v450_v22  ;;  %vm449_vm4 = vcmp.eq.f32.partialorder %v448_v48, 8.507059e+37 }
 0x9cb   :  { %v3282_v43 = vpop.eup %3281 }
 0x9cc   :  { %v440_v44 = vmul.f32 %v3282_v43, %v438_v42  ;;  %vm445_vm1 = vweird.f32 %v3282_v43 }
 0x9cd   :  { %vm446_vm3 = vmor %vm444_vm2, %vm445_vm1 }
 0x9ce   :  { %v441_v45 = vsub.f32 1.0, %v440_v44 }
 0x9d0   :  { %v442_v46 = vmul.f32 %v3282_v43, %v441_v45 }
 0x9d2   :  { %v443_v47 = vadd.f32 %v3282_v43, %v442_v46 }
 0x9d4   :  { %v447_v50 = vsel %vm446_vm3, %v3282_v43, %v443_v47 }
 0x9d5   :  { %v452_v53 = vsel %vm449_vm4, %v451_v51, %v447_v50 }
 0x9d6   :  { %v458_v59 = vmul.f32 %v456_v49, %v452_v53 }
 0xa31   :  { %v461_v52 = vpop.permute.xlu1 %460 }
 0xa32   :  { %v463_v54 = vmul.f32 %v461_v52, %v452_v53 }
 0xa34   :  { %465 = vrot.lane.b32.xlu2 %v463_v54, %s3652_s20 }
 0xa3c   :  { %702 = vrot.lane.b32.xlu2 %v695_v17, %s3652_s20 }
 0xa8e   :  { %v466_v60 = vpop.permute.xlu2 %465 }
 0xa8f   :  { %v3846_v61 = vadd.f32 %v466_v60, %v458_v59 }
 0xa91   :  { %3283 = vtanh.f32 %v3846_v61  ;;  %v525_v52 = vrot.slane %v3846_v61, 6 }
 0xa96   :  { %v703_v62 = vpop.permute.xlu2 %702 }
 0xa97   :  { %v3284_v63 = vpop.eup %3283  ;;  %3154 = vmatmul.msk.f32.vlgmr.msra.gmra.mxu2 %vm137_vm12, %v703_v62 }
 0xa98   :  { %471 = vrot.lane.b32.xlu0 %v3284_v63, %s3651_s19 }
 0xb0a   :  { %v472_v0 = vpop.permute.xlu0 %471 }
 0xb0b   :  { %v3851_v1 = vmul.f32 %v472_v0, %v452_v53 }
 0xb0d   :  { %476 = vrot.lane.b32.xlu1 %v3851_v1, %s3652_s20 }
 0xb1a   :  { %v727_v12 = vpop.f32.mrf.mxu2 }
 0xb1b   :  { %v3908_v13 = vadd.f32 %v3904_v10, %v727_v12 }
 0xb7f   :  { %v477_v7 = vpop.permute.xlu1 %476 }
 0xb80   :  { %3151 = vmatmul.msk.f32.vlgmr.msrb.gmra.mxu3 %vm137_vm12, %v477_v7 }
 0xb81   :  { %948 = vmatpush.msrb.mxu3 %v3858_v2 }
 0xb83   :  { %949 = vmatpush.msrb.mxu3 %v3863_v25 }
 0xb85   :  { %950 = vmatpush.msrb.mxu3 %v3870_v5 }
 0xb87   :  { %951 = vmatpush.msrb.mxu3 %v3879_v6 }
 0xb88   :  { %749 = vmatmul.f32.vlgmr.msra.gmra.mxu3 %v3650_v21 }
 0xb89   :  { %1224 = vmatpush.msra.mxu3 %v3858_v2 }
 0xb8b   :  { %1225 = vmatpush.msra.mxu3 %v3863_v25 }
 0xb8d   :  { %1226 = vmatpush.msra.mxu3 %v3870_v5 }
 0xb8f   :  { %1227 = vmatpush.msra.mxu3 %v3879_v6 }
 0xc03   :  { %v497_v8 = vpop.f32.mrf.mxu3 }
 0xc04   :  { %v501_v9 = vrot.slane %v497_v8, 6 }
 0xc06   :  { %v503_v11 = vadd.f32 %v501_v9, %v3827_v37 }
 0xc08   :  { %3285 = vtanh.f32 %v503_v11  ;;  %v504_v18 = vsub.f32 0.0, %v503_v11 }
 0xc0a   :  { %v505_v19 = vmul.f32 1.442695, %v504_v18 }
 0xc0b   :  { %v750_v14 = vpop.f32.mrf.mxu3 }
 0xc0c   :  { %v753_v15 = vadd.f32 %v750_v14, %v3908_v13 }
 0xc0e   :  { %v3286_v16 = vpop.eup %3285  ;;  %3287 = vtanh.f32 %v753_v15  ;;  %v754_v20 = vsub.f32 0.0, %v753_v15 }
 0xc0f   :  { %529 = vrot.lane.b32.xlu0 %v3286_v16, %s3651_s19  ;;  %3289 = vpow2.f32 %v505_v19 }
 0xc10   :  { %v755_v23 = vmul.f32 1.442695, %v754_v20 }
 0xc12   :  { %3291 = vpow2.f32 %v755_v23 }
 0xc14   :  { %v3288_v17 = vpop.eup %3287 }
 0xc15   :  { %776 = vrot.lane.b32.xlu1 %v3288_v17, %s3651_s19  ;;  %v3290_v24 = vpop.eup %3289 }
 0xc16   :  { %v507_v26 = vadd.f32 1.0, %v3290_v24 }
 0xc18   :  { %v3292_v27 = vpop.eup %3291  ;;  %3293 = vrcp.f32 %v507_v26  ;;  %v519_v3 = vand.u32 2147483648, %v507_v26  ;;  %vm513_vm11 = vweird.f32 %v507_v26  ;;  %v517_v38 = vand.u32 2147483647, %v507_v26 }
 0xc19   :  { %v757_v28 = vadd.f32 1.0, %v3292_v27 }
 0xc1a   :  { %v520_v40 = vor.u32 1.1754944e-38, %v519_v3  ;;  %vm518_vm14 = vcmp.eq.f32.partialorder %v517_v38, 8.507059e+37 }
 0xc1b   :  { %3295 = vrcp.f32 %v757_v28  ;;  %v769_v44 = vand.u32 2147483648, %v757_v28  ;;  %vm763_vm8 = vweird.f32 %v757_v28  ;;  %v767_v46 = vand.u32 2147483647, %v757_v28 }
 0xc1d   :  { %v770_v22 = vor.u32 1.1754944e-38, %v769_v44  ;;  %vm768_vm1 = vcmp.eq.f32.partialorder %v767_v46, 8.507059e+37 }
 0xc1e   :  { %v3294_v29 = vpop.eup %3293 }
 0xc1f   :  { %v509_v30 = vmul.f32 %v3294_v29, %v507_v26  ;;  %vm514_vm10 = vweird.f32 %v3294_v29 }
 0xc20   :  { %vm515_vm13 = vmor %vm513_vm11, %vm514_vm10 }
 0xc21   :  { %v3296_v31 = vpop.eup %3295  ;;  %v510_v32 = vsub.f32 1.0, %v509_v30 }
 0xc22   :  { %v759_v33 = vmul.f32 %v3296_v31, %v757_v28  ;;  %vm764_vm15 = vweird.f32 %v3296_v31 }
 0xc23   :  { %v511_v34 = vmul.f32 %v3294_v29, %v510_v32  ;;  %vm765_vm9 = vmor %vm763_vm8, %vm764_vm15 }
 0xc24   :  { %v760_v35 = vsub.f32 1.0, %v759_v33 }
 0xc25   :  { %v512_v36 = vadd.f32 %v3294_v29, %v511_v34 }
 0xc26   :  { %v761_v39 = vmul.f32 %v3296_v31, %v760_v35 }
 0xc27   :  { %v516_v4 = vsel %vm515_vm13, %v3294_v29, %v512_v36 }
 0xc28   :  { %v762_v41 = vadd.f32 %v3296_v31, %v761_v39  ;;  %v521_v43 = vsel %vm518_vm14, %v520_v40, %v516_v4 }
 0xc29   :  { %v527_v53 = vmul.f32 %v525_v52, %v521_v43 }
 0xc2a   :  { %v766_v47 = vsel %vm765_vm9, %v3296_v31, %v762_v41 }
 0xc2b   :  { %v771_v50 = vsel %vm768_vm1, %v770_v22, %v766_v47 }
 0xc2c   :  { %v774_v57 = vmul.f32 0.0, %v771_v50 }
 0xc81   :  { %v530_v42 = vpop.permute.xlu0 %529 }
 0xc82   :  { %v532_v45 = vmul.f32 %v530_v42, %v521_v43 }
 0xc84   :  { %534 = vrot.lane.b32.xlu2 %v532_v45, %s3652_s20 }
 0xc87   :  { %v777_v48 = vpop.permute.xlu1 %776 }
 0xc88   :  { %v779_v51 = vmul.f32 %v777_v48, %v771_v50 }
 0xc8a   :  { %781 = vrot.lane.b32.xlu0 %v779_v51, %s3652_s20 }
 0xcde   :  { %v535_v54 = vpop.permute.xlu2 %534 }
 0xcdf   :  { %v3916_v55 = vadd.f32 %v535_v54, %v527_v53 }
 0xce1   :  { %3297 = vtanh.f32 %v3916_v55  ;;  %v595_v53 = vrot.slane %v3916_v55, 6 }
 0xce7   :  { %v3298_v56 = vpop.eup %3297 }
 0xce8   :  { %540 = vrot.lane.b32.xlu1 %v3298_v56, %s3651_s19 }
 0xcfc   :  { %v782_v58 = vpop.permute.xlu0 %781 }
 0xcfd   :  { %v3920_v49 = vadd.f32 %v782_v58, %v774_v57 }
 0xcff   :  { %3299 = vtanh.f32 %v3920_v49  ;;  %v841_v58 = vrot.slane %v3920_v49, 6 }
 0xd05   :  { %v3300_v59 = vpop.eup %3299 }
 0xd06   :  { %787 = vrot.lane.b32.xlu2 %v3300_v59, %s3651_s19 }
 0xd5a   :  { %v541_v60 = vpop.permute.xlu1 %540 }
 0xd5b   :  { %v3924_v61 = vmul.f32 %v541_v60, %v521_v43 }
 0xd5d   :  { %v545_v62 = vrot.slane %v3924_v61, 2 }
 0xd5f   :  { %546 = vrot.lane.b32.xlu0 %v545_v62, %s3652_s20 }
 0xd60   :  { %v788_v63 = vpop.permute.xlu2 %787 }
 0xd61   :  { %v3928_v0 = vmul.f32 %v788_v63, %v771_v50 }
 0xd63   :  { %792 = vrot.lane.b32.xlu1 %v3928_v0, %s3652_s20 }
 0xdd1   :  { %v547_v7 = vpop.permute.xlu0 %546 }
 0xdd2   :  { %3152 = vmatmul.msk.f32.vlgmr.msrb.gmra.mxu0 %vm137_vm12, %v547_v7 }
 0xdd3   :  { %1018 = vmatpush.msrb.mxu0 %v3858_v2 }
 0xdd5   :  { %1019 = vmatpush.msrb.mxu0 %v3863_v25  ;;  %v793_v8 = vpop.permute.xlu1 %792 }
 0xdd7   :  { %1020 = vmatpush.msrb.mxu0 %v3870_v5 }
 0xdd9   :  { %1021 = vmatpush.msrb.mxu0 %v3879_v6 }
 0xdda   :  { %3156 = vmatmul.msk.f32.vlgmr.msra.gmra.mxu0 %vm137_vm12, %v793_v8 }
 0xe4f   :  { %v567_v9 = vpop.f32.mrf.mxu0 }
 0xe50   :  { %v571_v11 = vrot.slane %v567_v9, 4  ;;  %v696_v9 = vsel %vm94_vm5, %v3851_v1, %v3924_v61 }
 0xe52   :  { %v573_v12 = vadd.f32 %v571_v11, %v3827_v37 }
 0xe54   :  { %3301 = vtanh.f32 %v573_v12  ;;  %v574_v19 = vsub.f32 0.0, %v573_v12 }
 0xe56   :  { %v575_v20 = vmul.f32 1.442695, %v574_v19 }
 0xe57   :  { %v813_v14 = vpop.f32.mrf.mxu0 }
 0xe58   :  { %v817_v15 = vrot.slane %v813_v14, 6 }
 0xe5a   :  { %v3302_v16 = vpop.eup %3301  ;;  %v819_v17 = vadd.f32 %v817_v15, %v3908_v13 }
 0xe5b   :  { %599 = vrot.lane.b32.xlu2 %v3302_v16, %s3651_s19 }
 0xe5c   :  { %3303 = vtanh.f32 %v819_v17  ;;  %v820_v28 = vsub.f32 0.0, %v819_v17 }
 0xe5d   :  { %3305 = vpow2.f32 %v575_v20 }
 0xe5e   :  { %v821_v30 = vmul.f32 1.442695, %v820_v28 }
 0xe62   :  { %v3304_v18 = vpop.eup %3303 }
 0xe63   :  { %845 = vrot.lane.b32.xlu0 %v3304_v18, %s3651_s19  ;;  %v3306_v23 = vpop.eup %3305 }
 0xe64   :  { %v577_v24 = vadd.f32 1.0, %v3306_v23 }
 0xe66   :  { %3307 = vrcp.f32 %v577_v24  ;;  %v589_v33 = vand.u32 2147483648, %v577_v24  ;;  %vm583_vm3 = vweird.f32 %v577_v24  ;;  %v587_v34 = vand.u32 2147483647, %v577_v24 }
 0xe67   :  { %3309 = vpow2.f32 %v821_v30 }
 0xe68   :  { %v590_v3 = vor.u32 1.1754944e-38, %v589_v33  ;;  %vm588_vm10 = vcmp.eq.f32.partialorder %v587_v34, 8.507059e+37 }
 0xe6c   :  { %v3308_v26 = vpop.eup %3307 }
 0xe6d   :  { %v579_v27 = vmul.f32 %v3308_v26, %v577_v24  ;;  %vm584_vm2 = vweird.f32 %v3308_v26  ;;  %v3310_v35 = vpop.eup %3309 }
 0xe6e   :  { %vm585_vm4 = vmor %vm583_vm3, %vm584_vm2  ;;  %v823_v38 = vadd.f32 1.0, %v3310_v35 }
 0xe6f   :  { %v580_v29 = vsub.f32 1.0, %v579_v27 }
 0xe70   :  { %3311 = vrcp.f32 %v823_v38  ;;  %v835_v46 = vand.u32 2147483648, %v823_v38  ;;  %vm829_vm13 = vweird.f32 %v823_v38  ;;  %v833_v47 = vand.u32 2147483647, %v823_v38 }
 0xe71   :  { %v581_v31 = vmul.f32 %v3308_v26, %v580_v29 }
 0xe72   :  { %v836_v48 = vor.u32 1.1754944e-38, %v835_v46  ;;  %vm834_vm15 = vcmp.eq.f32.partialorder %v833_v47, 8.507059e+37 }
 0xe73   :  { %v582_v32 = vadd.f32 %v3308_v26, %v581_v31 }
 0xe75   :  { %v586_v36 = vsel %vm585_vm4, %v3308_v26, %v582_v32 }
 0xe76   :  { %v591_v4 = vsel %vm588_vm10, %v590_v3, %v586_v36  ;;  %v3312_v41 = vpop.eup %3311 }
 0xe77   :  { %v825_v42 = vmul.f32 %v3312_v41, %v823_v38  ;;  %vm830_vm11 = vweird.f32 %v3312_v41  ;;  %v597_v54 = vmul.f32 %v595_v53, %v591_v4 }
 0xe78   :  { %vm831_vm14 = vmor %vm829_vm13, %vm830_vm11 }
 0xe79   :  { %v826_v43 = vsub.f32 1.0, %v825_v42 }
 0xe7b   :  { %v827_v44 = vmul.f32 %v3312_v41, %v826_v43 }
 0xe7d   :  { %v828_v45 = vadd.f32 %v3312_v41, %v827_v44 }
 0xe7f   :  { %v832_v22 = vsel %vm831_vm14, %v3312_v41, %v828_v45 }
 0xe80   :  { %v837_v51 = vsel %vm834_vm15, %v836_v48, %v832_v22 }
 0xe81   :  { %v843_v59 = vmul.f32 %v841_v58, %v837_v51 }
 0xeb5   :  { %v600_v39 = vpop.permute.xlu2 %599 }
 0xeb6   :  { %v602_v40 = vmul.f32 %v600_v39, %v591_v4 }
 0xeb8   :  { %604 = vrot.lane.b32.xlu1 %v602_v40, %s3652_s20 }
 0xed5   :  { %v846_v50 = vpop.permute.xlu0 %845 }
 0xed6   :  { %v848_v52 = vmul.f32 %v846_v50, %v837_v51 }
 0xed8   :  { %850 = vrot.lane.b32.xlu2 %v848_v52, %s3652_s20 }
 0xf2a   :  { %v605_v56 = vpop.permute.xlu1 %604 }
 0xf2b   :  { %v3945_v57 = vadd.f32 %v605_v56, %v597_v54 }
 0xf2d   :  { %3313 = vtanh.f32 %v3945_v57 }
 0xf32   :  { %v851_v60 = vpop.permute.xlu2 %850 }
 0xf33   :  { %v3314_v62 = vpop.eup %3313  ;;  %v853_v63 = vadd.f32 %v851_v60, %v843_v59 }
 0xf34   :  { %610 = vrot.lane.b32.xlu0 %v3314_v62, %s3651_s19 }
 0xf35   :  { %3315 = vtanh.f32 %v853_v63  ;;  %v911_v39 = vrot.slane %v853_v63, 6 }
 0xf3b   :  { %v3316_v7 = vpop.eup %3315 }
 0xf3c   :  { %856 = vrot.lane.b32.xlu1 %v3316_v7, %s3651_s19 }
 0xfa6   :  { %v611_v8 = vpop.permute.xlu0 %610 }
 0xfa7   :  { %v613_v55 = vmul.f32 %v611_v8, %v591_v4 }
 0xfa9   :  { %v615_v11 = vrot.slane %v613_v55, 4  ;;  %v3955_v12 = vsel %vm96_vm0, %v696_v9, %v613_v55 }
 0xfab   :  { %616 = vrot.lane.b32.xlu2 %v615_v11, %s3652_s20  ;;  %v665_v11 = vrot.slane %v3945_v57, 6 }
 0xfae   :  { %v857_v49 = vpop.permute.xlu1 %856 }
 0xfaf   :  { %v3958_v14 = vmul.f32 %v857_v49, %v837_v51 }
 0xfb1   :  { %v861_v15 = vrot.slane %v3958_v14, 2 }
 0xfb3   :  { %862 = vrot.lane.b32.xlu0 %v861_v15, %s3652_s20 }
0x1005   :  { %v617_v16 = vpop.permute.xlu2 %616 }
0x1006   :  { %3153 = vmatmul.msk.f32.vlgmr.msra.gmra.mxu1 %vm137_vm12, %v617_v16 }
0x1007   :  { %1084 = vmatpush.msra.mxu1 %v3858_v2 }
0x1009   :  { %1085 = vmatpush.msra.mxu1 %v3863_v25 }
0x100b   :  { %1086 = vmatpush.msra.mxu1 %v3870_v5 }
0x100d   :  { %1087 = vmatpush.msra.mxu1 %v3879_v6 }
0x1025   :  { %v863_v1 = vpop.permute.xlu0 %862 }
0x1026   :  { %3157 = vmatmul.msk.f32.vlgmr.msrb.gmra.mxu1 %vm137_vm12, %v863_v1 }
0x1083   :  { %v637_v61 = vpop.f32.mrf.mxu1 }
0x1084   :  { %v641_v31 = vrot.slane %v637_v61, 2 }
0x1086   :  { %v643_v34 = vadd.f32 %v641_v31, %v3827_v37 }
0x1088   :  { %v644_v37 = vsub.f32 0.0, %v643_v34 }
0x108a   :  { %v645_v43 = vmul.f32 1.442695, %v644_v37 }
0x10a3   :  { %v883_v17 = vpop.f32.mrf.mxu1 }
0x10a4   :  { %v887_v18 = vrot.slane %v883_v17, 4 }
0x10a6   :  { %v889_v19 = vadd.f32 %v887_v18, %v3908_v13 }
0x10a8   :  { %3317 = vtanh.f32 %v889_v19  ;;  %v890_v23 = vsub.f32 0.0, %v889_v19 }
0x10aa   :  { %v891_v2 = vmul.f32 1.442695, %v890_v23 }
0x10ac   :  { %3319 = vpow2.f32 %v891_v2 }
0x10ae   :  { %v3318_v20 = vpop.eup %3317 }
0x10af   :  { %915 = vrot.lane.b32.xlu1 %v3318_v20, %s3651_s19 }
0x10b2   :  { %v3320_v25 = vpop.eup %3319 }
0x10b3   :  { %v893_v24 = vadd.f32 1.0, %v3320_v25 }
0x10b5   :  { %3321 = vrcp.f32 %v893_v24  ;;  %v905_v29 = vand.u32 2147483648, %v893_v24  ;;  %vm899_vm9 = vweird.f32 %v893_v24  ;;  %v903_v30 = vand.u32 2147483647, %v893_v24 }
0x10b6   :  { %3323 = vtanh.f32 %v643_v34 }
0x10b7   :  { %v906_v33 = vor.u32 1.1754944e-38, %v905_v29  ;;  %vm904_vm2 = vcmp.eq.f32.partialorder %v903_v30, 8.507059e+37 }
0x10bb   :  { %v3322_v5 = vpop.eup %3321 }
0x10bc   :  { %v895_v6 = vmul.f32 %v3322_v5, %v893_v24  ;;  %vm900_vm8 = vweird.f32 %v3322_v5  ;;  %v3324_v38 = vpop.eup %3323 }
0x10bd   :  { %vm901_vm1 = vmor %vm899_vm9, %vm900_vm8 }
0x10be   :  { %v896_v26 = vsub.f32 1.0, %v895_v6 }
0x10c0   :  { %v897_v27 = vmul.f32 %v3322_v5, %v896_v26 }
0x10c2   :  { %v898_v28 = vadd.f32 %v3322_v5, %v897_v27 }
0x10c4   :  { %v902_v32 = vsel %vm901_vm1, %v3322_v5, %v898_v28 }
0x10c5   :  { %v907_v36 = vsel %vm904_vm2, %v906_v33, %v902_v32 }
0x10c6   :  { %v913_v4 = vmul.f32 %v911_v39, %v907_v36 }
0x1121   :  { %v916_v35 = vpop.permute.xlu1 %915 }
0x1122   :  { %v918_v3 = vmul.f32 %v916_v35, %v907_v36 }
0x1124   :  { %920 = vrot.lane.b32.xlu2 %v918_v3, %s3652_s20 }
0x112c   :  { %669 = vrot.lane.b32.xlu2 %v3324_v38, %s3651_s19 }
0x117e   :  { %v921_v40 = vpop.permute.xlu2 %920 }
0x117f   :  { %v3973_v41 = vadd.f32 %v921_v40, %v913_v4 }
0x1181   :  { %3325 = vtanh.f32 %v3973_v41  ;;  %v981_v33 = vrot.slane %v3973_v41, 6 }
0x1182   :  { %3327 = vpow2.f32 %v645_v43 }
0x1186   :  { %v670_v60 = vpop.permute.xlu2 %669 }
0x1187   :  { %v3326_v42 = vpop.eup %3325 }
0x1188   :  { %926 = vrot.lane.b32.xlu0 %v3326_v42, %s3651_s19  ;;  %v3328_v44 = vpop.eup %3327 }
0x1189   :  { %v647_v45 = vadd.f32 1.0, %v3328_v44 }
0x118b   :  { %3329 = vrcp.f32 %v647_v45  ;;  %v659_v54 = vand.u32 2147483648, %v647_v45  ;;  %vm653_vm4 = vweird.f32 %v647_v45  ;;  %v657_v56 = vand.u32 2147483647, %v647_v45 }
0x118d   :  { %v660_v59 = vor.u32 1.1754944e-38, %v659_v54  ;;  %vm658_vm11 = vcmp.eq.f32.partialorder %v657_v56, 8.507059e+37 }
0x1191   :  { %v3330_v46 = vpop.eup %3329 }
0x1192   :  { %v649_v47 = vmul.f32 %v3330_v46, %v647_v45  ;;  %vm654_vm3 = vweird.f32 %v3330_v46 }
0x1193   :  { %vm655_vm10 = vmor %vm653_vm4, %vm654_vm3 }
0x1194   :  { %v650_v22 = vsub.f32 1.0, %v649_v47 }
0x1196   :  { %v651_v48 = vmul.f32 %v3330_v46, %v650_v22 }
0x1198   :  { %v652_v52 = vadd.f32 %v3330_v46, %v651_v48 }
0x119a   :  { %v656_v58 = vsel %vm655_vm10, %v3330_v46, %v652_v52 }
0x119b   :  { %v661_v62 = vsel %vm658_vm11, %v660_v59, %v656_v58 }
0x119c   :  { %v672_v63 = vmul.f32 %v670_v60, %v661_v62  ;;  %v667_v15 = vmul.f32 %v665_v11, %v661_v62 }
0x11fa   :  { %v927_v50 = vpop.permute.xlu0 %926 }
0x11fb   :  { %v3977_v51 = vmul.f32 %v927_v50, %v907_v36 }
0x11fd   :  { %v931_v53 = vrot.slane %v3977_v51, 4 }
0x11ff   :  { %932 = vrot.lane.b32.xlu1 %v931_v53, %s3652_s20 }
0x1207   :  { %674 = vrot.lane.b32.xlu1 %v672_v63, %s3652_s20 }
0x1271   :  { %v933_v7 = vpop.permute.xlu1 %932 }
0x1272   :  { %3158 = vmatmul.msk.f32.vlgmr.msrb.gmra.mxu3 %vm137_vm12, %v933_v7 }
0x1279   :  { %v675_v49 = vpop.permute.xlu1 %674 }
0x127a   :  { %v677_v16 = vadd.f32 %v675_v49, %v667_v15 }
0x12f5   :  { %v953_v8 = vpop.f32.mrf.mxu3 }
0x12f6   :  { %v957_v55 = vrot.slane %v953_v8, 2 }
0x12f8   :  { %v959_v9 = vadd.f32 %v957_v55, %v3908_v13 }
0x12fa   :  { %3331 = vtanh.f32 %v959_v9  ;;  %v960_v17 = vsub.f32 0.0, %v959_v9 }
0x12fb   :  { %3333 = vtanh.f32 %v677_v16 }
0x12fc   :  { %v961_v18 = vmul.f32 1.442695, %v960_v17 }
0x12fe   :  { %3335 = vpow2.f32 %v961_v18 }
0x1300   :  { %v3332_v1 = vpop.eup %3331 }
0x1301   :  { %985 = vrot.lane.b32.xlu0 %v3332_v1, %s3651_s19  ;;  %v3334_v61 = vpop.eup %3333 }
0x1304   :  { %v3336_v19 = vpop.eup %3335 }
0x1305   :  { %v963_v20 = vadd.f32 1.0, %v3336_v19 }
0x1307   :  { %3337 = vrcp.f32 %v963_v20  ;;  %v975_v24 = vand.u32 2147483648, %v963_v20  ;;  %vm969_vm14 = vweird.f32 %v963_v20  ;;  %v973_v5 = vand.u32 2147483647, %v963_v20 }
0x1309   :  { %680 = vrot.lane.b32.xlu0 %v3334_v61, %s3651_s19  ;;  %v976_v26 = vor.u32 1.1754944e-38, %v975_v24  ;;  %vm974_vm8 = vcmp.eq.f32.partialorder %v973_v5, 8.507059e+37 }
0x130d   :  { %v3338_v13 = vpop.eup %3337 }
0x130e   :  { %v965_v23 = vmul.f32 %v3338_v13, %v963_v20  ;;  %vm970_vm13 = vweird.f32 %v3338_v13 }
0x130f   :  { %vm971_vm15 = vmor %vm969_vm14, %vm970_vm13 }
0x1310   :  { %v966_v57 = vsub.f32 1.0, %v965_v23 }
0x1312   :  { %v967_v2 = vmul.f32 %v3338_v13, %v966_v57 }
0x1314   :  { %v968_v25 = vadd.f32 %v3338_v13, %v967_v2 }
0x1316   :  { %v972_v6 = vsel %vm971_vm15, %v3338_v13, %v968_v25 }
0x1317   :  { %v977_v28 = vsel %vm974_vm8, %v976_v26, %v972_v6 }
0x1318   :  { %v983_v34 = vmul.f32 %v981_v33, %v977_v28 }
0x1373   :  { %v986_v27 = vpop.permute.xlu0 %985 }
0x1374   :  { %v988_v29 = vmul.f32 %v986_v27, %v977_v28 }
0x1376   :  { %990 = vrot.lane.b32.xlu2 %v988_v29, %s3652_s20 }
0x137b   :  { %v681_v30 = vpop.permute.xlu0 %680 }
0x137c   :  { %v683_v31 = vmul.f32 %v681_v30, %v661_v62 }
0x137e   :  { %v698_v32 = vsel %vm98_vm6, %v3955_v12, %v683_v31 }
0x137f   :  { %704 = vrot.lane.b32.xlu2 %v698_v32, %s3652_s20 }
0x13d0   :  { %v991_v35 = vpop.permute.xlu2 %990 }
0x13d1   :  { %v993_v36 = vadd.f32 %v991_v35, %v983_v34 }
0x13d3   :  { %3339 = vtanh.f32 %v993_v36  ;;  %v1048_v7 = vrot.slane %v993_v36, 6 }
0x13d9   :  { %v3340_v3 = vpop.eup %3339  ;;  %v705_v38 = vpop.permute.xlu2 %704 }
0x13da   :  { %996 = vrot.lane.b32.xlu1 %v3340_v3, %s3651_s19  ;;  %3155 = vmatmul.msk.f32.gmra.mxu2 %vm137_vm12, %v705_v38 }
0x144c   :  { %v997_v39 = vpop.permute.xlu1 %996 }
0x144d   :  { %v3994_v4 = vmul.f32 %v997_v39, %v977_v28 }
0x144f   :  { %v1001_v40 = vrot.slane %v3994_v4, 6 }
0x1451   :  { %1002 = vrot.lane.b32.xlu0 %v1001_v40, %s3652_s20 }
0x145d   :  { %v730_v41 = vpop.f32.mrf.mxu2 }
0x145e   :  { %v4000_v42 = vadd.f32 %v3904_v10, %v730_v41 }
0x14c3   :  { %v1003_v12 = vpop.permute.xlu0 %1002 }
0x14c4   :  { %3159 = vmatmul.msk.f32.vlgmr.msrb.gmra.mxu0 %vm137_vm12, %v1003_v12 }
0x1541   :  { %v1023_v37 = vpop.f32.mrf.mxu0 }
0x1542   :  { %v1026_v43 = vadd.f32 %v1023_v37, %v4000_v42 }
0x1544   :  { %3341 = vtanh.f32 %v1026_v43  ;;  %v1027_v45 = vsub.f32 0.0, %v1026_v43 }
0x1546   :  { %v1028_v46 = vmul.f32 1.442695, %v1027_v45 }
0x1548   :  { %3343 = vpow2.f32 %v1028_v46 }
0x154a   :  { %v3342_v44 = vpop.eup %3341 }
0x154b   :  { %1052 = vrot.lane.b32.xlu1 %v3342_v44, %s3651_s19 }
0x154e   :  { %v3344_v47 = vpop.eup %3343 }
0x154f   :  { %v1030_v22 = vadd.f32 1.0, %v3344_v47 }
0x1551   :  { %3345 = vrcp.f32 %v1030_v22  ;;  %v1042_v10 = vand.u32 2147483648, %v1030_v22  ;;  %vm1036_vm1 = vweird.f32 %v1030_v22  ;;  %v1040_v56 = vand.u32 2147483647, %v1030_v22 }
0x1553   :  { %v1043_v59 = vor.u32 1.1754944e-38, %v1042_v10  ;;  %vm1041_vm3 = vcmp.eq.f32.partialorder %v1040_v56, 8.507059e+37 }
0x1557   :  { %v3346_v48 = vpop.eup %3345 }
0x1558   :  { %v1032_v50 = vmul.f32 %v3346_v48, %v1030_v22  ;;  %vm1037_vm9 = vweird.f32 %v3346_v48 }
0x1559   :  { %vm1038_vm2 = vmor %vm1036_vm1, %vm1037_vm9 }
0x155a   :  { %v1033_v52 = vsub.f32 1.0, %v1032_v50 }
0x155c   :  { %v1034_v53 = vmul.f32 %v3346_v48, %v1033_v52 }
0x155e   :  { %v1035_v54 = vadd.f32 %v3346_v48, %v1034_v53 }
0x1560   :  { %v1039_v58 = vsel %vm1038_vm2, %v3346_v48, %v1035_v54 }
0x1561   :  { %v1044_v62 = vsel %vm1041_vm3, %v1043_v59, %v1039_v58 }
0x1562   :  { %v1050_v8 = vmul.f32 %v1048_v7, %v1044_v62 }
0x15bd   :  { %v1053_v60 = vpop.permute.xlu1 %1052 }
0x15be   :  { %v1055_v63 = vmul.f32 %v1053_v60, %v1044_v62 }
0x15c0   :  { %1057 = vrot.lane.b32.xlu2 %v1055_v63, %s3652_s20 }
0x161a   :  { %v1058_v55 = vpop.permute.xlu2 %1057 }
0x161b   :  { %v1060_v9 = vadd.f32 %v1058_v55, %v1050_v8 }
0x161d   :  { %3347 = vtanh.f32 %v1060_v9  ;;  %v1117_v34 = vrot.slane %v1060_v9, 6 }
0x161e   :  { %3349 = vtanh.f32 %v3928_v0 }
0x1623   :  { %v3348_v11 = vpop.eup %3347 }
0x1624   :  { %1063 = vrot.lane.b32.xlu0 %v3348_v11, %s3651_s19  ;;  %v4008_v16 = vpop.eup %3349 }
0x1696   :  { %v1064_v49 = vpop.permute.xlu0 %1063 }
0x1697   :  { %v1066_v15 = vmul.f32 %v1064_v49, %v1044_v62 }
0x1699   :  { %3351 = vtanh.f32 %v1066_v15  ;;  %1068 = vrot.lane.b32.xlu1 %v1066_v15, %s3652_s20 }
0x169f   :  { %v4010_v1 = vpop.eup %3351 }
0x16a0   :  { %v3222_v61 = vpack.i.bf16 %v4010_v1, %v4008_v16 }
0x170b   :  { %v1069_v17 = vpop.permute.xlu1 %1068 }
0x170c   :  { %3160 = vmatmul.msk.f32.vlgmr.msra.gmra.mxu1 %vm137_vm12, %v1069_v17 }
0x1789   :  { %v1089_v18 = vpop.f32.mrf.mxu1 }
0x178a   :  { %v1093_v19 = vrot.slane %v1089_v18, 6 }
0x178c   :  { %v1095_v20 = vadd.f32 %v1093_v19, %v4000_v42 }
0x178e   :  { %3353 = vtanh.f32 %v1095_v20  ;;  %v1096_v0 = vsub.f32 0.0, %v1095_v20 }
0x1790   :  { %v1097_v23 = vmul.f32 1.442695, %v1096_v0 }
0x1792   :  { %3355 = vpow2.f32 %v1097_v23 }
0x1794   :  { %v3354_v13 = vpop.eup %3353 }
0x1795   :  { %1121 = vrot.lane.b32.xlu2 %v3354_v13, %s3651_s19 }
0x1798   :  { %v3356_v57 = vpop.eup %3355 }
0x1799   :  { %v1099_v2 = vadd.f32 1.0, %v3356_v57 }
0x179b   :  { %3357 = vrcp.f32 %v1099_v2  ;;  %v1111_v27 = vand.u32 2147483648, %v1099_v2  ;;  %vm1105_vm10 = vweird.f32 %v1099_v2  ;;  %v1109_v28 = vand.u32 2147483647, %v1099_v2 }
0x179d   :  { %v1112_v30 = vor.u32 1.1754944e-38, %v1111_v27  ;;  %vm1110_vm13 = vcmp.eq.f32.partialorder %v1109_v28, 8.507059e+37 }
0x17a1   :  { %v3358_v25 = vpop.eup %3357 }
0x17a2   :  { %v1101_v24 = vmul.f32 %v3358_v25, %v1099_v2  ;;  %vm1106_vm4 = vweird.f32 %v3358_v25 }
0x17a3   :  { %vm1107_vm11 = vmor %vm1105_vm10, %vm1106_vm4  ;;  %vm1319_vm10 = vcmask 523264  }
0x17a4   :  { %v1102_v5 = vsub.f32 1.0, %v1101_v24 }
0x17a6   :  { %v1103_v6 = vmul.f32 %v3358_v25, %v1102_v5 }
0x17a8   :  { %v1104_v26 = vadd.f32 %v3358_v25, %v1103_v6 }
0x17aa   :  { %v1108_v29 = vsel %vm1107_vm11, %v3358_v25, %v1104_v26  ;;  %vm1321_vm11 = vcmask 785408  }
0x17ab   :  { %v1113_v32 = vsel %vm1110_vm13, %v1112_v30, %v1108_v29 }
0x17ac   :  { %v1119_v35 = vmul.f32 %v1117_v34, %v1113_v32 }
0x17ef   :  { %v1122_v31 = vpop.permute.xlu2 %1121 }
0x17f0   :  { %v1124_v33 = vmul.f32 %v1122_v31, %v1113_v32 }
0x17f2   :  { %1126 = vrot.lane.b32.xlu0 %v1124_v33, %s3652_s20 }
0x1864   :  { %v1127_v36 = vpop.permute.xlu0 %1126 }
0x1865   :  { %v1129_v3 = vadd.f32 %v1127_v36, %v1119_v35 }
0x1867   :  { %3359 = vtanh.f32 %v1129_v3  ;;  %v1187_v49 = vrot.slane %v1129_v3, 6 }
0x1868   :  { %3361 = vtanh.f32 %v3958_v14 }
0x186d   :  { %v3360_v38 = vpop.eup %3359 }
0x186e   :  { %1132 = vrot.lane.b32.xlu1 %v3360_v38, %s3651_s19  ;;  %v3362_v41 = vpop.eup %3361 }
0x186f   :  { %v1289_v43 = vrot.slane %v3362_v41, 2  ;;  %v1340_v41 = vld [vmem:[%s4613_s4 + $0x70] sm:$0xff] }
0x18e0   :  { %v1133_v39 = vpop.permute.xlu1 %1132 }
0x18e1   :  { %v1135_v40 = vmul.f32 %v1133_v39, %v1113_v32 }
0x18e3   :  { %v1137_v12 = vrot.slane %v1135_v40, 2  ;;  %3363 = vtanh.f32 %v1135_v40  ;;  %v1341_v40 = vld [vmem:[%s4613_s4 + $0x78] sm:$0xff] }
0x18e4   :  { %1360 = vmatpush.msra.mxu0 %v1341_v40  ;;  %v1421_v40 = vld [vmem:[%s4615_s6 + $0x8] sm:$0xff] }
0x18e5   :  { %1138 = vrot.lane.b32.xlu2 %v1137_v12, %s3652_s20  ;;  %v1357_v12 = vld [vmem:[%s4613_s4 + $0xf8] sm:$0xff] }
0x18e6   :  { %1380 = vmatpush.msrb.mxu1 %v1357_v12  ;;  %1361 = vmatpush.msra.mxu0 %v1340_v41 }
0x18e9   :  { %v3364_v37 = vpop.eup %3363 }
0x18ea   :  { %v1306_v44 = vrot.slane %v3364_v37, 2  ;;  %v1356_v37 = vld [vmem:[%s4613_s4 + $0xf0] sm:$0xff] }
0x18eb   :  { %1381 = vmatpush.msrb.mxu1 %v1356_v37  ;;  %v1420_v37 = vld [vmem:[%s4615_s6] sm:$0xff] }
0x18ec   :  { %v4021_v45 = vpack.i.bf16 %v1306_v44, %v1289_v43  ;;  %v1339_v43 = vld [vmem:[%s4613_s4 + $0x68] sm:$0xff] }
0x18ed   :  { %v1355_v44 = vld [vmem:[%s4613_s4 + $0xe8] sm:$0xff]  ;;  %1362 = vmatpush.msra.mxu0 %v1339_v43 }
0x18ee   :  { %1382 = vmatpush.msrb.mxu1 %v1355_v44  ;;  %v51_v44 = vld [vmem:[%s4610_s1] sm:$0x3] }
0x193f   :  { %v1139_v46 = vpop.permute.xlu2 %1138 }
0x1940   :  { %3161 = vmatmul.msk.f32.vlgmr.msrb.gmra.mxu2 %vm137_vm12, %v1139_v46  ;;  %v1354_v46 = vld [vmem:[%s4613_s4 + $0xe0] sm:$0xff] }
0x1941   :  { %1383 = vmatpush.msrb.mxu1 %v1354_v46  ;;  %v3654_v46 = vmov 0  }
0x1942   :  { %3237 = vset.pattern.permute.xlu1 %v3654_v46  ;;  %3238 = vset.pattern.permute.xlu0 %v3654_v46 }
0x19c3   :  { %v1159_v47 = vpop.f32.mrf.mxu2 }
0x19c4   :  { %v1163_v22 = vrot.slane %v1159_v47, 4  ;;  %v1337_v47 = vld [vmem:[%s4613_s4 + $0x58] sm:$0xff] }
0x19c6   :  { %v1165_v48 = vadd.f32 %v1163_v22, %v4000_v42  ;;  %v1353_v22 = vld [vmem:[%s4613_s4 + $0xd8] sm:$0xff] }
0x19c7   :  { %1384 = vmatpush.msrb.mxu1 %v1353_v22 }
0x19c8   :  { %3365 = vtanh.f32 %v1165_v48  ;;  %v1166_v50 = vsub.f32 0.0, %v1165_v48  ;;  %v1336_v48 = vld [vmem:[%s4613_s4 + $0x50] sm:$0xff] }
0x19ca   :  { %v1167_v52 = vmul.f32 1.442695, %v1166_v50  ;;  %v1335_v50 = vld [vmem:[%s4613_s4 + $0x48] sm:$0xff] }
0x19cc   :  { %3367 = vpow2.f32 %v1167_v52  ;;  %v1351_v52 = vld [vmem:[%s4613_s4 + $0xc8] sm:$0xff] }
0x19ce   :  { %v3366_v14 = vpop.eup %3365 }
0x19cf   :  { %1191 = vrot.lane.b32.xlu0 %v3366_v14, %s3651_s19  ;;  %v1352_v14 = vld [vmem:[%s4613_s4 + $0xd0] sm:$0xff] }
0x19d0   :  { %1385 = vmatpush.msrb.mxu1 %v1352_v14 }
0x19d2   :  { %v3368_v53 = vpop.eup %3367  ;;  %1386 = vmatpush.msrb.mxu1 %v1351_v52 }
0x19d3   :  { %v1169_v54 = vadd.f32 1.0, %v3368_v53 }
0x19d5   :  { %3369 = vrcp.f32 %v1169_v54  ;;  %v1181_v62 = vand.u32 2147483648, %v1169_v54  ;;  %vm1175_vm15 = vweird.f32 %v1169_v54  ;;  %v1179_v63 = vand.u32 2147483647, %v1169_v54 }
0x19d7   :  { %v1182_v8 = vor.u32 1.1754944e-38, %v1181_v62  ;;  %vm1180_vm9 = vcmp.eq.f32.partialorder %v1179_v63, 8.507059e+37  ;;  %v1332_v63 = vld [vmem:[%s4613_s4 + $0x30] sm:$0xff] }
0x19db   :  { %v3370_v10 = vpop.eup %3369 }
0x19dc   :  { %v1171_v56 = vmul.f32 %v3370_v10, %v1169_v54  ;;  %vm1176_vm14 = vweird.f32 %v3370_v10  ;;  %v1334_v54 = vld [vmem:[%s4613_s4 + $0x40] sm:$0xff] }
0x19dd   :  { %vm1177_vm8 = vmor %vm1175_vm15, %vm1176_vm14  ;;  %vm2964_vm14 = vcmask 254976  }
0x19de   :  { %v1172_v58 = vsub.f32 1.0, %v1171_v56 }
0x19e0   :  { %v1173_v59 = vmul.f32 %v3370_v10, %v1172_v58 }
0x19e2   :  { %v1174_v60 = vadd.f32 %v3370_v10, %v1173_v59  ;;  %v1333_v59 = vld [vmem:[%s4613_s4 + $0x38] sm:$0xff] }
0x19e4   :  { %v1178_v7 = vsel %vm1177_vm8, %v3370_v10, %v1174_v60  ;;  %v1350_v10 = vld [vmem:[%s4613_s4 + $0xc0] sm:$0xff]  ;;  %v1349_v60 = vld [vmem:[%s4613_s4 + $0xb8] sm:$0xff]  ;;  %vm1559_vm8 = vcmask 1042432  }
0x19e5   :  { %v1183_v9 = vsel %vm1180_vm9, %v1182_v8, %v1178_v7  ;;  %1387 = vmatpush.msrb.mxu1 %v1350_v10  ;;  %v1348_v7 = vld [vmem:[%s4613_s4 + $0xb0] sm:$0xff] }
0x19e6   :  { %v1189_v15 = vmul.f32 %v1187_v49, %v1183_v9  ;;  %v1346_v49 = vld [vmem:[%s4613_s4 + $0xa0] sm:$0xff] }
0x19e7   :  { %1388 = vmatpush.msrb.mxu1 %v1349_v60 }
0x19e9   :  { %1389 = vmatpush.msrb.mxu1 %v1348_v7 }
0x1a41   :  { %v1192_v55 = vpop.permute.xlu0 %1191 }
0x1a42   :  { %v1194_v11 = vmul.f32 %v1192_v55, %v1183_v9  ;;  %v1331_v55 = vld [vmem:[%s4613_s4 + $0x28] sm:$0xff] }
0x1a44   :  { %1196 = vrot.lane.b32.xlu1 %v1194_v11, %s3652_s20  ;;  %v1330_v11 = vld [vmem:[%s4613_s4 + $0x20] sm:$0xff] }
0x1ab6   :  { %v1197_v17 = vpop.permute.xlu1 %1196 }
0x1ab7   :  { %v4027_v18 = vadd.f32 %v1197_v17, %v1189_v15  ;;  %v1329_v15 = vld [vmem:[%s4613_s4 + $0x18] sm:$0xff] }
0x1ab8   :  { %v1345_v17 = vld [vmem:[%s4613_s4 + $0x98] sm:$0xff] }
0x1ab9   :  { %3371 = vtanh.f32 %v4027_v18  ;;  %v1257_v53 = vrot.slane %v4027_v18, 6  ;;  %v1328_v18 = vld [vmem:[%s4613_s4 + $0x10] sm:$0xff] }
0x1aba   :  { %3373 = vtanh.f32 %v3977_v51 }
0x1abf   :  { %v3372_v19 = vpop.eup %3371 }
0x1ac0   :  { %1202 = vrot.lane.b32.xlu2 %v3372_v19, %s3651_s19  ;;  %v3374_v23 = vpop.eup %3373  ;;  %v1344_v19 = vld [vmem:[%s4613_s4 + $0x90] sm:$0xff] }
0x1ac1   :  { %v1294_v2 = vrot.slane %v3374_v23, 4  ;;  %v1342_v23 = vld [vmem:[%s4613_s4 + $0x80] sm:$0xff] }
0x1b1a   :  { %v1203_v20 = vpop.permute.xlu2 %1202 }
0x1b1b   :  { %v1205_v13 = vmul.f32 %v1203_v20, %v1183_v9  ;;  %v1347_v9 = vld [vmem:[%s4613_s4 + $0xa8] sm:$0xff] }
0x1b1c   :  { %1390 = vmatpush.msrb.mxu1 %v1347_v9  ;;  %v1327_v20 = vld [vmem:[%s4613_s4 + $0x8] sm:$0xff] }
0x1b1d   :  { %v1207_v0 = vrot.slane %v1205_v13, 4  ;;  %3375 = vtanh.f32 %v1205_v13  ;;  %v1343_v13 = vld [vmem:[%s4613_s4 + $0x88] sm:$0xff] }
0x1b1e   :  { %1391 = vmatpush.msrb.mxu1 %v1346_v49  ;;  %v1479_v49 = vld [vmem:[%s4615_s6 + $0x48] sm:$0xff] }
0x1b1f   :  { %1208 = vrot.lane.b32.xlu0 %v1207_v0, %s3652_s20  ;;  %v1326_v0 = vld [vmem:[%s4613_s4] sm:$0xff]  ;;  %1497 = vmatpush.msrb.mxu3 %v1479_v49 }
0x1b20   :  { %1392 = vmatpush.msrb.mxu1 %v1345_v17  ;;  %v1478_v17 = vld [vmem:[%s4615_s6 + $0x40] sm:$0xff] }
0x1b21   :  { %1498 = vmatpush.msrb.mxu3 %v1478_v17 }
0x1b22   :  { %1393 = vmatpush.msrb.mxu1 %v1344_v19 }
0x1b23   :  { %v3376_v57 = vpop.eup %3375 }
0x1b24   :  { %v1311_v25 = vrot.slane %v3376_v57, 4  ;;  %1394 = vmatpush.msrb.mxu1 %v1343_v13 }
0x1b26   :  { %v4033_v24 = vpack.i.bf16 %v1311_v25, %v1294_v2  ;;  %1395 = vmatpush.msrb.mxu1 %v1342_v23 }
0x1b91   :  { %v1209_v5 = vpop.permute.xlu0 %1208 }
0x1b92   :  { %3162 = vmatmul.msk.f32.vlgmr.msra.gmra.mxu3 %vm137_vm12, %v1209_v5 }
0x1c15   :  { %v1229_v6 = vpop.f32.mrf.mxu3 }
0x1c16   :  { %v1233_v26 = vrot.slane %v1229_v6, 2 }
0x1c18   :  { %v1235_v27 = vadd.f32 %v1233_v26, %v4000_v42 }
0x1c1a   :  { %3377 = vtanh.f32 %v1235_v27  ;;  %v1236_v28 = vsub.f32 0.0, %v1235_v27 }
0x1c1c   :  { %v1237_v29 = vmul.f32 1.442695, %v1236_v28 }
0x1c1e   :  { %3379 = vpow2.f32 %v1237_v29 }
0x1c20   :  { %v3378_v51 = vpop.eup %3377 }
0x1c21   :  { %1261 = vrot.lane.b32.xlu1 %v3378_v51, %s3651_s19 }
0x1c24   :  { %v3380_v30 = vpop.eup %3379 }
0x1c25   :  { %v1239_v31 = vadd.f32 1.0, %v3380_v30 }
0x1c27   :  { %3381 = vrcp.f32 %v1239_v31  ;;  %v1251_v36 = vand.u32 2147483648, %v1239_v31  ;;  %vm1245_vm2 = vweird.f32 %v1239_v31  ;;  %v1249_v3 = vand.u32 2147483647, %v1239_v31 }
0x1c29   :  { %3223 = vrot.lane.b32.xlu1 %v3222_v61, %s3652_s20  ;;  %v1252_v39 = vor.u32 1.1754944e-38, %v1251_v36  ;;  %vm1250_vm4 = vcmp.eq.f32.partialorder %v1249_v3, 8.507059e+37 }
0x1c2d   :  { %v3382_v32 = vpop.eup %3381 }
0x1c2e   :  { %v1241_v33 = vmul.f32 %v3382_v32, %v1239_v31  ;;  %vm1246_vm1 = vweird.f32 %v3382_v32 }
0x1c2f   :  { %vm1247_vm3 = vmor %vm1245_vm2, %vm1246_vm1  ;;  %vm1528_vm1 = vcmask 130048   ;;  %vm1555_vm2 = vcmask 23552  }
0x1c30   :  { %v1242_v34 = vsub.f32 1.0, %v1241_v33 }
0x1c31   :  { %1427 = vperm.xlu1 %3237, %v51_v44  }
0x1c32   :  { %v1243_v35 = vmul.f32 %v3382_v32, %v1242_v34 }
0x1c34   :  { %v1244_v42 = vadd.f32 %v3382_v32, %v1243_v35 }
0x1c36   :  { %v1248_v38 = vsel %vm1247_vm3, %v3382_v32, %v1244_v42  ;;  %vm2966_vm3 = vcmask 17408  }
0x1c37   :  { %v4042_v1 = vsel %vm1250_vm4, %v1252_v39, %v1248_v38  ;;  %v1358_v38 = vld [vmem:[%s4613_s4 + $0x100] sm:$0x7]  ;;  %v1423_v39 = vld [vmem:[%s4615_s6 + $0x18] sm:$0xff] }
0x1c38   :  { %v1259_v56 = vmul.f32 %v1257_v53, %v4042_v1  ;;  %1447 = vmatpush.msra.mxu2 %v1423_v39  ;;  %v1524_v39 = vld [vmem:[%s4615_s6 + $0x58] sm:$0xff] }
0x1c93   :  { %v1262_v16 = vpop.permute.xlu1 %1261 }
0x1c94   :  { %v1264_v61 = vmul.f32 %v1262_v16, %v4042_v1  ;;  %v1359_v16 = vperm.slane %v1358_v38, 0 }
0x1c96   :  { %1266 = vrot.lane.b32.xlu2 %v1264_v61, %s3652_s20 }
0x1c9e   :  { %3228 = vrot.lane.b32.xlu2 %v4021_v45, %s3651_s19  ;;  %v1338_v45 = vld [vmem:[%s4613_s4 + $0x60] sm:$0xff]  ;;  %s3099_s4 = sshll.u32 %s4618_s9, 4  ;;  %s3100_s4 = int_to_ptr.hbm [resolvable:$true] %s3099_s4 }
0x1c9f   :  { %1363 = vmatpush.msra.mxu0 %v1338_v45 }
0x1ca1   :  { %1364 = vmatpush.msra.mxu0 %v1337_v47 }
0x1ca3   :  { %1365 = vmatpush.msra.mxu0 %v1336_v48 }
0x1ca5   :  { %1366 = vmatpush.msra.mxu0 %v1335_v50 }
0x1ca7   :  { %1367 = vmatpush.msra.mxu0 %v1334_v54 }
0x1ca9   :  { %1368 = vmatpush.msra.mxu0 %v1333_v59 }
0x1cab   :  { %1369 = vmatpush.msra.mxu0 %v1332_v63 }
0x1cad   :  { %1370 = vmatpush.msra.mxu0 %v1331_v55  ;;  %v3241_v55 = vld [vmem:[%s4615_s6 + $0x20] ss:$0 sm:$0xff] }
0x1caf   :  { %1371 = vmatpush.msra.mxu0 %v1330_v11  ;;  %v1419_v11 = vld [vmem:[%s4615_s6 + $0x28] sm:$0x7] }
0x1cb1   :  { %1372 = vmatpush.msra.mxu0 %v1329_v15 }
0x1cb3   :  { %1373 = vmatpush.msra.mxu0 %v1328_v18  ;;  %v1455_v18 = vperm.slane %v1419_v11, 0 }
0x1cb5   :  { %1374 = vmatpush.msra.mxu0 %v1327_v20  ;;  %v1477_v20 = vld [vmem:[%s4615_s6 + $0x38] sm:$0xff] }
0x1cb6   :  { %1499 = vmatpush.msrb.mxu3 %v1477_v20 }
0x1cb7   :  { %1375 = vmatpush.msra.mxu0 %v1326_v0  ;;  %v1476_v0 = vld [vmem:[%s4615_s6 + $0x30] sm:$0xff] }
0x1cb8   :  { %1500 = vmatpush.msrb.mxu3 %v1476_v0 }
0x1cf0   :  { %v1267_v58 = vpop.permute.xlu2 %1266 }
0x1cf1   :  { %v1269_v62 = vadd.f32 %v1267_v58, %v1259_v56  ;;  %v1415_v58 = vperm.slane %v1358_v38, 1 }
0x1cf3   :  { %3383 = vtanh.f32 %v1269_v62  ;;  %v1417_v62 = vperm.slane %v1358_v38, 2 }
0x1cf4   :  { %3385 = vtanh.f32 %v3994_v4 }
0x1cf8   :  { %v3229_v25 = vpop.permute.xlu2 %3228 }
0x1cf9   :  { %v3384_v8 = vpop.eup %3383  ;;  %v3231_v5 = vunpack.i.h.bf16 %v3229_v25  ;;  %v3230_v6 = vunpack.i.l.bf16 %v3229_v25 }
0x1cfa   :  { %1272 = vrot.lane.b32.xlu0 %v3384_v8, %s3651_s19  ;;  %v3386_v26 = vpop.eup %3385 }
0x1cfb   :  { %v1299_v32 = vrot.slane %v3386_v26, 6 }
0x1d02   :  { %3233 = vrot.lane.b32.xlu0 %v4033_v24, %s3653_s2  ;;  %v3224_v24 = vpop.permute.xlu1 %3223 }
0x1d03   :  { %v3226_v27 = vunpack.i.h.bf16 %v3224_v24  ;;  %v3225_v51 = vunpack.i.l.bf16 %v3224_v24 }
0x1d05   :  { %v1318_v33 = vsel %vm137_vm12, %v3225_v51, %v3230_v6  ;;  %v1323_v4 = vsel %vm137_vm12, %v3226_v27, %v3231_v5 }
0x1d0a   :  { %v1428_v9 = vpop.permute.xlu1 %1427 }
0x1d0b   :  { %v1431_v15 = vmul.f32 %v3241_v55, %v1428_v9 }
0x1d6c   :  { %v1273_v57 = vpop.permute.xlu0 %1272 }
0x1d6d   :  { %v1275_v2 = vmul.f32 %v1273_v57, %v4042_v1  ;;  %v1422_v1 = vld [vmem:[%s4615_s6 + $0x10] sm:$0xff] }
0x1d6e   :  { %1448 = vmatpush.msra.mxu2 %v1422_v1  ;;  %v1552_v1 = vld [vmem:[%s4615_s6 + $0x70] sm:$0x7] }
0x1d6f   :  { %3387 = vtanh.f32 %v1275_v2  ;;  %3166 = vmatpush.msk.msra.mxu3 %vm1559_vm8, %v1552_v1 }
0x1d70   :  { %1449 = vmatpush.msra.mxu2 %v1421_v40 }
0x1d72   :  { %1450 = vmatpush.msra.mxu2 %v1420_v37 }
0x1d74   :  { %v3234_v28 = vpop.permute.xlu0 %3233 }
0x1d75   :  { %v3388_v29 = vpop.eup %3387  ;;  %v3236_v30 = vunpack.i.h.bf16 %v3234_v28  ;;  %v3235_v31 = vunpack.i.l.bf16 %v3234_v28 }
0x1d76   :  { %v1316_v34 = vrot.slane %v3388_v29, 6 }
0x1d77   :  { %v1320_v35 = vsel %vm1319_vm10, %v1318_v33, %v3235_v31  ;;  %v1324_v42 = vsel %vm1319_vm10, %v1323_v4, %v3236_v30  ;;  %v1472_v31 = vperm.slane %v1419_v11, 1  ;;  %v1474_v4 = vperm.slane %v1419_v11, 2 }
0x1d78   :  { %v1322_v36 = vsel %vm1321_vm11, %v1320_v35, %v1299_v32  ;;  %v1325_v3 = vsel %vm1321_vm11, %v1324_v42, %v1316_v34  ;;  %v1480_v42 = vld [vmem:[%s4615_s6 + $0x50] sm:$0x7] }
0x1d79   :  { %1376 = vmatmul.f32.vlgmr.msra.gmra.mxu0 %v1322_v36  ;;  %1396 = vmatmul.f32.vlgmr.msrb.gmra.mxu1 %v1325_v3  ;;  %v1481_v36 = vperm.slane %v1480_v42, 0  ;;  %v1525_v3 = vld [vmem:[%s4615_s6 + $0x60] sm:$0xff] }
0x1d7a   :  { %1546 = vmatpush.msrb.mxu2 %v1525_v3 }
0x1d7c   :  { %1547 = vmatpush.msrb.mxu2 %v1524_v39 }
0x1df6   :  { %v1377_v61 = vpop.f32.mrf.mxu0  ;;  %v1397_v41 = vpop.f32.mrf.mxu1 }
0x1df7   :  { %v1378_v12 = vadd.f32 %v1377_v61, %v1359_v16 }
0x1df9   :  { %v1398_v43 = vadd.f32 %v1397_v41, %v1378_v12 }
0x1dfb   :  { %v1401_v45 = vand.u32 2147483647, %v1398_v43  ;;  %v1400_v59 = vmax.f32 %v1398_v43, 0.0 }
0x1dfd   :  { %v1402_v47 = vsub.f32 0.0, %v1401_v45 }
0x1dff   :  { %v1403_v22 = vmul.f32 1.442695, %v1402_v47 }
0x1e01   :  { %3389 = vpow2.f32 %v1403_v22 }
0x1e07   :  { %v3390_v48 = vpop.eup %3389 }
0x1e08   :  { %v1405_v14 = vadd.f32 1.0, %v3390_v48  ;;  %v1408_v50 = vmul.f32 -0.5, %v3390_v48  ;;  %v1411_v53 = vand.u32 2147483647, %v3390_v48 }
0x1e0a   :  { %3391 = vlog2.f32 %v1405_v14  ;;  %v1409_v52 = vadd.f32 1.0, %v1408_v50  ;;  %vm1412_vm13 = vcmp.lt.f32.partialorder %v1411_v53, 0.0004427343  ;;  %v1520_v14 = vperm.slane %v1480_v42, 1 }
0x1e0b   :  { %v1522_v53 = vperm.slane %v1480_v42, 2 }
0x1e0c   :  { %v1410_v56 = vmul.f32 %v3390_v48, %v1409_v52 }
0x1e10   :  { %v3392_v54 = vpop.eup %3391 }
0x1e11   :  { %v1407_v10 = vmul.f32 0.6931472, %v3392_v54 }
0x1e13   :  { %v1413_v60 = vsel %vm1412_vm13, %v1410_v56, %v1407_v10  ;;  %v3242_v56 = vld [vmem:[%s4615_s6 + $0x68] ss:$0 sm:$0xff] }
0x1e14   :  { %v1414_v63 = vadd.f32 %v1413_v60, %v1400_v59  ;;  %v1553_v60 = vld [vmem:[%s4615_s6 + $0x78] sm:$0x7] }
0x1e16   :  { %v1416_v7 = vmul.f32 %v1415_v58, %v1414_v63  ;;  %v1603_v63 = vld [vmem:[%s4615_s6 + $0x88] sm:$0xff] }
0x1e18   :  { %v1418_v8 = vadd.f32 %v1417_v62, %v1416_v7  ;;  %v1554_v62 = vperm.slane %v1553_v60, 0 }
0x1e1a   :  { %3163 = vmatmul.msk.f32.vlgmr.msra.gmra.mxu2 %vm137_vm12, %v1418_v8  ;;  %2965 = vst.msk [vmem:[#allocation6] sm:$0x3] %vm2964_vm14, %v1418_v8  ;;  %v1602_v8 = vld [vmem:[%s4615_s6 + $0x80] sm:$0xff] }
0x1e1b   :  { %1623 = vmatpush.msra.mxu2 %v1603_v63  ;;  %3113 = dma.vmem_to_hbm [thread:$0]  %s3109_s24, 32, %s3111_s22, [#allocation7]  }
0x1e1d   :  { %1624 = vmatpush.msra.mxu2 %v1602_v8 }
0x1e9d   :  { %v1452_v19 = vpop.f32.mrf.mxu2 }
0x1e9e   :  { %v1453_v13 = vadd.f32 %v1452_v19, %v1431_v15 }
0x1ea0   :  { %v1456_v23 = vadd.f32 %v1455_v18, %v1453_v13 }
0x1ea2   :  { %v1458_v57 = vand.u32 2147483647, %v1456_v23  ;;  %v1457_v30 = vmax.f32 %v1456_v23, 0.0 }
0x1ea4   :  { %v1459_v2 = vsub.f32 0.0, %v1458_v57 }
0x1ea6   :  { %v1460_v25 = vmul.f32 1.442695, %v1459_v2  ;;  %v1598_v2 = vperm.slane %v1553_v60, 1 }
0x1ea8   :  { %3393 = vpow2.f32 %v1460_v25 }
0x1eae   :  { %v3394_v24 = vpop.eup %3393 }
0x1eaf   :  { %v1462_v5 = vadd.f32 1.0, %v3394_v24  ;;  %v1465_v6 = vmul.f32 -0.5, %v3394_v24  ;;  %v1468_v27 = vand.u32 2147483647, %v3394_v24 }
0x1eb1   :  { %3395 = vlog2.f32 %v1462_v5  ;;  %v1466_v26 = vadd.f32 1.0, %v1465_v6  ;;  %vm1469_vm15 = vcmp.lt.f32.partialorder %v1468_v27, 0.0004427343  ;;  %v1600_v5 = vperm.slane %v1553_v60, 2  ;;  %v1604_v27 = vld [vmem:[%s4615_s6 + $0x90] sm:$0x7] }
0x1eb3   :  { %v1467_v29 = vmul.f32 %v3394_v24, %v1466_v26 }
0x1eb7   :  { %v3396_v51 = vpop.eup %3395 }
0x1eb8   :  { %v1464_v28 = vmul.f32 0.6931472, %v3396_v51  ;;  %v1651_v51 = vld [vmem:[%s4615_s6 + $0xb0] sm:$0xff] }
0x1eba   :  { %v1470_v32 = vsel %vm1469_vm15, %v1467_v29, %v1464_v28  ;;  %v1650_v28 = vld [vmem:[%s4615_s6 + $0xa8] sm:$0xff]  ;;  %v1605_v29 = vperm.slane %v1604_v27, 0 }
0x1ebb   :  { %v1471_v33 = vadd.f32 %v1470_v32, %v1457_v30  ;;  %v1649_v30 = vld [vmem:[%s4615_s6 + $0xa0] sm:$0xff]  ;;  %v1648_v32 = vld [vmem:[%s4615_s6 + $0x98] sm:$0xff] }
0x1ebd   :  { %v1473_v34 = vmul.f32 %v1472_v31, %v1471_v33 }
0x1ebf   :  { %v1475_v35 = vadd.f32 %v1474_v4, %v1473_v34 }
0x1ec1   :  { %3164 = vmatmul.msk.f32.vlgmr.msrb.gmra.mxu3 %vm137_vm12, %v1475_v35 }
0x1ec2   :  { %1669 = vmatpush.msrb.mxu3 %v1651_v51  ;;  %v1759_v51 = vld [vmem:[%s4612_s3 + $0x18] sm:$0xff] }
0x1ec3   :  { %1813 = vmatpush.msrb.mxu0 %v1759_v51 }
0x1ec4   :  { %1670 = vmatpush.msrb.mxu3 %v1650_v28  ;;  %v1758_v28 = vld [vmem:[%s4612_s3 + $0x10] sm:$0xff] }
0x1ec5   :  { %1814 = vmatpush.msrb.mxu0 %v1758_v28 }
0x1ec6   :  { %1671 = vmatpush.msrb.mxu3 %v1649_v30  ;;  %v1757_v30 = vld [vmem:[%s4612_s3 + $0x8] sm:$0xff] }
0x1ec7   :  { %1815 = vmatpush.msrb.mxu0 %v1757_v30 }
0x1ec8   :  { %1672 = vmatpush.msrb.mxu3 %v1648_v32 }
0x1f44   :  { %v1502_v38 = vpop.f32.mrf.mxu3 }
0x1f45   :  { %v1503_v16 = vadd.f32 %v1502_v38, %v1481_v36 }
0x1f47   :  { %v1506_v61 = vand.u32 2147483647, %v1503_v16  ;;  %v1505_v48 = vmax.f32 %v1503_v16, 0.0 }
0x1f49   :  { %v1507_v40 = vsub.f32 0.0, %v1506_v61 }
0x1f4b   :  { %v1508_v12 = vmul.f32 1.442695, %v1507_v40 }
0x1f4d   :  { %3397 = vpow2.f32 %v1508_v12  ;;  %v1644_v12 = vperm.slane %v1604_v27, 1 }
0x1f53   :  { %v3398_v41 = vpop.eup %3397 }
0x1f54   :  { %v1510_v37 = vadd.f32 1.0, %v3398_v41  ;;  %v1513_v43 = vmul.f32 -0.5, %v3398_v41  ;;  %v1516_v45 = vand.u32 2147483647, %v3398_v41 }
0x1f56   :  { %3399 = vlog2.f32 %v1510_v37  ;;  %v1514_v44 = vadd.f32 1.0, %v1513_v43  ;;  %vm1517_vm9 = vcmp.lt.f32.partialorder %v1516_v45, 0.0004427343  ;;  %v1646_v43 = vperm.slane %v1604_v27, 2 }
0x1f58   :  { %v1515_v22 = vmul.f32 %v3398_v41, %v1514_v44 }
0x1f5c   :  { %v3400_v46 = vpop.eup %3399 }
0x1f5d   :  { %v1512_v47 = vmul.f32 0.6931472, %v3400_v46  ;;  %v1652_v46 = vld [vmem:[%s4615_s6 + $0xb8] sm:$0x7]  ;;  %s3119_s6 = sshll.u32 %s3661_s13, 4  ;;  %s3120_s6 = int_to_ptr.vmem [resolvable:$true] %s3119_s6 }
0x1f5f   :  { %v1518_v50 = vsel %vm1517_vm9, %v1515_v22, %v1512_v47  ;;  %v1702_v47 = vld [vmem:[#allocation2 + $0x30] sm:$0xff]  ;;  %v1703_v22 = vld [vmem:[#allocation2 + $0x38] sm:$0xff] }
0x1f60   :  { %v1519_v52 = vadd.f32 %v1518_v50, %v1505_v48  ;;  %v1700_v48 = vld [vmem:[#allocation2 + $0x20] sm:$0xff]  ;;  %v1653_v50 = vperm.slane %v1652_v46, 0 }
0x1f62   :  { %v1521_v54 = vmul.f32 %v1520_v14, %v1519_v52  ;;  %v1701_v14 = vld [vmem:[#allocation2 + $0x28] sm:$0xff]  ;;  %v1698_v52 = vld [vmem:[#allocation2 + $0x10] sm:$0xff] }
0x1f64   :  { %v1523_v10 = vadd.f32 %v1522_v53, %v1521_v54  ;;  %v1699_v53 = vld [vmem:[#allocation2 + $0x18] sm:$0xff] }
0x1f66   :  { %3165 = vmatmul.msk.f32.vlgmr.msrb.gmra.mxu2 %vm1528_vm1, %v1523_v10  ;;  %v1696_v10 = vld [vmem:[#allocation2] sm:$0xff] }
0x1f67   :  { %1726 = vmatpush.msrb.mxu2 %v1702_v47 }
0x1f69   :  { %1727 = vmatpush.msrb.mxu2 %v1700_v48 }
0x1f6b   :  { %1728 = vmatpush.msrb.mxu2 %v1698_v52 }
0x1f6d   :  { %1729 = vmatpush.msrb.mxu2 %v1696_v10 }
0x1fe9   :  { %v1549_v58 = vpop.f32.mrf.mxu2 }
0x1fea   :  { %v1550_v59 = vadd.f32 %v3242_v56, %v1549_v58  ;;  %v1697_v56 = vld [vmem:[#allocation2 + $0x8] sm:$0xff] }
0x1fec   :  { %3167 = vmatmul.msk.f32.vlgmr.msra.gmra.mxu3 %vm1555_vm2, %v1550_v59  ;;  %2967 = vst.msk [vmem:[#allocation5] sm:$0x3] %vm2966_vm3, %v1550_v59 }
0x1fed   :  { %1746 = vmatpush.msra.mxu3 %v1703_v22  ;;  %3102 = dma.vmem_to_hbm [thread:$0]  %s3098_s12, 32, %s3100_s4, [#allocation4]  }
0x1fef   :  { %1747 = vmatpush.msra.mxu3 %v1701_v14 }
0x1ff1   :  { %1748 = vmatpush.msra.mxu3 %v1699_v53 }
0x1ff3   :  { %1749 = vmatpush.msra.mxu3 %v1697_v56 }
0x206f   :  { %v1580_v7 = vpop.f32.mrf.mxu3 }
0x2070   :  { %v1581_v55 = vadd.f32 %v1580_v7, %v1554_v62 }
0x2072   :  { %v1584_v9 = vand.u32 2147483647, %v1581_v55  ;;  %v1583_v57 = vmax.f32 %v1581_v55, 0.0 }
0x2074   :  { %v1585_v11 = vsub.f32 0.0, %v1584_v9 }
0x2076   :  { %v1586_v49 = vmul.f32 1.442695, %v1585_v11 }
0x2078   :  { %3401 = vpow2.f32 %v1586_v49 }
0x207e   :  { %v3402_v15 = vpop.eup %3401 }
0x207f   :  { %v1588_v17 = vadd.f32 1.0, %v3402_v15  ;;  %v1591_v18 = vmul.f32 -0.5, %v3402_v15  ;;  %v1594_v20 = vand.u32 2147483647, %v3402_v15 }
0x2081   :  { %3403 = vlog2.f32 %v1588_v17  ;;  %v1592_v19 = vadd.f32 1.0, %v1591_v18  ;;  %vm1595_vm4 = vcmp.lt.f32.partialorder %v1594_v20, 0.0004427343  ;;  %v1692_v18 = vperm.slane %v1652_v46, 1 }
0x2083   :  { %v1593_v23 = vmul.f32 %v3402_v15, %v1592_v19 }
0x2087   :  { %v3404_v13 = vpop.eup %3403 }
0x2088   :  { %v1590_v0 = vmul.f32 0.6931472, %v3404_v13  ;;  %v1694_v13 = vperm.slane %v1652_v46, 2 }
0x208a   :  { %v1596_v25 = vsel %vm1595_vm4, %v1593_v23, %v1590_v0 }
0x208b   :  { %v1597_v24 = vadd.f32 %v1596_v25, %v1583_v57  ;;  %v4245_v57 = vld [vmem:[#allocation2 + $0x40] ss:$8 sm:$0x3] }
0x208d   :  { %v1599_v6 = vmul.f32 %v1598_v2, %v1597_v24  ;;  %v1707_v2 = vperm.slane %v4245_v57, 0 }
0x208f   :  { %v1601_v26 = vadd.f32 %v1600_v5, %v1599_v6 }
0x2091   :  { %3168 = vmatmul.msk.f32.vlgmr.msra.gmra.mxu2 %vm1528_vm1, %v1601_v26 }
0x2114   :  { %v1626_v31 = vpop.f32.mrf.mxu2 }
0x2115   :  { %v1627_v33 = vadd.f32 %v1626_v31, %v1605_v29  ;;  %v1760_v29 = vld [vmem:[%s4612_s3 + $0x20] sm:$0xf] }
0x2116   :  { %3174 = vmatpush.msk.msra.mxu1 %vm96_vm0, %v1760_v29  ;;  %3175 = vmatpush.msk.msra.mxu2 %vm96_vm0, %v1760_v29  ;;  %v1756_v31 = vld [vmem:[%s4612_s3] sm:$0xff] }
0x2117   :  { %v1630_v4 = vand.u32 2147483647, %v1627_v33  ;;  %v1629_v40 = vmax.f32 %v1627_v33, 0.0  ;;  %1845 = vmatmul.f32.vlgmr.msra.gmra.mxu1 %v3650_v21  ;;  %1816 = vmatpush.msrb.mxu0 %v1756_v31 }
0x2118   :  { %3179 = vmatpush.msk.msrb.mxu1 %vm96_vm0, %v1760_v29 }
0x2119   :  { %v1631_v34 = vsub.f32 0.0, %v1630_v4  ;;  %3185 = vmatpush.msk.msra.mxu0 %vm96_vm0, %v1760_v29 }
0x211a   :  { %3187 = vmatpush.msk.msra.mxu1 %vm96_vm0, %v1760_v29 }
0x211b   :  { %v1632_v35 = vmul.f32 1.442695, %v1631_v34 }
0x211d   :  { %3405 = vpow2.f32 %v1632_v35 }
0x2123   :  { %v3406_v42 = vpop.eup %3405 }
0x2124   :  { %v1634_v36 = vadd.f32 1.0, %v3406_v42  ;;  %v1637_v3 = vmul.f32 -0.5, %v3406_v42  ;;  %v1640_v39 = vand.u32 2147483647, %v3406_v42 }
0x2126   :  { %3407 = vlog2.f32 %v1634_v36  ;;  %v1638_v38 = vadd.f32 1.0, %v1637_v3  ;;  %vm1641_vm10 = vcmp.lt.f32.partialorder %v1640_v39, 0.0004427343  ;;  %v4282_v36 = vld [vmem:[%s4612_s3 + $0x28] ss:$0 sm:$0xff] }
0x2128   :  { %v1639_v61 = vmul.f32 %v3406_v42, %v1638_v38 }
0x212c   :  { %v3408_v16 = vpop.eup %3407 }
0x212d   :  { %v1636_v1 = vmul.f32 0.6931472, %v3408_v16 }
0x212f   :  { %v1642_v41 = vsel %vm1641_vm10, %v1639_v61, %v1636_v1 }
0x2130   :  { %v1643_v37 = vadd.f32 %v1642_v41, %v1629_v40 }
0x2132   :  { %v1645_v44 = vmul.f32 %v1644_v12, %v1643_v37 }
0x2134   :  { %v1647_v45 = vadd.f32 %v1646_v43, %v1645_v44 }
0x2136   :  { %3169 = vmatmul.msk.f32.vlgmr.msrb.gmra.mxu3 %vm137_vm12, %v1647_v45 }
0x2137   :  { %3177 = vmatpush.msk.msrb.mxu3 %vm96_vm0, %v1760_v29 }
0x2194   :  { %v1846_v38 = vpop.f32.mrf.mxu1 }
0x21b9   :  { %v1674_v54 = vpop.f32.mrf.mxu3 }
0x21ba   :  { %v1675_v58 = vadd.f32 %v1674_v54, %v1653_v50 }
0x21bc   :  { %v1678_v59 = vand.u32 2147483647, %v1675_v58  ;;  %v1677_v17 = vmax.f32 %v1675_v58, 0.0 }
0x21be   :  { %v1679_v60 = vsub.f32 0.0, %v1678_v59 }
0x21c0   :  { %v1680_v62 = vmul.f32 1.442695, %v1679_v60 }
0x21c2   :  { %3409 = vpow2.f32 %v1680_v62 }
0x21c8   :  { %v3410_v63 = vpop.eup %3409 }
0x21c9   :  { %v1682_v7 = vadd.f32 1.0, %v3410_v63  ;;  %v1685_v8 = vmul.f32 -0.5, %v3410_v63  ;;  %v1688_v9 = vand.u32 2147483647, %v3410_v63 }
0x21cb   :  { %3411 = vlog2.f32 %v1682_v7  ;;  %v1686_v55 = vadd.f32 1.0, %v1685_v8  ;;  %vm1689_vm11 = vcmp.lt.f32.partialorder %v1688_v9, 0.0004427343 }
0x21cd   :  { %v1687_v15 = vmul.f32 %v3410_v63, %v1686_v55 }
0x21d1   :  { %v3412_v11 = vpop.eup %3411 }
0x21d2   :  { %v1684_v49 = vmul.f32 0.6931472, %v3412_v11 }
0x21d4   :  { %v1690_v19 = vsel %vm1689_vm11, %v1687_v15, %v1684_v49 }
0x21d5   :  { %v1691_v20 = vadd.f32 %v1690_v19, %v1677_v17 }
0x21d7   :  { %v1693_v0 = vmul.f32 %v1692_v18, %v1691_v20 }
0x21d9   :  { %v4237_v23 = vadd.f32 %v1694_v13, %v1693_v0 }
0x21db   :  { %3170 = vmatmul.msk.f32.vlgmr.msrb.gmra.mxu2 %vm137_vm12, %v4237_v23  ;;  %3171 = vmatmul.msk.f32.vlgmr.msra.gmra.mxu3 %vm137_vm12, %v4237_v23  ;;  %2968 = vst.msk [vmem:[#allocation8] sm:$0x3] %vm2964_vm14, %v4237_v23 }
0x21dc   :  { %3181 = vmatpush.msk.msrb.mxu2 %vm96_vm0, %v1760_v29  ;;  %3183 = vmatpush.msk.msra.mxu3 %vm96_vm0, %v1760_v29  ;;  %3124 = dma.vmem_to_hbm [thread:$0]  %s3120_s6, 32, %s3122_s15, [#allocation7]  }
0x225e   :  { %v1731_v25 = vpop.f32.mrf.mxu2 }
0x225f   :  { %v1732_v24 = vadd.f32 %v1731_v25, %v1707_v2 }
0x2261   :  { %3413 = vtanh.f32 %v1732_v24 }
0x2267   :  { %v3414_v5 = vpop.eup %3413 }
0x2268   :  { %v1771_v6 = vrot.slane %v3414_v5, 2  ;;  %v1767_v26 = vrot.slane %v3414_v5, 4  ;;  %v1763_v27 = vrot.slane %v3414_v5, 6 }
0x226a   :  { %1772 = vrot.lane.b32.xlu1 %v1771_v6, %s3652_s20  ;;  %1768 = vrot.lane.b32.xlu0 %v1767_v26, %s3651_s19 }
0x226b   :  { %1764 = vrot.lane.b32.xlu2 %v1763_v27, %s3653_s2 }
0x22c5   :  { %v1765_v32 = vpop.permute.xlu2 %1764 }
0x22c6   :  { %v1788_v33 = vsel %vm94_vm5, %v3414_v5, %v1765_v32 }
0x22dc   :  { %v1773_v4 = vpop.permute.xlu1 %1772  ;;  %v1769_v34 = vpop.permute.xlu0 %1768 }
0x22dd   :  { %v1789_v35 = vsel %vm96_vm0, %v1788_v33, %v1769_v34  ;;  %v4302_v34 = vpop.f32.mrf.mxu3 }
0x22de   :  { %v1790_v42 = vsel %vm98_vm6, %v1789_v35, %v1773_v4 }
0x22df   :  { %3172 = vmatmul.msk.f32.vlgmr.msrb.gmra.mxu0 %vm137_vm12, %v1790_v42 }
0x235c   :  { %v1818_v3 = vpop.f32.mrf.mxu0 }
0x235d   :  { %v4285_v39 = vadd.f32 %v4282_v36, %v1818_v3 }
0x235f   :  { %v1849_v16 = vadd.f32 %v1846_v38, %v4285_v39 }
0x2361   :  { %3415 = vtanh.f32 %v1849_v16  ;;  %v1850_v61 = vsub.f32 0.0, %v1849_v16 }
0x2363   :  { %v1851_v40 = vmul.f32 1.442695, %v1850_v61 }
0x2365   :  { %3417 = vpow2.f32 %v1851_v40 }
0x2367   :  { %v3416_v1 = vpop.eup %3415 }
0x2368   :  { %1872 = vrot.lane.b32.xlu2 %v3416_v1, %s3655_s25 }
0x236b   :  { %v3418_v12 = vpop.eup %3417 }
0x236c   :  { %v1853_v41 = vadd.f32 1.0, %v3418_v12 }
0x236e   :  { %3419 = vrcp.f32 %v1853_v41  ;;  %v1865_v47 = vand.u32 2147483648, %v1853_v41  ;;  %vm1859_vm14 = vweird.f32 %v1853_v41  ;;  %v1863_v22 = vand.u32 2147483647, %v1853_v41 }
0x2370   :  { %v1866_v14 = vor.u32 1.1754944e-38, %v1865_v47  ;;  %vm1864_vm8 = vcmp.eq.f32.partialorder %v1863_v22, 8.507059e+37 }
0x2374   :  { %v3420_v37 = vpop.eup %3419 }
0x2375   :  { %v1855_v43 = vmul.f32 %v3420_v37, %v1853_v41  ;;  %vm1860_vm13 = vweird.f32 %v3420_v37 }
0x2376   :  { %vm1861_vm15 = vmor %vm1859_vm14, %vm1860_vm13 }
0x2377   :  { %v1856_v44 = vsub.f32 1.0, %v1855_v43 }
0x2379   :  { %v1857_v45 = vmul.f32 %v3420_v37, %v1856_v44 }
0x237b   :  { %v1858_v46 = vadd.f32 %v3420_v37, %v1857_v45 }
0x237d   :  { %v1862_v48 = vsel %vm1861_vm15, %v3420_v37, %v1858_v46 }
0x237e   :  { %v1867_v52 = vsel %vm1864_vm8, %v1866_v14, %v1862_v48 }
0x237f   :  { %v1870_v54 = vmul.f32 0.0, %v1867_v52 }
0x23c2   :  { %v1873_v50 = vpop.permute.xlu2 %1872 }
0x23c3   :  { %v1875_v53 = vmul.f32 %v1873_v50, %v1867_v52 }
0x23c5   :  { %1877 = vrot.lane.b32.xlu0 %v1875_v53, %s3656_s26 }
0x2437   :  { %v1878_v10 = vpop.permute.xlu0 %1877 }
0x2438   :  { %v1880_v56 = vadd.f32 %v1878_v10, %v1870_v54 }
0x243a   :  { %3421 = vtanh.f32 %v1880_v56  ;;  %v1937_v27 = vrot.slane %v1880_v56, 6 }
0x2440   :  { %v3422_v58 = vpop.eup %3421 }
0x2441   :  { %1883 = vrot.lane.b32.xlu1 %v3422_v58, %s3657_s27 }
0x24b3   :  { %v1884_v59 = vpop.permute.xlu1 %1883 }
0x24b4   :  { %v4291_v60 = vmul.f32 %v1884_v59, %v1867_v52 }
0x24b6   :  { %1888 = vrot.lane.b32.xlu2 %v4291_v60, %s3658_s28 }
0x2510   :  { %v1889_v62 = vpop.permute.xlu2 %1888 }
0x2511   :  { %3176 = vmatmul.msk.f32.vlgmr.msra.gmra.mxu2 %vm104_vm7, %v1889_v62 }
0x2594   :  { %v1909_v63 = vpop.f32.mrf.mxu2 }
0x2595   :  { %v1913_v7 = vrot.slane %v1909_v63, 6 }
0x2597   :  { %v1915_v8 = vadd.f32 %v1913_v7, %v4285_v39 }
0x2599   :  { %3423 = vtanh.f32 %v1915_v8  ;;  %v1916_v9 = vsub.f32 0.0, %v1915_v8 }
0x259b   :  { %v1917_v11 = vmul.f32 1.442695, %v1916_v9 }
0x259d   :  { %3425 = vpow2.f32 %v1917_v11 }
0x259f   :  { %v3424_v55 = vpop.eup %3423 }
0x25a0   :  { %1941 = vrot.lane.b32.xlu0 %v3424_v55, %s3655_s25 }
0x25a3   :  { %v3426_v49 = vpop.eup %3425 }
0x25a4   :  { %v1919_v15 = vadd.f32 1.0, %v3426_v49 }
0x25a6   :  { %3427 = vrcp.f32 %v1919_v15  ;;  %v1931_v0 = vand.u32 2147483648, %v1919_v15  ;;  %vm1925_vm1 = vweird.f32 %v1919_v15  ;;  %v1929_v2 = vand.u32 2147483647, %v1919_v15 }
0x25a8   :  { %v1932_v24 = vor.u32 1.1754944e-38, %v1931_v0  ;;  %vm1930_vm3 = vcmp.eq.f32.partialorder %v1929_v2, 8.507059e+37  ;;  %v1708_v2 = vperm.slane %v4245_v57, 1 }
0x25ac   :  { %v3428_v17 = vpop.eup %3427 }
0x25ad   :  { %v1921_v18 = vmul.f32 %v3428_v17, %v1919_v15  ;;  %vm1926_vm9 = vweird.f32 %v3428_v17 }
0x25ae   :  { %vm1927_vm2 = vmor %vm1925_vm1, %vm1926_vm9 }
0x25af   :  { %v1922_v19 = vsub.f32 1.0, %v1921_v18 }
0x25b1   :  { %v1923_v20 = vmul.f32 %v3428_v17, %v1922_v19 }
0x25b3   :  { %v1924_v13 = vadd.f32 %v3428_v17, %v1923_v20 }
0x25b5   :  { %v1928_v25 = vsel %vm1927_vm2, %v3428_v17, %v1924_v13 }
0x25b6   :  { %v1933_v6 = vsel %vm1930_vm3, %v1932_v24, %v1928_v25 }
0x25b7   :  { %v1939_v51 = vmul.f32 %v1937_v27, %v1933_v6 }
0x2612   :  { %v1942_v5 = vpop.permute.xlu0 %1941 }
0x2613   :  { %v1944_v26 = vmul.f32 %v1942_v5, %v1933_v6  ;;  %v1752_v5 = vadd.f32 %v4302_v34, %v1708_v2 }
0x2615   :  { %1946 = vrot.lane.b32.xlu1 %v1944_v26, %s3656_s26 }
0x2687   :  { %v1947_v28 = vpop.permute.xlu1 %1946 }
0x2688   :  { %v1949_v29 = vadd.f32 %v1947_v28, %v1939_v51 }
0x268a   :  { %3429 = vtanh.f32 %v1949_v29  ;;  %v2007_v52 = vrot.slane %v1949_v29, 6 }
0x2690   :  { %v3430_v30 = vpop.eup %3429 }
0x2691   :  { %1952 = vrot.lane.b32.xlu2 %v3430_v30, %s3657_s27 }
0x26eb   :  { %v1953_v31 = vpop.permute.xlu2 %1952 }
0x26ec   :  { %v1955_v32 = vmul.f32 %v1953_v31, %v1933_v6 }
0x26ee   :  { %v1957_v33 = vrot.slane %v1955_v32, 2  ;;  %v2375_v62 = vsel %vm94_vm5, %v4291_v60, %v1955_v32 }
0x26f0   :  { %1958 = vrot.lane.b32.xlu0 %v1957_v33, %s3658_s28 }
0x2762   :  { %v1959_v4 = vpop.permute.xlu0 %1958 }
0x2763   :  { %3178 = vmatmul.msk.f32.vlgmr.msrb.gmra.mxu3 %vm104_vm7, %v1959_v4 }
0x27e6   :  { %v1979_v35 = vpop.f32.mrf.mxu3 }
0x27e7   :  { %v1983_v42 = vrot.slane %v1979_v35, 4 }
0x27e9   :  { %v1985_v3 = vadd.f32 %v1983_v42, %v4285_v39 }
0x27eb   :  { %3431 = vtanh.f32 %v1985_v3  ;;  %v1986_v16 = vsub.f32 0.0, %v1985_v3 }
0x27ed   :  { %v1987_v1 = vmul.f32 1.442695, %v1986_v16 }
0x27ef   :  { %3433 = vpow2.f32 %v1987_v1 }
0x27f1   :  { %v3432_v38 = vpop.eup %3431 }
0x27f2   :  { %2011 = vrot.lane.b32.xlu1 %v3432_v38, %s3655_s25 }
0x27f5   :  { %v3434_v61 = vpop.eup %3433 }
0x27f6   :  { %v1989_v40 = vadd.f32 1.0, %v3434_v61 }
0x27f8   :  { %3435 = vrcp.f32 %v1989_v40  ;;  %v2001_v45 = vand.u32 2147483648, %v1989_v40  ;;  %vm1995_vm10 = vweird.f32 %v1989_v40  ;;  %v1999_v46 = vand.u32 2147483647, %v1989_v40 }
0x27fa   :  { %v2002_v22 = vor.u32 1.1754944e-38, %v2001_v45  ;;  %vm2000_vm13 = vcmp.eq.f32.partialorder %v1999_v46, 8.507059e+37 }
0x27fe   :  { %v3436_v12 = vpop.eup %3435 }
0x27ff   :  { %v1991_v41 = vmul.f32 %v3436_v12, %v1989_v40  ;;  %vm1996_vm4 = vweird.f32 %v3436_v12 }
0x2800   :  { %vm1997_vm11 = vmor %vm1995_vm10, %vm1996_vm4 }
0x2801   :  { %v1992_v37 = vsub.f32 1.0, %v1991_v41 }
0x2803   :  { %v1993_v43 = vmul.f32 %v3436_v12, %v1992_v37 }
0x2805   :  { %v1994_v44 = vadd.f32 %v3436_v12, %v1993_v43 }
0x2807   :  { %v1998_v47 = vsel %vm1997_vm11, %v3436_v12, %v1994_v44 }
0x2808   :  { %v2003_v14 = vsel %vm2000_vm13, %v2002_v22, %v1998_v47 }
0x2809   :  { %v2009_v53 = vmul.f32 %v2007_v52, %v2003_v14 }
0x2864   :  { %v2012_v48 = vpop.permute.xlu1 %2011 }
0x2865   :  { %v2014_v50 = vmul.f32 %v2012_v48, %v2003_v14 }
0x2867   :  { %2016 = vrot.lane.b32.xlu2 %v2014_v50, %s3656_s26 }
0x28c1   :  { %v2017_v54 = vpop.permute.xlu2 %2016 }
0x28c2   :  { %v2019_v10 = vadd.f32 %v2017_v54, %v2009_v53 }
0x28c4   :  { %3437 = vtanh.f32 %v2019_v10  ;;  %v2077_v57 = vrot.slane %v2019_v10, 6 }
0x28ca   :  { %v3438_v56 = vpop.eup %3437 }
0x28cb   :  { %2022 = vrot.lane.b32.xlu0 %v3438_v56, %s3657_s27 }
0x293d   :  { %v2023_v58 = vpop.permute.xlu0 %2022 }
0x293e   :  { %v2025_v59 = vmul.f32 %v2023_v58, %v2003_v14 }
0x2940   :  { %v2027_v63 = vrot.slane %v2025_v59, 4  ;;  %v2376_v7 = vsel %vm96_vm0, %v2375_v62, %v2025_v59 }
0x2942   :  { %2028 = vrot.lane.b32.xlu1 %v2027_v63, %s3658_s28 }
0x29b4   :  { %v2029_v8 = vpop.permute.xlu1 %2028 }
0x29b5   :  { %3180 = vmatmul.msk.f32.vlgmr.msrb.gmra.mxu1 %vm104_vm7, %v2029_v8 }
0x2a32   :  { %v2049_v55 = vpop.f32.mrf.mxu1 }
0x2a33   :  { %v2053_v9 = vrot.slane %v2049_v55, 2 }
0x2a35   :  { %v2055_v11 = vadd.f32 %v2053_v9, %v4285_v39  ;;  %v2372_v9 = vld [vmem:[%s4612_s3 + $0x30] sm:$0xf] }
0x2a36   :  { %3189 = vmatpush.msk.msra.mxu2 %vm96_vm0, %v2372_v9 }
0x2a37   :  { %3439 = vtanh.f32 %v2055_v11  ;;  %v2056_v15 = vsub.f32 0.0, %v2055_v11 }
0x2a39   :  { %v2057_v17 = vmul.f32 1.442695, %v2056_v15 }
0x2a3b   :  { %3441 = vpow2.f32 %v2057_v17 }
0x2a3d   :  { %v3440_v49 = vpop.eup %3439 }
0x2a3e   :  { %2081 = vrot.lane.b32.xlu2 %v3440_v49, %s3655_s25 }
0x2a41   :  { %v3442_v60 = vpop.eup %3441 }
0x2a42   :  { %v2059_v18 = vadd.f32 1.0, %v3442_v60 }
0x2a44   :  { %3443 = vrcp.f32 %v2059_v18  ;;  %v2071_v24 = vand.u32 2147483648, %v2059_v18  ;;  %vm2065_vm15 = vweird.f32 %v2059_v18  ;;  %v2069_v39 = vand.u32 2147483647, %v2059_v18 }
0x2a45   :  { %3445 = vtanh.f32 %v1752_v5 }
0x2a46   :  { %v2072_v26 = vor.u32 1.1754944e-38, %v2071_v24  ;;  %vm2070_vm9 = vcmp.eq.f32.partialorder %v2069_v39, 8.507059e+37  ;;  %v4371_v24 = vld [vmem:[%s4612_s3 + $0x40] ss:$0 sm:$0xff] }
0x2a4a   :  { %v3444_v19 = vpop.eup %3443 }
0x2a4b   :  { %v2061_v20 = vmul.f32 %v3444_v19, %v2059_v18  ;;  %vm2066_vm14 = vweird.f32 %v3444_v19  ;;  %v3446_v29 = vpop.eup %3445 }
0x2a4c   :  { %vm2067_vm8 = vmor %vm2065_vm15, %vm2066_vm14  ;;  %v1776_v30 = vrot.slane %v3446_v29, 6  ;;  %v1780_v34 = vrot.slane %v3446_v29, 4  ;;  %v1784_v16 = vrot.slane %v3446_v29, 2 }
0x2a4d   :  { %v2062_v13 = vsub.f32 1.0, %v2061_v20 }
0x2a4f   :  { %v2063_v0 = vmul.f32 %v3444_v19, %v2062_v13  ;;  %v4352_v13 = vld [vmem:[%s4612_s3 + $0x38] sm:$0xf] }
0x2a50   :  { %3192 = vmatpush.msk.msrb.mxu3 %vm96_vm0, %v4352_v13  ;;  %3193 = vmatpush.msk.msrb.mxu0 %vm96_vm0, %v4352_v13 }
0x2a51   :  { %v2064_v25 = vadd.f32 %v3444_v19, %v2063_v0  ;;  %3195 = vmatpush.msk.msrb.mxu1 %vm96_vm0, %v4352_v13 }
0x2a53   :  { %v2068_v6 = vsel %vm2067_vm8, %v3444_v19, %v2064_v25 }
0x2a54   :  { %v2073_v51 = vsel %vm2070_vm9, %v2072_v26, %v2068_v6 }
0x2a55   :  { %v2079_v31 = vmul.f32 %v2077_v57, %v2073_v51 }
0x2a98   :  { %v2082_v27 = vpop.permute.xlu2 %2081 }
0x2a99   :  { %v2084_v28 = vmul.f32 %v2082_v27, %v2073_v51 }
0x2a9b   :  { %2086 = vrot.lane.b32.xlu0 %v2084_v28, %s3656_s26 }
0x2aa3   :  { %1777 = vrot.lane.b32.xlu0 %v1776_v30, %s3653_s2 }
0x2b0d   :  { %v2087_v32 = vpop.permute.xlu0 %2086 }
0x2b0e   :  { %v2089_v33 = vadd.f32 %v2087_v32, %v2079_v31 }
0x2b10   :  { %3447 = vtanh.f32 %v2089_v33  ;;  %v2144_v11 = vrot.slane %v2089_v33, 6 }
0x2b15   :  { %v1778_v61 = vpop.permute.xlu0 %1777 }
0x2b16   :  { %v3448_v4 = vpop.eup %3447  ;;  %v1791_v12 = vsel %vm94_vm5, %v3446_v29, %v1778_v61 }
0x2b17   :  { %2092 = vrot.lane.b32.xlu1 %v3448_v4, %s3657_s27 }
0x2b1f   :  { %1781 = vrot.lane.b32.xlu1 %v1780_v34, %s3651_s19 }
0x2b89   :  { %v2093_v35 = vpop.permute.xlu1 %2092 }
0x2b8a   :  { %v2095_v42 = vmul.f32 %v2093_v35, %v2073_v51 }
0x2b8c   :  { %v2097_v3 = vrot.slane %v2095_v42, 6  ;;  %v2377_v38 = vsel %vm98_vm6, %v2376_v7, %v2095_v42 }
0x2b8e   :  { %2098 = vrot.lane.b32.xlu2 %v2097_v3, %s3658_s28 }
0x2b91   :  { %v1782_v40 = vpop.permute.xlu1 %1781 }
0x2b92   :  { %v1792_v41 = vsel %vm96_vm0, %v1791_v12, %v1782_v40 }
0x2b96   :  { %1785 = vrot.lane.b32.xlu2 %v1784_v16, %s3652_s20 }
0x2be8   :  { %v2099_v1 = vpop.permute.xlu2 %2098 }
0x2be9   :  { %3182 = vmatmul.msk.f32.vlgmr.msrb.gmra.mxu2 %vm104_vm7, %v2099_v1 }
0x2bea   :  { %3203 = vmatpush.msk.msrb.mxu2 %vm96_vm0, %v4352_v13 }
0x2bf0   :  { %v1786_v37 = vpop.permute.xlu2 %1785 }
0x2bf1   :  { %v1793_v43 = vsel %vm98_vm6, %v1792_v41, %v1786_v37 }
0x2bf2   :  { %3173 = vmatmul.msk.f32.gmra.mxu0 %vm137_vm12, %v1793_v43 }
0x2c6c   :  { %v2119_v46 = vpop.f32.mrf.mxu2 }
0x2c6f   :  { %v1821_v44 = vpop.f32.mrf.mxu0 }
0x2c70   :  { %v4330_v45 = vadd.f32 %v4282_v36, %v1821_v44 }
0x2c72   :  { %v2122_v47 = vadd.f32 %v2119_v46, %v4330_v45 }
0x2c74   :  { %3449 = vtanh.f32 %v2122_v47  ;;  %v2123_v48 = vsub.f32 0.0, %v2122_v47 }
0x2c76   :  { %v2124_v14 = vmul.f32 1.442695, %v2123_v48 }
0x2c78   :  { %3451 = vpow2.f32 %v2124_v14 }
0x2c7a   :  { %v3450_v22 = vpop.eup %3449 }
0x2c7b   :  { %2148 = vrot.lane.b32.xlu0 %v3450_v22, %s3655_s25 }
0x2c7e   :  { %v3452_v50 = vpop.eup %3451 }
0x2c7f   :  { %v2126_v52 = vadd.f32 1.0, %v3452_v50 }
0x2c81   :  { %3453 = vrcp.f32 %v2126_v52  ;;  %v2138_v36 = vand.u32 2147483648, %v2126_v52  ;;  %vm2132_vm1 = vweird.f32 %v2126_v52  ;;  %v2136_v59 = vand.u32 2147483647, %v2126_v52 }
0x2c83   :  { %v2139_v63 = vor.u32 1.1754944e-38, %v2138_v36  ;;  %vm2137_vm3 = vcmp.eq.f32.partialorder %v2136_v59, 8.507059e+37 }
0x2c87   :  { %v3454_v53 = vpop.eup %3453 }
0x2c88   :  { %v2128_v54 = vmul.f32 %v3454_v53, %v2126_v52  ;;  %vm2133_vm12 = vweird.f32 %v3454_v53 }
0x2c89   :  { %vm2134_vm2 = vmor %vm2132_vm1, %vm2133_vm12 }
0x2c8a   :  { %v2129_v10 = vsub.f32 1.0, %v2128_v54 }
0x2c8c   :  { %v2130_v56 = vmul.f32 %v3454_v53, %v2129_v10 }
0x2c8e   :  { %v2131_v58 = vadd.f32 %v3454_v53, %v2130_v56 }
0x2c90   :  { %v2135_v62 = vsel %vm2134_vm2, %v3454_v53, %v2131_v58 }
0x2c91   :  { %v2140_v8 = vsel %vm2137_vm3, %v2139_v63, %v2135_v62 }
0x2c92   :  { %v2146_v49 = vmul.f32 %v2144_v11, %v2140_v8 }
0x2ced   :  { %v2149_v7 = vpop.permute.xlu0 %2148 }
0x2cee   :  { %v2151_v55 = vmul.f32 %v2149_v7, %v2140_v8 }
0x2cf0   :  { %2153 = vrot.lane.b32.xlu1 %v2151_v55, %s3656_s26 }
0x2cf8   :  { %2384 = vrot.lane.b32.xlu1 %v2377_v38, %s3658_s28 }
0x2d62   :  { %v2154_v15 = vpop.permute.xlu1 %2153 }
0x2d63   :  { %v4340_v17 = vadd.f32 %v2154_v15, %v2146_v49 }
0x2d65   :  { %3455 = vtanh.f32 %v4340_v17  ;;  %v2213_v56 = vrot.slane %v4340_v17, 6 }
0x2d6a   :  { %v2385_v60 = vpop.permute.xlu1 %2384 }
0x2d6b   :  { %v3456_v18 = vpop.eup %3455  ;;  %3190 = vmatmul.msk.f32.vlgmr.msra.gmra.mxu2 %vm104_vm7, %v2385_v60 }
0x2d6c   :  { %2159 = vrot.lane.b32.xlu2 %v3456_v18, %s3657_s27 }
0x2dc6   :  { %v2160_v19 = vpop.permute.xlu2 %2159 }
0x2dc7   :  { %v4345_v20 = vmul.f32 %v2160_v19, %v2140_v8 }
0x2dc9   :  { %2164 = vrot.lane.b32.xlu0 %v4345_v20, %s3658_s28 }
0x2dee   :  { %v2412_v5 = vpop.f32.mrf.mxu2 }
0x2def   :  { %v4375_v6 = vadd.f32 %v4371_v24, %v2412_v5 }
0x2e3b   :  { %v2165_v0 = vpop.permute.xlu0 %2164 }
0x2e3c   :  { %3184 = vmatmul.msk.f32.vlgmr.msra.gmra.mxu3 %vm104_vm7, %v2165_v0 }
0x2e3d   :  { %3197 = vmatpush.msk.msra.mxu3 %vm96_vm0, %v4352_v13 }
0x2e44   :  { %2437 = vmatmul.f32.vlgmr.msrb.gmra.mxu3 %v3650_v21 }
0x2e45   :  { %3205 = vmatpush.msk.msrb.mxu3 %vm96_vm0, %v4352_v13 }
0x2ebf   :  { %v2185_v2 = vpop.f32.mrf.mxu3 }
0x2ec0   :  { %v2189_v25 = vrot.slane %v2185_v2, 6 }
0x2ec2   :  { %v2191_v39 = vadd.f32 %v2189_v25, %v4330_v45 }
0x2ec4   :  { %3457 = vtanh.f32 %v2191_v39  ;;  %v2192_v28 = vsub.f32 0.0, %v2191_v39 }
0x2ec6   :  { %v2193_v29 = vmul.f32 1.442695, %v2192_v28 }
0x2ec7   :  { %v2438_v26 = vpop.f32.mrf.mxu3 }
0x2ec8   :  { %v2441_v21 = vadd.f32 %v2438_v26, %v4375_v6 }
0x2eca   :  { %v3458_v27 = vpop.eup %3457  ;;  %3459 = vtanh.f32 %v2441_v21  ;;  %v2442_v32 = vsub.f32 0.0, %v2441_v21 }
0x2ecb   :  { %2217 = vrot.lane.b32.xlu2 %v3458_v27, %s3655_s25  ;;  %3461 = vpow2.f32 %v2193_v29 }
0x2ecc   :  { %v2443_v4 = vmul.f32 1.442695, %v2442_v32 }
0x2ed0   :  { %v3460_v51 = vpop.eup %3459 }
0x2ed1   :  { %2464 = vrot.lane.b32.xlu0 %v3460_v51, %s3655_s25  ;;  %v3462_v30 = vpop.eup %3461 }
0x2ed2   :  { %v2195_v57 = vadd.f32 1.0, %v3462_v30 }
0x2ed4   :  { %3463 = vrcp.f32 %v2195_v57  ;;  %v2207_v3 = vand.u32 2147483648, %v2195_v57  ;;  %vm2201_vm10 = vweird.f32 %v2195_v57  ;;  %v2205_v16 = vand.u32 2147483647, %v2195_v57 }
0x2ed5   :  { %3465 = vpow2.f32 %v2443_v4 }
0x2ed6   :  { %v2208_v40 = vor.u32 1.1754944e-38, %v2207_v3  ;;  %vm2206_vm13 = vcmp.eq.f32.partialorder %v2205_v16, 8.507059e+37 }
0x2eda   :  { %v3464_v31 = vpop.eup %3463 }
0x2edb   :  { %v2197_v33 = vmul.f32 %v3464_v31, %v2195_v57  ;;  %vm2202_vm4 = vweird.f32 %v3464_v31  ;;  %v3466_v38 = vpop.eup %3465 }
0x2edc   :  { %vm2203_vm11 = vmor %vm2201_vm10, %vm2202_vm4  ;;  %v2445_v61 = vadd.f32 1.0, %v3466_v38 }
0x2edd   :  { %v2198_v34 = vsub.f32 1.0, %v2197_v33 }
0x2ede   :  { %3467 = vrcp.f32 %v2445_v61  ;;  %v2457_v48 = vand.u32 2147483648, %v2445_v61  ;;  %vm2451_vm15 = vweird.f32 %v2445_v61  ;;  %v2455_v14 = vand.u32 2147483647, %v2445_v61 }
0x2edf   :  { %v2199_v35 = vmul.f32 %v3464_v31, %v2198_v34 }
0x2ee0   :  { %v2458_v52 = vor.u32 1.1754944e-38, %v2457_v48  ;;  %vm2456_vm9 = vcmp.eq.f32.partialorder %v2455_v14, 8.507059e+37 }
0x2ee1   :  { %v2200_v42 = vadd.f32 %v3464_v31, %v2199_v35 }
0x2ee3   :  { %v2204_v1 = vsel %vm2203_vm11, %v3464_v31, %v2200_v42 }
0x2ee4   :  { %v2209_v41 = vsel %vm2206_vm13, %v2208_v40, %v2204_v1  ;;  %v3468_v43 = vpop.eup %3467 }
0x2ee5   :  { %v2447_v44 = vmul.f32 %v3468_v43, %v2445_v61  ;;  %vm2452_vm14 = vweird.f32 %v3468_v43  ;;  %v2215_v58 = vmul.f32 %v2213_v56, %v2209_v41 }
0x2ee6   :  { %vm2453_vm8 = vmor %vm2451_vm15, %vm2452_vm14 }
0x2ee7   :  { %v2448_v46 = vsub.f32 1.0, %v2447_v44 }
0x2ee9   :  { %v2449_v47 = vmul.f32 %v3468_v43, %v2448_v46 }
0x2eeb   :  { %v2450_v22 = vadd.f32 %v3468_v43, %v2449_v47 }
0x2eed   :  { %v2454_v50 = vsel %vm2453_vm8, %v3468_v43, %v2450_v22 }
0x2eee   :  { %v2459_v54 = vsel %vm2456_vm9, %v2458_v52, %v2454_v50 }
0x2eef   :  { %v2462_v62 = vmul.f32 0.0, %v2459_v54 }
0x2f25   :  { %v2218_v12 = vpop.permute.xlu2 %2217 }
0x2f26   :  { %v2220_v37 = vmul.f32 %v2218_v12, %v2209_v41 }
0x2f28   :  { %2222 = vrot.lane.b32.xlu1 %v2220_v37, %s3656_s26 }
0x2f43   :  { %v2465_v53 = vpop.permute.xlu0 %2464 }
0x2f44   :  { %v2467_v10 = vmul.f32 %v2465_v53, %v2459_v54 }
0x2f46   :  { %2469 = vrot.lane.b32.xlu2 %v2467_v10, %s3656_s26 }
0x2f9a   :  { %v2223_v36 = vpop.permute.xlu1 %2222 }
0x2f9b   :  { %v4383_v59 = vadd.f32 %v2223_v36, %v2215_v58 }
0x2f9d   :  { %3469 = vtanh.f32 %v4383_v59 }
0x2fa0   :  { %v2470_v63 = vpop.permute.xlu2 %2469 }
0x2fa1   :  { %v4386_v7 = vadd.f32 %v2470_v63, %v2462_v62 }
0x2fa3   :  { %v3470_v8 = vpop.eup %3469  ;;  %3471 = vtanh.f32 %v4386_v7  ;;  %v2529_v58 = vrot.slane %v4386_v7, 6 }
0x2fa4   :  { %2228 = vrot.lane.b32.xlu0 %v3470_v8, %s3657_s27 }
0x2fa9   :  { %v3472_v55 = vpop.eup %3471 }
0x2faa   :  { %2475 = vrot.lane.b32.xlu1 %v3472_v55, %s3657_s27 }
0x3016   :  { %v2229_v9 = vpop.permute.xlu0 %2228 }
0x3017   :  { %v4391_v11 = vmul.f32 %v2229_v9, %v2209_v41 }
0x3019   :  { %v2233_v49 = vrot.slane %v4391_v11, 2  ;;  %v2378_v7 = vsel %vm94_vm5, %v4345_v20, %v4391_v11 }
0x301b   :  { %2234 = vrot.lane.b32.xlu2 %v2233_v49, %s3658_s28 }
0x301c   :  { %v2476_v15 = vpop.permute.xlu1 %2475 }
0x301d   :  { %v4395_v17 = vmul.f32 %v2476_v15, %v2459_v54  ;;  %v2283_v54 = vrot.slane %v4383_v59, 6 }
0x301f   :  { %2480 = vrot.lane.b32.xlu0 %v4395_v17, %s3658_s28 }
0x3075   :  { %v2235_v60 = vpop.permute.xlu2 %2234 }
0x3076   :  { %3186 = vmatmul.msk.f32.vlgmr.msra.gmra.mxu0 %vm104_vm7, %v2235_v60 }
0x3077   :  { %3199 = vmatpush.msk.msra.mxu0 %vm96_vm0, %v4352_v13 }
0x3091   :  { %v2481_v18 = vpop.permute.xlu0 %2480 }
0x3092   :  { %3194 = vmatmul.msk.f32.vlgmr.msrb.gmra.mxu0 %vm104_vm7, %v2481_v18 }
0x30f3   :  { %v2255_v19 = vpop.f32.mrf.mxu0 }
0x30f4   :  { %v2259_v0 = vrot.slane %v2255_v19, 4 }
0x30f6   :  { %v2261_v2 = vadd.f32 %v2259_v0, %v4330_v45 }
0x30f8   :  { %3473 = vtanh.f32 %v2261_v2  ;;  %v2262_v27 = vsub.f32 0.0, %v2261_v2 }
0x30fa   :  { %v2263_v51 = vmul.f32 1.442695, %v2262_v27 }
0x30fe   :  { %v3474_v25 = vpop.eup %3473 }
0x30ff   :  { %2287 = vrot.lane.b32.xlu1 %v3474_v25, %s3655_s25 }
0x310f   :  { %v2501_v39 = vpop.f32.mrf.mxu0 }
0x3110   :  { %v2505_v5 = vrot.slane %v2501_v39, 6 }
0x3112   :  { %v2507_v26 = vadd.f32 %v2505_v5, %v4375_v6 }
0x3114   :  { %3475 = vtanh.f32 %v2507_v26  ;;  %v2508_v28 = vsub.f32 0.0, %v2507_v26 }
0x3115   :  { %3477 = vpow2.f32 %v2263_v51 }
0x3116   :  { %v2509_v29 = vmul.f32 1.442695, %v2508_v28 }
0x3118   :  { %3479 = vpow2.f32 %v2509_v29 }
0x311a   :  { %v3476_v21 = vpop.eup %3475 }
0x311b   :  { %2533 = vrot.lane.b32.xlu2 %v3476_v21, %s3655_s25  ;;  %v3478_v30 = vpop.eup %3477 }
0x311c   :  { %v2265_v57 = vadd.f32 1.0, %v3478_v30 }
0x311e   :  { %v3480_v31 = vpop.eup %3479  ;;  %3481 = vrcp.f32 %v2265_v57  ;;  %v2277_v61 = vand.u32 2147483648, %v2265_v57  ;;  %vm2271_vm1 = vweird.f32 %v2265_v57  ;;  %v2275_v40 = vand.u32 2147483647, %v2265_v57 }
0x311f   :  { %v2511_v32 = vadd.f32 1.0, %v3480_v31 }
0x3120   :  { %v2278_v37 = vor.u32 1.1754944e-38, %v2277_v61  ;;  %vm2276_vm4 = vcmp.eq.f32.partialorder %v2275_v40, 8.507059e+37 }
0x3121   :  { %3483 = vrcp.f32 %v2511_v32  ;;  %v2523_v43 = vand.u32 2147483648, %v2511_v32  ;;  %vm2517_vm10 = vweird.f32 %v2511_v32  ;;  %v2521_v44 = vand.u32 2147483647, %v2511_v32 }
0x3123   :  { %v2524_v14 = vor.u32 1.1754944e-38, %v2523_v43  ;;  %vm2522_vm13 = vcmp.eq.f32.partialorder %v2521_v44, 8.507059e+37 }
0x3124   :  { %v3482_v33 = vpop.eup %3481 }
0x3125   :  { %v2267_v4 = vmul.f32 %v3482_v33, %v2265_v57  ;;  %vm2272_vm12 = vweird.f32 %v3482_v33 }
0x3126   :  { %vm2273_vm2 = vmor %vm2271_vm1, %vm2272_vm12 }
0x3127   :  { %v3484_v34 = vpop.eup %3483  ;;  %v2268_v35 = vsub.f32 1.0, %v2267_v4 }
0x3128   :  { %v2513_v42 = vmul.f32 %v3484_v34, %v2511_v32  ;;  %vm2518_vm3 = vweird.f32 %v3484_v34 }
0x3129   :  { %v2269_v3 = vmul.f32 %v3482_v33, %v2268_v35  ;;  %vm2519_vm11 = vmor %vm2517_vm10, %vm2518_vm3 }
0x312a   :  { %v2514_v38 = vsub.f32 1.0, %v2513_v42 }
0x312b   :  { %v2270_v16 = vadd.f32 %v3482_v33, %v2269_v3 }
0x312c   :  { %v2515_v1 = vmul.f32 %v3484_v34, %v2514_v38 }
0x312d   :  { %v2274_v12 = vsel %vm2273_vm2, %v3482_v33, %v2270_v16 }
0x312e   :  { %v2516_v41 = vadd.f32 %v3484_v34, %v2515_v1  ;;  %v2279_v47 = vsel %vm2276_vm4, %v2278_v37, %v2274_v12 }
0x312f   :  { %v2285_v10 = vmul.f32 %v2283_v54, %v2279_v47 }
0x3130   :  { %v2520_v48 = vsel %vm2519_vm11, %v3484_v34, %v2516_v41 }
0x3131   :  { %v2525_v52 = vsel %vm2522_vm13, %v2524_v14, %v2520_v48 }
0x3132   :  { %v2531_v62 = vmul.f32 %v2529_v58, %v2525_v52 }
0x3171   :  { %v2288_v46 = vpop.permute.xlu1 %2287 }
0x3172   :  { %v2290_v22 = vmul.f32 %v2288_v46, %v2279_v47 }
0x3174   :  { %2292 = vrot.lane.b32.xlu0 %v2290_v22, %s3656_s26 }
0x3175   :  { %v2534_v50 = vpop.permute.xlu2 %2533 }
0x3176   :  { %v2536_v53 = vmul.f32 %v2534_v50, %v2525_v52 }
0x3178   :  { %2538 = vrot.lane.b32.xlu1 %v2536_v53, %s3656_s26 }
0x31e6   :  { %v2293_v56 = vpop.permute.xlu0 %2292 }
0x31e7   :  { %v4411_v36 = vadd.f32 %v2293_v56, %v2285_v10 }
0x31e9   :  { %3485 = vtanh.f32 %v4411_v36 }
0x31ea   :  { %v2539_v63 = vpop.permute.xlu1 %2538 }
0x31eb   :  { %v2541_v8 = vadd.f32 %v2539_v63, %v2531_v62 }
0x31ed   :  { %3487 = vtanh.f32 %v2541_v8  ;;  %v2599_v61 = vrot.slane %v2541_v8, 6 }
0x31ef   :  { %v3486_v55 = vpop.eup %3485 }
0x31f0   :  { %2298 = vrot.lane.b32.xlu2 %v3486_v55, %s3657_s27 }
0x31f3   :  { %v3488_v9 = vpop.eup %3487 }
0x31f4   :  { %2544 = vrot.lane.b32.xlu0 %v3488_v9, %s3657_s27 }
0x324a   :  { %v2299_v49 = vpop.permute.xlu2 %2298 }
0x324b   :  { %v2301_v59 = vmul.f32 %v2299_v49, %v2279_v47 }
0x324d   :  { %v2303_v15 = vrot.slane %v2301_v59, 4  ;;  %v4420_v60 = vsel %vm96_vm0, %v2378_v7, %v2301_v59 }
0x324f   :  { %2304 = vrot.lane.b32.xlu1 %v2303_v15, %s3658_s28 }
0x3266   :  { %v2545_v18 = vpop.permute.xlu0 %2544 }
0x3267   :  { %v2547_v19 = vmul.f32 %v2545_v18, %v2525_v52 }
0x3269   :  { %v2549_v0 = vrot.slane %v2547_v19, 2  ;;  %2986 = vst [vmem:[#allocation1] sm:$0xff] %v2547_v19  ;;  %v2353_v19 = vrot.slane %v4411_v36, 6 }
0x326b   :  { %2550 = vrot.lane.b32.xlu2 %v2549_v0, %s3658_s28 }
0x3270   :  { %v4437_v53 = vld [vmem:[#allocation1 + $0x2] ss:$9 sm:$0xff] }
0x3271   :  { %v4439_v54 = vld [vmem:[#allocation1 + $0x3] ss:$9 sm:$0xff] }
0x32c1   :  { %v2305_v2 = vpop.permute.xlu1 %2304 }
0x32c2   :  { %3188 = vmatmul.msk.f32.vlgmr.msra.gmra.mxu1 %vm104_vm7, %v2305_v2 }
0x32c3   :  { %3201 = vmatpush.msk.msra.mxu1 %vm96_vm0, %v4352_v13 }
0x32c5   :  { %v2551_v25 = vpop.permute.xlu2 %2550 }
0x32ca   :  { %3196 = vmatmul.msk.f32.vlgmr.msrb.gmra.mxu1 %vm104_vm7, %v2551_v25 }
0x333f   :  { %v2325_v20 = vpop.f32.mrf.mxu1 }
0x3340   :  { %v2329_v4 = vrot.slane %v2325_v20, 2 }
0x3342   :  { %v2331_v42 = vadd.f32 %v2329_v4, %v4330_v45 }
0x3344   :  { %v2332_v45 = vsub.f32 0.0, %v2331_v42 }
0x3346   :  { %v2333_v43 = vmul.f32 1.442695, %v2332_v45 }
0x3347   :  { %v2571_v11 = vpop.f32.mrf.mxu1 }
0x3348   :  { %v2575_v39 = vrot.slane %v2571_v11, 4 }
0x334a   :  { %v2577_v5 = vadd.f32 %v2575_v39, %v4375_v6 }
0x334c   :  { %3489 = vtanh.f32 %v2577_v5  ;;  %v2578_v21 = vsub.f32 0.0, %v2577_v5 }
0x334e   :  { %v2579_v27 = vmul.f32 1.442695, %v2578_v21 }
0x3350   :  { %3491 = vpow2.f32 %v2579_v27 }
0x3352   :  { %v3490_v26 = vpop.eup %3489 }
0x3353   :  { %2603 = vrot.lane.b32.xlu0 %v3490_v26, %s3655_s25 }
0x3356   :  { %v3492_v51 = vpop.eup %3491 }
0x3357   :  { %v2581_v28 = vadd.f32 1.0, %v3492_v51 }
0x3359   :  { %3493 = vrcp.f32 %v2581_v28  ;;  %v2593_v32 = vand.u32 2147483648, %v2581_v28  ;;  %vm2587_vm5 = vweird.f32 %v2581_v28  ;;  %v2591_v33 = vand.u32 2147483647, %v2581_v28 }
0x335a   :  { %3495 = vtanh.f32 %v2331_v42 }
0x335b   :  { %v2594_v35 = vor.u32 1.1754944e-38, %v2593_v32  ;;  %vm2592_vm15 = vcmp.eq.f32.partialorder %v2591_v33, 8.507059e+37 }
0x335f   :  { %v3494_v29 = vpop.eup %3493 }
0x3360   :  { %v2583_v13 = vmul.f32 %v3494_v29, %v2581_v28  ;;  %vm2588_vm0 = vweird.f32 %v3494_v29  ;;  %v3496_v1 = vpop.eup %3495 }
0x3361   :  { %vm2589_vm14 = vmor %vm2587_vm5, %vm2588_vm0 }
0x3362   :  { %v2584_v30 = vsub.f32 1.0, %v2583_v13 }
0x3364   :  { %v2585_v57 = vmul.f32 %v3494_v29, %v2584_v30 }
0x3366   :  { %v2586_v31 = vadd.f32 %v3494_v29, %v2585_v57 }
0x3368   :  { %v2590_v34 = vsel %vm2589_vm14, %v3494_v29, %v2586_v31 }
0x3369   :  { %v2595_v38 = vsel %vm2592_vm15, %v2594_v35, %v2590_v34 }
0x336a   :  { %v2601_v40 = vmul.f32 %v2599_v61, %v2595_v38 }
0x33c5   :  { %v2604_v3 = vpop.permute.xlu0 %2603 }
0x33c6   :  { %v2606_v16 = vmul.f32 %v2604_v3, %v2595_v38 }
0x33c8   :  { %2608 = vrot.lane.b32.xlu1 %v2606_v16, %s3656_s26 }
0x33d0   :  { %2357 = vrot.lane.b32.xlu1 %v3496_v1, %s3655_s25 }
0x343a   :  { %v2609_v12 = vpop.permute.xlu1 %2608 }
0x343b   :  { %v4433_v41 = vadd.f32 %v2609_v12, %v2601_v40 }
0x343d   :  { %3497 = vtanh.f32 %v4433_v41  ;;  %v2669_v42 = vrot.slane %v4433_v41, 6 }
0x343e   :  { %3499 = vpow2.f32 %v2333_v43 }
0x3442   :  { %v2358_v55 = vpop.permute.xlu1 %2357 }
0x3443   :  { %v3498_v37 = vpop.eup %3497 }
0x3444   :  { %2614 = vrot.lane.b32.xlu2 %v3498_v37, %s3657_s27  ;;  %v3500_v44 = vpop.eup %3499 }
0x3445   :  { %v2335_v46 = vadd.f32 1.0, %v3500_v44 }
0x3447   :  { %3501 = vrcp.f32 %v2335_v46  ;;  %v2347_v58 = vand.u32 2147483648, %v2335_v46  ;;  %vm2341_vm9 = vweird.f32 %v2335_v46  ;;  %v2345_v62 = vand.u32 2147483647, %v2335_v46 }
0x3449   :  { %v2348_v8 = vor.u32 1.1754944e-38, %v2347_v58  ;;  %vm2346_vm1 = vcmp.eq.f32.partialorder %v2345_v62, 8.507059e+37 }
0x344d   :  { %v3502_v47 = vpop.eup %3501 }
0x344e   :  { %v2337_v22 = vmul.f32 %v3502_v47, %v2335_v46  ;;  %vm2342_vm8 = vweird.f32 %v3502_v47 }
0x344f   :  { %vm2343_vm12 = vmor %vm2341_vm9, %vm2342_vm8 }
0x3450   :  { %v2338_v48 = vsub.f32 1.0, %v2337_v22 }
0x3452   :  { %v2339_v14 = vmul.f32 %v3502_v47, %v2338_v48 }
0x3454   :  { %v2340_v10 = vadd.f32 %v3502_v47, %v2339_v14 }
0x3456   :  { %v2344_v63 = vsel %vm2343_vm12, %v3502_v47, %v2340_v10 }
0x3457   :  { %v2349_v9 = vsel %vm2346_vm1, %v2348_v8, %v2344_v63 }
0x3458   :  { %v2360_v49 = vmul.f32 %v2358_v55, %v2349_v9  ;;  %v2355_v2 = vmul.f32 %v2353_v19, %v2349_v9 }
0x349e   :  { %v2615_v50 = vpop.permute.xlu2 %2614 }
0x349f   :  { %v2617_v52 = vmul.f32 %v2615_v50, %v2595_v38 }
0x34a1   :  { %v2619_v56 = vrot.slane %v2617_v52, 4  ;;  %3001 = vst [vmem:[#allocation1] sm:$0xff] %v2617_v52 }
0x34a3   :  { %2620 = vrot.lane.b32.xlu0 %v2619_v56, %s3658_s28 }
0x34a8   :  { %v4455_v37 = vld [vmem:[#allocation1 + $0x4] ss:$9 sm:$0xff] }
0x34a9   :  { %v4457_v45 = vld [vmem:[#allocation1 + $0x5] ss:$9 sm:$0xff] }
0x34ab   :  { %2362 = vrot.lane.b32.xlu0 %v2360_v49, %s3656_s26 }
0x3515   :  { %v2621_v59 = vpop.permute.xlu0 %2620 }
0x3516   :  { %3198 = vmatmul.msk.f32.vlgmr.msra.gmra.mxu3 %vm104_vm7, %v2621_v59 }
0x351d   :  { %v2363_v0 = vpop.permute.xlu0 %2362 }
0x351e   :  { %v2365_v25 = vadd.f32 %v2363_v0, %v2355_v2 }
0x3599   :  { %v2641_v7 = vpop.f32.mrf.mxu3 }
0x359a   :  { %v2645_v15 = vrot.slane %v2641_v7, 2 }
0x359c   :  { %v2647_v18 = vadd.f32 %v2645_v15, %v4375_v6 }
0x359e   :  { %3503 = vtanh.f32 %v2647_v18  ;;  %v2648_v39 = vsub.f32 0.0, %v2647_v18 }
0x359f   :  { %3505 = vtanh.f32 %v2365_v25 }
0x35a0   :  { %v2649_v5 = vmul.f32 1.442695, %v2648_v39 }
0x35a2   :  { %3507 = vpow2.f32 %v2649_v5 }
0x35a4   :  { %v3504_v20 = vpop.eup %3503 }
0x35a5   :  { %2673 = vrot.lane.b32.xlu2 %v3504_v20, %s3655_s25  ;;  %v3506_v11 = vpop.eup %3505 }
0x35a8   :  { %v3508_v26 = vpop.eup %3507 }
0x35a9   :  { %v2651_v21 = vadd.f32 1.0, %v3508_v26 }
0x35ab   :  { %3509 = vrcp.f32 %v2651_v21  ;;  %v2663_v29 = vand.u32 2147483648, %v2651_v21  ;;  %vm2657_vm3 = vweird.f32 %v2651_v21  ;;  %v2661_v13 = vand.u32 2147483647, %v2651_v21 }
0x35ad   :  { %2368 = vrot.lane.b32.xlu2 %v3506_v11, %s3657_s27  ;;  %v2664_v57 = vor.u32 1.1754944e-38, %v2663_v29  ;;  %vm2662_vm10 = vcmp.eq.f32.partialorder %v2661_v13, 8.507059e+37 }
0x35b1   :  { %v3510_v6 = vpop.eup %3509 }
0x35b2   :  { %v2653_v27 = vmul.f32 %v3510_v6, %v2651_v21  ;;  %vm2658_vm2 = vweird.f32 %v3510_v6 }
0x35b3   :  { %vm2659_vm4 = vmor %vm2657_vm3, %vm2658_vm2 }
0x35b4   :  { %v2654_v36 = vsub.f32 1.0, %v2653_v27 }
0x35b6   :  { %v2655_v51 = vmul.f32 %v3510_v6, %v2654_v36 }
0x35b8   :  { %v2656_v28 = vadd.f32 %v3510_v6, %v2655_v51 }
0x35ba   :  { %v2660_v30 = vsel %vm2659_vm4, %v3510_v6, %v2656_v28 }
0x35bb   :  { %v2665_v32 = vsel %vm2662_vm10, %v2664_v57, %v2660_v30 }
0x35bc   :  { %v2671_v3 = vmul.f32 %v2669_v42, %v2665_v32 }
0x35ff   :  { %v2674_v31 = vpop.permute.xlu2 %2673 }
0x3600   :  { %v2676_v33 = vmul.f32 %v2674_v31, %v2665_v32 }
0x3602   :  { %2678 = vrot.lane.b32.xlu1 %v2676_v33, %s3656_s26 }
0x3607   :  { %v2369_v4 = vpop.permute.xlu2 %2368 }
0x3608   :  { %v2371_v34 = vmul.f32 %v2369_v4, %v2349_v9 }
0x360a   :  { %v2380_v35 = vsel %vm98_vm6, %v4420_v60, %v2371_v34 }
0x360b   :  { %2386 = vrot.lane.b32.xlu1 %v2380_v35, %s3658_s28 }
0x3674   :  { %v2679_v38 = vpop.permute.xlu1 %2678 }
0x3675   :  { %v2681_v16 = vadd.f32 %v2679_v38, %v2671_v3 }
0x3677   :  { %3511 = vtanh.f32 %v2681_v16  ;;  %v2736_v15 = vrot.slane %v2681_v16, 6 }
0x367d   :  { %v3512_v1 = vpop.eup %3511  ;;  %v2387_v61 = vpop.permute.xlu1 %2386 }
0x367e   :  { %2684 = vrot.lane.b32.xlu0 %v3512_v1, %s3657_s27  ;;  %3191 = vmatmul.msk.f32.gmra.mxu2 %vm104_vm7, %v2387_v61 }
0x36f0   :  { %v2685_v40 = vpop.permute.xlu0 %2684 }
0x36f1   :  { %v2687_v12 = vmul.f32 %v2685_v40, %v2665_v32 }
0x36f3   :  { %v2689_v60 = vrot.slane %v2687_v12, 6  ;;  %3016 = vst [vmem:[#allocation1] sm:$0xff] %v2687_v12 }
0x36f5   :  { %2690 = vrot.lane.b32.xlu2 %v2689_v60, %s3658_s28 }
0x36fa   :  { %v4477_v60 = vld [vmem:[#allocation1 + $0x6] ss:$9 sm:$0xff] }
0x3701   :  { %v2415_v43 = vpop.f32.mrf.mxu2 }
0x3702   :  { %v4462_v44 = vadd.f32 %v4371_v24, %v2415_v43 }
0x374f   :  { %v2691_v41 = vpop.permute.xlu2 %2690 }
0x3750   :  { %3200 = vmatmul.msk.f32.vlgmr.msra.gmra.mxu0 %vm104_vm7, %v2691_v41  ;;  %v4479_v41 = vld [vmem:[#allocation1 + $0x7] ss:$9 sm:$0xff] }
0x37cd   :  { %v2711_v46 = vpop.f32.mrf.mxu0 }
0x37ce   :  { %v2714_v47 = vadd.f32 %v2711_v46, %v4462_v44 }
0x37d0   :  { %3513 = vtanh.f32 %v2714_v47  ;;  %v2715_v48 = vsub.f32 0.0, %v2714_v47 }
0x37d2   :  { %v2716_v14 = vmul.f32 1.442695, %v2715_v48 }
0x37d4   :  { %3515 = vpow2.f32 %v2716_v14 }
0x37d6   :  { %v3514_v22 = vpop.eup %3513 }
0x37d7   :  { %2740 = vrot.lane.b32.xlu0 %v3514_v22, %s3655_s25 }
0x37da   :  { %v3516_v50 = vpop.eup %3515 }
0x37db   :  { %v2718_v52 = vadd.f32 1.0, %v3516_v50 }
0x37dd   :  { %3517 = vrcp.f32 %v2718_v52  ;;  %v2730_v24 = vand.u32 2147483648, %v2718_v52  ;;  %vm2724_vm11 = vweird.f32 %v2718_v52  ;;  %v2728_v8 = vand.u32 2147483647, %v2718_v52 }
0x37df   :  { %v2731_v9 = vor.u32 1.1754944e-38, %v2730_v24  ;;  %vm2729_vm0 = vcmp.eq.f32.partialorder %v2728_v8, 8.507059e+37 }
0x37e3   :  { %v3518_v10 = vpop.eup %3517 }
0x37e4   :  { %v2720_v56 = vmul.f32 %v3518_v10, %v2718_v52  ;;  %vm2725_vm6 = vweird.f32 %v3518_v10 }
0x37e5   :  { %vm2726_vm13 = vmor %vm2724_vm11, %vm2725_vm6  ;;  %vm2972_vm6 = vcmask 1024   ;;  %vm2983_vm11 = vcmask 24576  }
0x37e6   :  { %v2721_v58 = vsub.f32 1.0, %v2720_v56 }
0x37e8   :  { %v2722_v62 = vmul.f32 %v3518_v10, %v2721_v58 }
0x37ea   :  { %v2723_v63 = vadd.f32 %v3518_v10, %v2722_v62 }
0x37ec   :  { %v2727_v55 = vsel %vm2726_vm13, %v3518_v10, %v2723_v63 }
0x37ed   :  { %v2732_v59 = vsel %vm2729_vm0, %v2731_v9, %v2727_v55 }
0x37ee   :  { %v2738_v18 = vmul.f32 %v2736_v15, %v2732_v59 }
0x3849   :  { %v2741_v49 = vpop.permute.xlu0 %2740 }
0x384a   :  { %v2743_v7 = vmul.f32 %v2741_v49, %v2732_v59 }
0x384c   :  { %2745 = vrot.lane.b32.xlu1 %v2743_v7, %s3656_s26 }
0x38be   :  { %v2746_v19 = vpop.permute.xlu1 %2745 }
0x38bf   :  { %v2748_v0 = vadd.f32 %v2746_v19, %v2738_v18 }
0x38c1   :  { %3519 = vtanh.f32 %v2748_v0  ;;  %v2805_v3 = vrot.slane %v2748_v0, 6 }
0x38c7   :  { %v3520_v2 = vpop.eup %3519 }
0x38c8   :  { %2751 = vrot.lane.b32.xlu2 %v3520_v2, %s3657_s27 }
0x3922   :  { %v2752_v25 = vpop.permute.xlu2 %2751 }
0x3923   :  { %v4468_v20 = vmul.f32 %v2752_v25, %v2732_v59 }
0x3925   :  { %2756 = vrot.lane.b32.xlu0 %v4468_v20, %s3658_s28 }
0x3997   :  { %v2757_v11 = vpop.permute.xlu0 %2756 }
0x3998   :  { %3202 = vmatmul.msk.f32.vlgmr.msra.gmra.mxu1 %vm104_vm7, %v2757_v11 }
0x3a15   :  { %v2777_v39 = vpop.f32.mrf.mxu1 }
0x3a16   :  { %v2781_v5 = vrot.slane %v2777_v39, 6 }
0x3a18   :  { %v2783_v26 = vadd.f32 %v2781_v5, %v4462_v44 }
0x3a1a   :  { %3521 = vtanh.f32 %v2783_v26  ;;  %v2784_v6 = vsub.f32 0.0, %v2783_v26 }
0x3a1c   :  { %v2785_v27 = vmul.f32 1.442695, %v2784_v6 }
0x3a1e   :  { %3523 = vpow2.f32 %v2785_v27 }
0x3a20   :  { %v3522_v21 = vpop.eup %3521 }
0x3a21   :  { %2809 = vrot.lane.b32.xlu1 %v3522_v21, %s3655_s25 }
0x3a24   :  { %v3524_v36 = vpop.eup %3523 }
0x3a25   :  { %v2787_v51 = vadd.f32 1.0, %v3524_v36 }
0x3a27   :  { %3525 = vrcp.f32 %v2787_v51  ;;  %v2799_v31 = vand.u32 2147483648, %v2787_v51  ;;  %vm2793_vm14 = vweird.f32 %v2787_v51  ;;  %v2797_v32 = vand.u32 2147483647, %v2787_v51 }
0x3a29   :  { %v2800_v4 = vor.u32 1.1754944e-38, %v2799_v31  ;;  %vm2798_vm8 = vcmp.eq.f32.partialorder %v2797_v32, 8.507059e+37 }
0x3a2d   :  { %v3526_v28 = vpop.eup %3525 }
0x3a2e   :  { %v2789_v29 = vmul.f32 %v3526_v28, %v2787_v51  ;;  %vm2794_vm5 = vweird.f32 %v3526_v28 }
0x3a2f   :  { %vm2795_vm15 = vmor %vm2793_vm14, %vm2794_vm5 }
0x3a30   :  { %v2790_v13 = vsub.f32 1.0, %v2789_v29 }
0x3a32   :  { %v2791_v30 = vmul.f32 %v3526_v28, %v2790_v13  ;;  %v2991_v13 = vperm.slane %v4437_v53, 0 }
0x3a34   :  { %v2792_v57 = vadd.f32 %v3526_v28, %v2791_v30  ;;  %v3007_v30 = vperm.slane %v4457_v45, 0 }
0x3a36   :  { %v2796_v33 = vsel %vm2795_vm15, %v3526_v28, %v2792_v57  ;;  %v3032_v57 = vperm.slane %v4468_v20, 0 }
0x3a37   :  { %v2801_v35 = vsel %vm2798_vm8, %v2800_v4, %v2796_v33 }
0x3a38   :  { %v2807_v38 = vmul.f32 %v2805_v3, %v2801_v35 }
0x3a93   :  { %v2810_v34 = vpop.permute.xlu1 %2809 }
0x3a94   :  { %v2812_v42 = vmul.f32 %v2810_v34, %v2801_v35 }
0x3a96   :  { %2814 = vrot.lane.b32.xlu2 %v2812_v42, %s3656_s26 }
0x3af0   :  { %v2815_v16 = vpop.permute.xlu2 %2814 }
0x3af1   :  { %v2817_v1 = vadd.f32 %v2815_v16, %v2807_v38 }
0x3af3   :  { %3527 = vtanh.f32 %v2817_v1  ;;  %v2875_v19 = vrot.slane %v2817_v1, 6 }
0x3af9   :  { %v3528_v61 = vpop.eup %3527 }
0x3afa   :  { %2820 = vrot.lane.b32.xlu0 %v3528_v61, %s3657_s27 }
0x3b6c   :  { %v2821_v40 = vpop.permute.xlu0 %2820 }
0x3b6d   :  { %v2823_v12 = vmul.f32 %v2821_v40, %v2801_v35 }
0x3b6f   :  { %v2825_v43 = vrot.slane %v2823_v12, 2  ;;  %3042 = vst [vmem:[#allocation1] sm:$0xff] %v2823_v12 }
0x3b71   :  { %2826 = vrot.lane.b32.xlu1 %v2825_v43, %s3658_s28  ;;  %v2975_v43 = vperm.slane %v4395_v17, 0 }
0x3b76   :  { %v4490_v26 = vld [vmem:[#allocation1 + $0x2] ss:$9 sm:$0xff] }
0x3b77   :  { %v3046_v21 = vld [vmem:[#allocation1 + $0x3] ss:$9 sm:$0xff] }
0x3be3   :  { %v2827_v46 = vpop.permute.xlu1 %2826 }
0x3be4   :  { %3204 = vmatmul.msk.f32.vlgmr.msrb.gmra.mxu2 %vm104_vm7, %v2827_v46 }
0x3c67   :  { %v2847_v47 = vpop.f32.mrf.mxu2 }
0x3c68   :  { %v2851_v22 = vrot.slane %v2847_v47, 4  ;;  %v2992_v47 = vperm.slane %v4439_v54, 0 }
0x3c6a   :  { %v2853_v48 = vadd.f32 %v2851_v22, %v4462_v44 }
0x3c6c   :  { %3529 = vtanh.f32 %v2853_v48  ;;  %v2854_v50 = vsub.f32 0.0, %v2853_v48  ;;  %v3021_v48 = vperm.slane %v4477_v60, 0 }
0x3c6e   :  { %v2855_v52 = vmul.f32 1.442695, %v2854_v50 }
0x3c70   :  { %3531 = vpow2.f32 %v2855_v52 }
0x3c72   :  { %v3530_v14 = vpop.eup %3529 }
0x3c73   :  { %2879 = vrot.lane.b32.xlu2 %v3530_v14, %s3655_s25  ;;  %v3031_v14 = vrot.slane %v4468_v20, 1 }
0x3c75   :  { %v3033_v52 = vperm.slane %v3031_v14, 0 }
0x3c76   :  { %v3532_v10 = vpop.eup %3531 }
0x3c77   :  { %v2857_v56 = vadd.f32 1.0, %v3532_v10 }
0x3c79   :  { %3533 = vrcp.f32 %v2857_v56  ;;  %v2869_v55 = vand.u32 2147483648, %v2857_v56  ;;  %vm2863_vm12 = vweird.f32 %v2857_v56  ;;  %v2867_v9 = vand.u32 2147483647, %v2857_v56 }
0x3c7b   :  { %v2870_v59 = vor.u32 1.1754944e-38, %v2869_v55  ;;  %vm2868_vm2 = vcmp.eq.f32.partialorder %v2867_v9, 8.507059e+37 }
0x3c7f   :  { %v3534_v58 = vpop.eup %3533 }
0x3c80   :  { %v2859_v62 = vmul.f32 %v3534_v58, %v2857_v56  ;;  %vm2864_vm9 = vweird.f32 %v3534_v58 }
0x3c81   :  { %vm2865_vm1 = vmor %vm2863_vm12, %vm2864_vm9 }
0x3c82   :  { %v2860_v63 = vsub.f32 1.0, %v2859_v62 }
0x3c84   :  { %v2861_v24 = vmul.f32 %v3534_v58, %v2860_v63 }
0x3c86   :  { %v2862_v8 = vadd.f32 %v3534_v58, %v2861_v24 }
0x3c88   :  { %v2866_v49 = vsel %vm2865_vm1, %v3534_v58, %v2862_v8  ;;  %v2974_v8 = vrot.slane %v4395_v17, 1  ;;  %v3006_v17 = vperm.slane %v4455_v37, 0  ;;  %v3047_v37 = vperm.slane %v4490_v26, 0 }
0x3c89   :  { %v2871_v15 = vsel %vm2868_vm2, %v2870_v59, %v2866_v49 }
0x3c8a   :  { %v2877_v0 = vmul.f32 %v2875_v19, %v2871_v15  ;;  %v2976_v9 = vperm.slane %v2974_v8, 0 }
0x3ccd   :  { %v2880_v7 = vpop.permute.xlu2 %2879 }
0x3cce   :  { %v2882_v18 = vmul.f32 %v2880_v7, %v2871_v15  ;;  %v3022_v7 = vperm.slane %v4479_v41, 0 }
0x3cd0   :  { %2884 = vrot.lane.b32.xlu0 %v2882_v18, %s3656_s26 }
0x3d42   :  { %v2885_v2 = vpop.permute.xlu0 %2884 }
0x3d43   :  { %v4486_v25 = vadd.f32 %v2885_v2, %v2877_v0 }
0x3d45   :  { %3535 = vtanh.f32 %v4486_v25  ;;  %v2945_v20 = vrot.slane %v4486_v25, 6 }
0x3d4b   :  { %v3536_v11 = vpop.eup %3535 }
0x3d4c   :  { %2890 = vrot.lane.b32.xlu1 %v3536_v11, %s3657_s27 }
0x3dbe   :  { %v2891_v39 = vpop.permute.xlu1 %2890 }
0x3dbf   :  { %v2893_v5 = vmul.f32 %v2891_v39, %v2871_v15 }
0x3dc1   :  { %v2895_v6 = vrot.slane %v2893_v5, 4  ;;  %3057 = vst [vmem:[#allocation1] sm:$0xff] %v2893_v5 }
0x3dc3   :  { %2896 = vrot.lane.b32.xlu2 %v2895_v6, %s3658_s28 }
0x3dc8   :  { %v3059_v54 = vld [vmem:[#allocation1 + $0x4] ss:$9 sm:$0xff] }
0x3dc9   :  { %v3062_v60 = vperm.slane %v3059_v54, 0  ;;  %v3061_v18 = vld [vmem:[#allocation1 + $0x5] ss:$9 sm:$0xff] }
0x3dca   :  { %v3063_v19 = vperm.slane %v3061_v18, 0 }
0x3e1d   :  { %v2897_v27 = vpop.permute.xlu2 %2896 }
0x3e1e   :  { %3206 = vmatmul.msk.f32.vlgmr.msrb.gmra.mxu3 %vm104_vm7, %v2897_v27 }
0x3ea1   :  { %v2917_v36 = vpop.f32.mrf.mxu3 }
0x3ea2   :  { %v2921_v51 = vrot.slane %v2917_v36, 2 }
0x3ea4   :  { %v2923_v28 = vadd.f32 %v2921_v51, %v4462_v44  ;;  %v3048_v44 = vperm.slane %v3046_v21, 0 }
0x3ea6   :  { %3537 = vtanh.f32 %v2923_v28  ;;  %v2924_v31 = vsub.f32 0.0, %v2923_v28 }
0x3ea8   :  { %v2925_v32 = vmul.f32 1.442695, %v2924_v31 }
0x3eaa   :  { %3539 = vpow2.f32 %v2925_v32 }
0x3eac   :  { %v3538_v29 = vpop.eup %3537 }
0x3ead   :  { %2949 = vrot.lane.b32.xlu0 %v3538_v29, %s3655_s25 }
0x3eb0   :  { %v3540_v33 = vpop.eup %3539 }
0x3eb5   :  { %2969 = vrot.lane.b32.xlu0 %v4237_v23, %s3653_s2  ;;  %v2927_v23 = vadd.f32 1.0, %v3540_v33 }
0x3eb7   :  { %3541 = vrcp.f32 %v2927_v23  ;;  %v2939_v42 = vand.u32 2147483648, %v2927_v23  ;;  %vm2933_vm3 = vweird.f32 %v2927_v23  ;;  %v2937_v3 = vand.u32 2147483647, %v2927_v23 }
0x3eb9   :  { %v2940_v16 = vor.u32 1.1754944e-38, %v2939_v42  ;;  %vm2938_vm10 = vcmp.eq.f32.partialorder %v2937_v3, 8.507059e+37 }
0x3ebd   :  { %2993 = vrot.lane.b32.xlu0 %v2991_v13, %s3658_s28  ;;  %v3542_v53 = vpop.eup %3541 }
0x3ebe   :  { %v2929_v4 = vmul.f32 %v3542_v53, %v2927_v23  ;;  %vm2934_vm7 = vweird.f32 %v3542_v53 }
0x3ebf   :  { %vm2935_vm4 = vmor %vm2933_vm3, %vm2934_vm7 }
0x3ec0   :  { %v2930_v34 = vsub.f32 1.0, %v2929_v4 }
0x3ec2   :  { %v2931_v35 = vmul.f32 %v3542_v53, %v2930_v34 }
0x3ec4   :  { %v2932_v45 = vadd.f32 %v3542_v53, %v2931_v35 }
0x3ec5   :  { %3010 = vrot.lane.b32.xlu0 %v3007_v30, %s3658_s28 }
0x3ec6   :  { %v2936_v38 = vsel %vm2935_vm4, %v3542_v53, %v2932_v45 }
0x3ec7   :  { %v4505_v61 = vsel %vm2938_vm10, %v2940_v16, %v2936_v38 }
0x3ec8   :  { %v2947_v56 = vmul.f32 %v2945_v20, %v4505_v61 }
0x3ecd   :  { %3034 = vrot.lane.b32.xlu0 %v3032_v57, %s3658_s28 }
0x3ed5   :  { %3051 = vrot.lane.b32.xlu0 %v3048_v44, %s3658_s28 }
0x3f1f   :  { %v2950_v1 = vpop.permute.xlu0 %2949 }
0x3f20   :  { %v2952_v40 = vmul.f32 %v2950_v1, %v4505_v61 }
0x3f22   :  { %2954 = vrot.lane.b32.xlu1 %v2952_v40, %s3656_s26 }
0x3f27   :  { %v2970_v12 = vpop.permute.xlu0 %2969 }
0x3f28   :  { %2973 = vst.msk [vmem:[%s4617_s8] sm:$0x3] %vm2972_vm6, %v2970_v12 }
0x3f2a   :  { %2977 = vrot.lane.b32.xlu1 %v2975_v43, %s3658_s28 }
0x3f2f   :  { %v2994_v46 = vpop.permute.xlu0 %2993 }
0x3f30   :  { %2999 = vst.msk [vmem:[%s4616_s7 + $0x1] sm:$0x1] %vm2983_vm11, %v2994_v46 }
0x3f32   :  { %2995 = vrot.lane.b32.xlu1 %v2992_v47, %s3658_s28 }
0x3f37   :  { %v3011_v22 = vpop.permute.xlu0 %3010 }
0x3f38   :  { %3015 = vst.msk [vmem:[%s4616_s7 + $0xa] sm:$0x1] %vm2983_vm11, %v3011_v22 }
0x3f3a   :  { %3023 = vrot.lane.b32.xlu1 %v3021_v48, %s3658_s28 }
0x3f3f   :  { %v3035_v50 = vpop.permute.xlu0 %3034 }
0x3f40   :  { %3040 = vst.msk [vmem:[%s4616_s7 + $0x4] sm:$0x1] %vm2983_vm11, %v3035_v50 }
0x3f42   :  { %3036 = vrot.lane.b32.xlu1 %v3033_v52, %s3658_s28 }
0x3f47   :  { %v3052_v10 = vpop.permute.xlu0 %3051 }
0x3f48   :  { %3056 = vst.msk [vmem:[%s4616_s7 + $0xd] sm:$0x1] %vm2983_vm11, %v3052_v10 }
0x3f4a   :  { %3064 = vrot.lane.b32.xlu1 %v3062_v60, %s3658_s28 }
0x3f94   :  { %v2955_v58 = vpop.permute.xlu1 %2954 }
0x3f95   :  { %v2957_v62 = vadd.f32 %v2955_v58, %v2947_v56 }
0x3f97   :  { %3543 = vtanh.f32 %v2957_v62 }
0x3f9c   :  { %v2978_v63 = vpop.permute.xlu1 %2977 }
0x3f9d   :  { %v3544_v24 = vpop.eup %3543  ;;  %2984 = vst.msk [vmem:[%s4616_s7] sm:$0x1] %vm2983_vm11, %v2978_v63 }
0x3f9e   :  { %2960 = vrot.lane.b32.xlu2 %v3544_v24, %s3657_s27 }
0x3fa4   :  { %v2996_v55 = vpop.permute.xlu1 %2995 }
0x3fa5   :  { %3000 = vst.msk [vmem:[%s4616_s7 + $0x9] sm:$0x1] %vm2983_vm11, %v2996_v55 }
0x3fa6   :  { %2979 = vrot.lane.b32.xlu2 %v2976_v9, %s3658_s28 }
0x3fac   :  { %v3024_v49 = vpop.permute.xlu1 %3023 }
0x3fad   :  { %3029 = vst.msk [vmem:[%s4616_s7 + $0x3] sm:$0x1] %vm2983_vm11, %v3024_v49 }
0x3fae   :  { %3008 = vrot.lane.b32.xlu2 %v3006_v17, %s3658_s28 }
0x3fb4   :  { %v3037_v59 = vpop.permute.xlu1 %3036 }
0x3fb5   :  { %3041 = vst.msk [vmem:[%s4616_s7 + $0xc] sm:$0x1] %vm2983_vm11, %v3037_v59 }
0x3fb6   :  { %3025 = vrot.lane.b32.xlu2 %v3022_v7, %s3658_s28 }
0x3fbc   :  { %v3065_v15 = vpop.permute.xlu1 %3064 }
0x3fbd   :  { %3070 = vst.msk [vmem:[%s4616_s7 + $0x6] sm:$0x1] %vm2983_vm11, %v3065_v15 }
0x3fbe   :  { %3049 = vrot.lane.b32.xlu2 %v3047_v37, %s3658_s28 }
0x3fc6   :  { %3066 = vrot.lane.b32.xlu2 %v3063_v19, %s3658_s28 }
0x3ff8   :  { %v2961_v41 = vpop.permute.xlu2 %2960 }
0x3ff9   :  { %v2963_v0 = vmul.f32 %v2961_v41, %v4505_v61 }
0x3ffb   :  { %3073 = vst [vmem:[#allocation1] sm:$0xff] %v2963_v0 }
0x4000   :  { %v2980_v2 = vpop.permute.xlu2 %2979 }
0x4001   :  { %2985 = vst.msk [vmem:[%s4616_s7 + $0x8] sm:$0x1] %vm2983_vm11, %v2980_v2 }
0x4002   :  { %v3075_v25 = vld [vmem:[#allocation1 + $0x6] ss:$9 sm:$0xff] }
0x4003   :  { %v3077_v11 = vld [vmem:[#allocation1 + $0x7] ss:$9 sm:$0xff]  ;;  %v3078_v39 = vperm.slane %v3075_v25, 0 }
0x4004   :  { %v3079_v5 = vperm.slane %v3077_v11, 0 }
0x4005   :  { %3080 = vrot.lane.b32.xlu0 %v3078_v39, %s3658_s28 }
0x4006   :  { %3082 = vrot.lane.b32.xlu1 %v3079_v5, %s3658_s28 }
0x4008   :  { %v3009_v26 = vpop.permute.xlu2 %3008 }
0x4009   :  { %3014 = vst.msk [vmem:[%s4616_s7 + $0x2] sm:$0x1] %vm2983_vm11, %v3009_v26 }
0x4010   :  { %v3026_v21 = vpop.permute.xlu2 %3025 }
0x4011   :  { %3030 = vst.msk [vmem:[%s4616_s7 + $0xb] sm:$0x1] %vm2983_vm11, %v3026_v21 }
0x4018   :  { %v3050_v6 = vpop.permute.xlu2 %3049 }
0x4019   :  { %3055 = vst.msk [vmem:[%s4616_s7 + $0x5] sm:$0x1] %vm2983_vm11, %v3050_v6 }
0x4020   :  { %v3067_v27 = vpop.permute.xlu2 %3066 }
0x4021   :  { %3071 = vst.msk [vmem:[%s4616_s7 + $0xe] sm:$0x1] %vm2983_vm11, %v3067_v27 }
0x4077   :  { %v3081_v36 = vpop.permute.xlu0 %3080 }
0x4078   :  { %v3083_v51 = vpop.permute.xlu1 %3082  ;;  %3086 = vst.msk [vmem:[%s4616_s7 + $0x7] sm:$0x1] %vm2983_vm11, %v3081_v36 }
0x4079   :  { %3087 = vst.msk [vmem:[%s4616_s7 + $0xf] sm:$0x1] %vm2983_vm11, %v3083_v51 }
0x407a   :  { %3643 = dma.done.wait [#allocation4], 32  }
0x407b   :  { %3644 = vsyncadd [#allocation4], 4294967264 }
0x407c   :  { %3645 = dma.done.wait [#allocation7], 64  }
0x407d   :  { %3646 = vsyncadd [#allocation7], 4294967232 }
0x407e   :  { %3141 = vsyncpa [#allocation3], 1 }
0x407f   :  { %3142 = vsyncpa [#allocation4], 1 }
0x4080   :  { %3143 = vsyncpa [#allocation7], 1 }

</bundles_post_ra>
